<compile_context>
chip_gen: v5e
topology: v5e:2x2
jax: 0.10.0
libtpu: 0.0.40
codegen_flags: <defaults>
</compile_context>

<pallas_src>
import functools
import math

import jax
import jax.numpy as jnp
from jax.experimental import pallas as pl
from jax.experimental.pallas import tpu as pltpu

# ----------------------------- model config -----------------------------
D_MODEL = 32
H = 4
D_K = D_MODEL // H
D_FF = 64
N_LAYERS = 2
B = 2
T_TRG = 8      # target (decoder) sequence length
T_SRC = 16     # source (encoder memory) sequence length
PAD_IDX = 0
LN_EPS = 1e-5
NEG_BIG = 1e9  # finite "minus infinity" for masking (avoids NaN on masked rows)


# ----------------------------- fused Pallas kernel -----------------------------
def _decoder_kernel(
    x_ref, mem_ref, sbias_ref, ebias_ref,
    ln0_g_ref, ln0_b_ref, ln1_g_ref, ln1_b_ref, ln2_g_ref, ln2_b_ref,
    s_wqkv_ref, s_bqkv_ref, s_wo_ref, s_bo_ref,
    e_wq_ref, e_bq_ref, e_wkv_ref, e_bkv_ref, e_wo_ref, e_bo_ref,
    w1_ref, b1_ref, w2_ref, b2_ref,
    o_ref, att_ref, *, n_layers,
):
    D = D_MODEL
    inv_sqrt_dk = 1.0 / math.sqrt(D_K)

    # Whole residual stream / memory as flat 2-D (rows, features) slabs in VMEM.
    x = x_ref[...]          # (B*T, D)
    mem = mem_ref[...]      # (B*S, D)
    # Precomputed block-diagonal additive biases (0 keep / -1e9 masked OR
    # cross-batch), loaded once and reused by every layer.
    sbias = sbias_ref[...]  # (B*T, B*T)
    ebias = ebias_ref[...]  # (B*T, B*S)

    def layer_norm(v, g, b):
        mu = jnp.mean(v, axis=-1, keepdims=True)
        vc = v - mu
        var = jnp.mean(vc * vc, axis=-1, keepdims=True)
        return vc * jax.lax.rsqrt(var + LN_EPS) * g + b

    def attention(q, kT, v, bias):
        # q: (B*T, D)  kT: (D, B*nk)  v: (B*nk, D)  bias: (B*T, B*nk)
        # One block-diagonal score matmul + one softmax chain + one PV matmul
        # per head, fused over the batch.  Head outputs go straight into the
        # VMEM scratch slab at their static lane offsets (no concatenates).
        q = q * inv_sqrt_dk                              # scale once per sublayer
        for h in range(H):
            lo = h * D_K
            hi = lo + D_K
            s = jnp.dot(q[:, lo:hi], kT[lo:hi, :],
                        preferred_element_type=jnp.float32) + bias
            s = s - jnp.max(s, axis=-1, keepdims=True)
            p = jnp.exp(s)
            p = p * pl.reciprocal(jnp.sum(p, axis=-1, keepdims=True), approx=True)
            att_ref[:, lo:hi] = jnp.dot(p, v[:, lo:hi],
                                        preferred_element_type=jnp.float32)
        return att_ref[...]                              # (B*T, D)

    for l in range(n_layers):
        # ---- sublayer 0: masked self-attention  x + SelfAtt(LN0(x)) ----
        xn = layer_norm(x, ln0_g_ref[l], ln0_b_ref[l])
        qkv = (jnp.dot(xn, s_wqkv_ref[l], preferred_element_type=jnp.float32)
               + s_bqkv_ref[l])                          # (B*T, 3D)
        kT = qkv[:, D:2 * D].T                           # one transpose per sublayer
        att = attention(qkv[:, 0:D], kT, qkv[:, 2 * D:3 * D], sbias)
        x = x + (jnp.dot(att, s_wo_ref[l], preferred_element_type=jnp.float32)
                 + s_bo_ref[l])

        # ---- sublayer 1: encoder-decoder attention  x + EncAtt(LN1(x), mem) ----
        xn = layer_norm(x, ln1_g_ref[l], ln1_b_ref[l])
        qe = (jnp.dot(xn, e_wq_ref[l], preferred_element_type=jnp.float32)
              + e_bq_ref[l])                             # (B*T, D)
        kv = (jnp.dot(mem, e_wkv_ref[l], preferred_element_type=jnp.float32)
              + e_bkv_ref[l])                            # (B*S, 2D)
        kT = kv[:, 0:D].T                                # (D, B*S)
        att = attention(qe, kT, kv[:, D:2 * D], ebias)
        x = x + (jnp.dot(att, e_wo_ref[l], preferred_element_type=jnp.float32)
                 + e_bo_ref[l])

        # ---- sublayer 2: position-wise feed-forward  x + FFN(LN2(x)) ----
        xn = layer_norm(x, ln2_g_ref[l], ln2_b_ref[l])
        hdn = jnp.maximum(
            jnp.dot(xn, w1_ref[l], preferred_element_type=jnp.float32) + b1_ref[l],
            0.0,
        )
        x = x + (jnp.dot(hdn, w2_ref[l], preferred_element_type=jnp.float32)
                 + b2_ref[l])

    o_ref[...] = x


# ----------------------------- wrapper -----------------------------
def _block_diag_bias(m):
    """(B, nq, nk) {0,1} mask -> (B*nq, B*nk) additive bias.

    Same-batch blocks: 0 where mask==1, -1e9 where mask==0.
    Cross-batch blocks: -1e9 everywhere (so batches can't attend to each other
    even though the score matmul is fused over the whole batch slab).
    """
    Bb, nq, nk = m.shape
    bias = jnp.full((Bb, nq, Bb, nk), -NEG_BIG, jnp.float32)
    idx = jnp.arange(Bb)
    bias = bias.at[idx, :, idx, :].set((m.astype(jnp.float32) - 1.0) * NEG_BIG)
    return bias.reshape(Bb * nq, Bb * nk)


@jax.jit
def decoder_forward(x, memory, src_mask, trg_mask, params):
    B_, T, D = x.shape
    S = memory.shape[1]
    n_layers = params["ln0_g"].shape[0]

    self_mask = jnp.broadcast_to(trg_mask, (B_, T, T)).astype(jnp.int32)
    enc_mask = jnp.broadcast_to(src_mask, (B_, T, S)).astype(jnp.int32)
    sbias = _block_diag_bias(self_mask)   # (B*T, B*T)
    ebias = _block_diag_bias(enc_mask)    # (B*T, B*S)

    x2d = x.reshape(B_ * T, D)
    mem2d = memory.reshape(B_ * S, D)

    args = (
        x2d, mem2d, sbias, ebias,
        params["ln0_g"], params["ln0_b"],
        params["ln1_g"], params["ln1_b"],
        params["ln2_g"], params["ln2_b"],
        params["s_wqkv"], params["s_bqkv"], params["s_wo"], params["s_bo"],
        params["e_wq"], params["e_bq"], params["e_wkv"], params["e_bkv"],
        params["e_wo"], params["e_bo"],
        params["w1"], params["b1"], params["w2"], params["b2"],
    )

    # Advisory cost estimate for XLA scheduling around the custom call.
    BT, BS = B_ * T, B_ * S
    flops = n_layers * (
        2 * BT * D * 3 * D            # self-attention fused QKV projection
        + 2 * H * BT * BT * D_K * 2   # self-attention block-diag scores + PV
        + 2 * BT * D * D              # self-attention output projection
        + 2 * BT * D * D              # enc-attention Q projection
        + 2 * BS * D * 2 * D          # enc-attention fused KV projection
        + 2 * H * BT * BS * D_K * 2   # enc-attention block-diag scores + PV
        + 2 * BT * D * D              # enc-attention output projection
        + 2 * BT * D * D_FF * 2       # FFN fc1 + fc2
    )
    transcendentals = n_layers * H * (BT * BT + BT * BS)
    bytes_accessed = (
        sum(int(a.size) * a.dtype.itemsize for a in args) + BT * D * 4
    )

    out2d = pl.pallas_call(
        functools.partial(_decoder_kernel, n_layers=n_layers),
        out_shape=jax.ShapeDtypeStruct((BT, D), jnp.float32),
        scratch_shapes=[pltpu.VMEM((BT, D), jnp.float32)],   # head-output slab
        cost_estimate=pl.CostEstimate(
            flops=int(flops),
            transcendentals=int(transcendentals),
            bytes_accessed=int(bytes_accessed),
        ),
    )(*args)
    return out2d.reshape(B_, T, D)


# ----------------------------- params -----------------------------
def init_params(key, n_layers=N_LAYERS):
    D = D_MODEL

    def uni(k, shape, fan_in):
        bound = 1.0 / math.sqrt(fan_in)
        return jax.random.uniform(k, shape, jnp.float32, -bound, bound)

    keys = jax.random.split(key, 22)
    return {
        # LayerNorm params (slightly randomized so the affine path is exercised)
        "ln0_g": 1.0 + 0.1 * jax.random.normal(keys[0], (n_layers, 1, D), jnp.float32),
        "ln0_b": 0.1 * jax.random.normal(keys[1], (n_layers, 1, D), jnp.float32),
        "ln1_g": 1.0 + 0.1 * jax.random.normal(keys[2], (n_layers, 1, D), jnp.float32),
        "ln1_b": 0.1 * jax.random.normal(keys[3], (n_layers, 1, D), jnp.float32),
        "ln2_g": 1.0 + 0.1 * jax.random.normal(keys[4], (n_layers, 1, D), jnp.float32),
        "ln2_b": 0.1 * jax.random.normal(keys[5], (n_layers, 1, D), jnp.float32),
        # self-attention: fused QKV (D, 3D), output proj (D, D)
        "s_wqkv": uni(keys[6], (n_layers, D, 3 * D), D),
        "s_bqkv": uni(keys[7], (n_layers, 1, 3 * D), D),
        "s_wo": uni(keys[8], (n_layers, D, D), D),
        "s_bo": uni(keys[9], (n_layers, 1, D), D),
        # encoder-decoder attention: Q (D, D), fused KV (D, 2D), output proj
        "e_wq": uni(keys[10], (n_layers, D, D), D),
        "e_bq": uni(keys[11], (n_layers, 1, D), D),
        "e_wkv": uni(keys[12], (n_layers, D, 2 * D), D),
        "e_bkv": uni(keys[13], (n_layers, 1, 2 * D), D),
        "e_wo": uni(keys[14], (n_layers, D, D), D),
        "e_bo": uni(keys[15], (n_layers, 1, D), D),
        # position-wise feed-forward
        "w1": uni(keys[16], (n_layers, D, D_FF), D),
        "b1": uni(keys[17], (n_layers, 1, D_FF), D),
        "w2": uni(keys[18], (n_layers, D_FF, D), D_FF),
        "b2": uni(keys[19], (n_layers, 1, D), D_FF),
    }


# ----------------------------- pure-JAX reference -----------------------------
def reference_decoder(x, memory, src_mask, trg_mask, params):
    D = D_MODEL

    def ln(v, g, b):
        mu = jnp.mean(v, -1, keepdims=True)
        var = jnp.mean((v - mu) ** 2, -1, keepdims=True)
        return (v - mu) / jnp.sqrt(var + LN_EPS) * g + b

    def mha(xq, xkv, m, wq, bq, wk, bk, wv, bv, wo, bo):
        B_, Tq, _ = xq.shape
        Tk = xkv.shape[1]
        q = (xq @ wq + bq).reshape(B_, Tq, H, D_K).transpose(0, 2, 1, 3)
        k = (xkv @ wk + bk).reshape(B_, Tk, H, D_K).transpose(0, 2, 1, 3)
        v = (xkv @ wv + bv).reshape(B_, Tk, H, D_K).transpose(0, 2, 1, 3)
        s = jnp.einsum("bhqd,bhkd->bhqk", q, k) / math.sqrt(D_K)
        s = jnp.where(m[:, None, :, :] == 0, -jnp.inf, s)
        p = jax.nn.softmax(s, axis=-1)
        o = jnp.einsum("bhqk,bhkd->bhqd", p, v).transpose(0, 2, 1, 3)
        return o.reshape(B_, Tq, D) @ wo + bo

    B_, T, _ = x.shape
    S = memory.shape[1]
    mask_self = jnp.broadcast_to(trg_mask, (B_, T, T)).astype(jnp.int32)
    mask_enc = jnp.broadcast_to(src_mask, (B_, T, S)).astype(jnp.int32)
    n_layers = params["ln0_g"].shape[0]

    for l in range(n_layers):
        wqkv, bqkv = params["s_wqkv"][l], params["s_bqkv"][l][0]
        xn = ln(x, params["ln0_g"][l][0], params["ln0_b"][l][0])
        x = x + mha(
            xn, xn, mask_self,
            wqkv[:, :D], bqkv[:D],
            wqkv[:, D:2 * D], bqkv[D:2 * D],
            wqkv[:, 2 * D:], bqkv[2 * D:],
            params["s_wo"][l], params["s_bo"][l][0],
        )
        wkv, bkv = params["e_wkv"][l], params["e_bkv"][l][0]
        xn = ln(x, params["ln1_g"][l][0], params["ln1_b"][l][0])
        x = x + mha(
            xn, memory, mask_enc,
            params["e_wq"][l], params["e_bq"][l][0],
            wkv[:, :D], bkv[:D],
            wkv[:, D:], bkv[D:],
            params["e_wo"][l], params["e_bo"][l][0],
        )
        xn = ln(x, params["ln2_g"][l][0], params["ln2_b"][l][0])
        h = jnp.maximum(xn @ params["w1"][l] + params["b1"][l][0], 0.0)
        x = x + h @ params["w2"][l] + params["b2"][l][0]
    return x


# ----------------------------- main -----------------------------
if __name__ == "__main__":
    key = jax.random.PRNGKey(0)
    k_p, k_x, k_m, k_src, k_trg = jax.random.split(key, 5)
    params = init_params(k_p)

    x = jax.random.normal(k_x, (B, T_TRG, D_MODEL), jnp.float32)
    memory = jax.random.normal(k_m, (B, T_SRC, D_MODEL), jnp.float32)

    # Build masks exactly like mask(src, trg, pad_idx) in the PyTorch spec.
    src_tok = jax.random.randint(k_src, (B, T_SRC), 0, 10)
    src_tok = src_tok.at[:, 0].set(1)                        # >=1 non-pad per row
    trg_tok = jax.random.randint(k_trg, (B, T_TRG), 1, 10)   # no pad in target

    src_mask = (src_tok != PAD_IDX)[:, None, :]              # (B, 1, S)
    tril = jnp.tril(jnp.ones((1, T_TRG, T_TRG), jnp.int32))
    trg_mask = (trg_tok != PAD_IDX)[:, None, :].astype(jnp.int32) & tril  # (B, T, T)

    out = decoder_forward(x, memory, src_mask, trg_mask, params)
    out = jax.block_until_ready(out)

    ref = reference_decoder(x, memory, src_mask, trg_mask, params)
    assert out.shape == (B, T_TRG, D_MODEL)
    max_err = float(jnp.max(jnp.abs(out - ref)))
    assert jnp.allclose(out, ref, atol=2e-3, rtol=2e-3), max_err
    print("KERNEL_OK")
</pallas_src>

<mosaic_0001>
module attributes {stable_mosaic.version = 11 : i64} {
  func.func @_decoder_kernel(%arg0: memref<16x32xf32, #tpu.memory_space<vmem>>, %arg1: memref<32x32xf32, #tpu.memory_space<vmem>>, %arg2: memref<16x16xf32, #tpu.memory_space<vmem>>, %arg3: memref<16x32xf32, #tpu.memory_space<vmem>>, %arg4: memref<2x1x32xf32, #tpu.memory_space<vmem>>, %arg5: memref<2x1x32xf32, #tpu.memory_space<vmem>>, %arg6: memref<2x1x32xf32, #tpu.memory_space<vmem>>, %arg7: memref<2x1x32xf32, #tpu.memory_space<vmem>>, %arg8: memref<2x1x32xf32, #tpu.memory_space<vmem>>, %arg9: memref<2x1x32xf32, #tpu.memory_space<vmem>>, %arg10: memref<2x32x96xf32, #tpu.memory_space<vmem>>, %arg11: memref<2x1x96xf32, #tpu.memory_space<vmem>>, %arg12: memref<2x32x32xf32, #tpu.memory_space<vmem>>, %arg13: memref<2x1x32xf32, #tpu.memory_space<vmem>>, %arg14: memref<2x32x32xf32, #tpu.memory_space<vmem>>, %arg15: memref<2x1x32xf32, #tpu.memory_space<vmem>>, %arg16: memref<2x32x64xf32, #tpu.memory_space<vmem>>, %arg17: memref<2x1x64xf32, #tpu.memory_space<vmem>>, %arg18: memref<2x32x32xf32, #tpu.memory_space<vmem>>, %arg19: memref<2x1x32xf32, #tpu.memory_space<vmem>>, %arg20: memref<2x32x64xf32, #tpu.memory_space<vmem>>, %arg21: memref<2x1x64xf32, #tpu.memory_space<vmem>>, %arg22: memref<2x64x32xf32, #tpu.memory_space<vmem>>, %arg23: memref<2x1x32xf32, #tpu.memory_space<vmem>>, %arg24: memref<16x32xf32, #tpu.memory_space<vmem>>, %arg25: memref<16x32xf32, #tpu.memory_space<vmem>>) attributes {dimension_semantics = [], scalar_prefetch = 0 : i64, scratch_operands = 1 : i64, tpu.core_type = #tpu.core_type<tc>} {
    %c0 = arith.constant 0 : index
    %c0_0 = arith.constant 0 : index
    %0 = vector.load %arg0[%c0, %c0_0] : memref<16x32xf32, #tpu.memory_space<vmem>>, vector<16x32xf32>
    %c0_1 = arith.constant 0 : index
    %c0_2 = arith.constant 0 : index
    %1 = vector.load %arg1[%c0_1, %c0_2] : memref<32x32xf32, #tpu.memory_space<vmem>>, vector<32x32xf32>
    %c0_3 = arith.constant 0 : index
    %c0_4 = arith.constant 0 : index
    %2 = vector.load %arg2[%c0_3, %c0_4] : memref<16x16xf32, #tpu.memory_space<vmem>>, vector<16x16xf32>
    %c0_5 = arith.constant 0 : index
    %c0_6 = arith.constant 0 : index
    %3 = vector.load %arg3[%c0_5, %c0_6] : memref<16x32xf32, #tpu.memory_space<vmem>>, vector<16x32xf32>
    %c0_7 = arith.constant 0 : index
    %c0_8 = arith.constant 0 : index
    %c0_9 = arith.constant 0 : index
    %4 = vector.load %arg4[%c0_7, %c0_8, %c0_9] : memref<2x1x32xf32, #tpu.memory_space<vmem>>, vector<1x1x32xf32>
    %5 = vector.shape_cast %4 : vector<1x1x32xf32> to vector<1x32xf32>
    %c0_10 = arith.constant 0 : index
    %c0_11 = arith.constant 0 : index
    %c0_12 = arith.constant 0 : index
    %6 = vector.load %arg5[%c0_10, %c0_11, %c0_12] : memref<2x1x32xf32, #tpu.memory_space<vmem>>, vector<1x1x32xf32>
    %7 = vector.shape_cast %6 : vector<1x1x32xf32> to vector<1x32xf32>
    %cst = arith.constant dense<0.000000e+00> : vector<16xf32>
    %8 = vector.multi_reduction <add>, %0, %cst [1] : vector<16x32xf32> to vector<16xf32>
    %9 = vector.shape_cast %8 : vector<16xf32> to vector<16x1xf32>
    %cst_13 = arith.constant 3.200000e+01 : f32
    %10 = vector.broadcast %cst_13 : f32 to vector<16x1xf32>
    %11 = arith.divf %9, %10 : vector<16x1xf32>
    %12 = vector.broadcast %11 : vector<16x1xf32> to vector<16x32xf32>
    %13 = arith.subf %0, %12 : vector<16x32xf32>
    %14 = arith.mulf %13, %13 : vector<16x32xf32>
    %cst_14 = arith.constant dense<0.000000e+00> : vector<16xf32>
    %15 = vector.multi_reduction <add>, %14, %cst_14 [1] : vector<16x32xf32> to vector<16xf32>
    %16 = vector.shape_cast %15 : vector<16xf32> to vector<16x1xf32>
    %cst_15 = arith.constant 3.200000e+01 : f32
    %17 = vector.broadcast %cst_15 : f32 to vector<16x1xf32>
    %18 = arith.divf %16, %17 : vector<16x1xf32>
    %cst_16 = arith.constant 9.99999974E-6 : f32
    %19 = vector.broadcast %cst_16 : f32 to vector<16x1xf32>
    %20 = arith.addf %18, %19 : vector<16x1xf32>
    %21 = math.rsqrt %20 : vector<16x1xf32>
    %22 = vector.broadcast %21 : vector<16x1xf32> to vector<16x32xf32>
    %23 = arith.mulf %13, %22 : vector<16x32xf32>
    %24 = vector.broadcast %5 : vector<1x32xf32> to vector<16x32xf32>
    %25 = arith.mulf %23, %24 : vector<16x32xf32>
    %26 = vector.broadcast %7 : vector<1x32xf32> to vector<16x32xf32>
    %27 = arith.addf %25, %26 : vector<16x32xf32>
    %c0_17 = arith.constant 0 : index
    %c0_18 = arith.constant 0 : index
    %c0_19 = arith.constant 0 : index
    %28 = vector.load %arg10[%c0_17, %c0_18, %c0_19] : memref<2x32x96xf32, #tpu.memory_space<vmem>>, vector<1x32x96xf32>
    %29 = vector.shape_cast %28 : vector<1x32x96xf32> to vector<32x96xf32>
    %cst_20 = arith.constant dense<0.000000e+00> : vector<16x96xf32>
    %30 = tpu.matmul %27, %29, %cst_20 {dimension_numbers = #tpu.dot_dimension_numbers<[1], [0], [0], [1], [0, 0, 1, 1], [], []>} : vector<16x32xf32>, vector<32x96xf32>, vector<16x96xf32> -> vector<16x96xf32>
    %c0_21 = arith.constant 0 : index
    %c0_22 = arith.constant 0 : index
    %c0_23 = arith.constant 0 : index
    %31 = vector.load %arg11[%c0_21, %c0_22, %c0_23] : memref<2x1x96xf32, #tpu.memory_space<vmem>>, vector<1x1x96xf32>
    %32 = vector.shape_cast %31 : vector<1x1x96xf32> to vector<1x96xf32>
    %33 = vector.broadcast %32 : vector<1x96xf32> to vector<16x96xf32>
    %34 = arith.addf %30, %33 : vector<16x96xf32>
    %35 = vector.extract_strided_slice %34 {offsets = [0, 32], sizes = [16, 32], strides = [1, 1]} : vector<16x96xf32> to vector<16x32xf32>
    %36 = tpu.transpose %35, [1, 0] : vector<16x32xf32> -> vector<32x16xf32>
    %37 = vector.extract_strided_slice %34 {offsets = [0, 0], sizes = [16, 32], strides = [1, 1]} : vector<16x96xf32> to vector<16x32xf32>
    %38 = vector.extract_strided_slice %34 {offsets = [0, 64], sizes = [16, 32], strides = [1, 1]} : vector<16x96xf32> to vector<16x32xf32>
    %cst_24 = arith.constant 0.353553385 : f32
    %39 = vector.broadcast %cst_24 : f32 to vector<16x32xf32>
    %40 = arith.mulf %37, %39 : vector<16x32xf32>
    %41 = vector.extract_strided_slice %40 {offsets = [0, 0], sizes = [16, 8], strides = [1, 1]} : vector<16x32xf32> to vector<16x8xf32>
    %42 = vector.extract_strided_slice %36 {offsets = [0, 0], sizes = [8, 16], strides = [1, 1]} : vector<32x16xf32> to vector<8x16xf32>
    %cst_25 = arith.constant dense<0.000000e+00> : vector<16x16xf32>
    %43 = tpu.matmul %41, %42, %cst_25 {dimension_numbers = #tpu.dot_dimension_numbers<[1], [0], [0], [1], [0, 0, 1, 1], [], []>} : vector<16x8xf32>, vector<8x16xf32>, vector<16x16xf32> -> vector<16x16xf32>
    %44 = arith.addf %43, %2 : vector<16x16xf32>
    %cst_26 = arith.constant dense<0xFF800000> : vector<16xf32>
    %45 = vector.multi_reduction <maximumf>, %44, %cst_26 [1] : vector<16x16xf32> to vector<16xf32>
    %46 = vector.shape_cast %45 : vector<16xf32> to vector<16x1xf32>
    %47 = vector.broadcast %46 : vector<16x1xf32> to vector<16x16xf32>
    %48 = arith.subf %44, %47 : vector<16x16xf32>
    %49 = math.exp %48 : vector<16x16xf32>
    %cst_27 = arith.constant dense<0.000000e+00> : vector<16xf32>
    %50 = vector.multi_reduction <add>, %49, %cst_27 [1] : vector<16x16xf32> to vector<16xf32>
    %51 = vector.shape_cast %50 : vector<16xf32> to vector<16x1xf32>
    %52 = tpu.reciprocal %51 {approx = true} : vector<16x1xf32> -> vector<16x1xf32>
    %53 = vector.broadcast %52 : vector<16x1xf32> to vector<16x16xf32>
    %54 = arith.mulf %49, %53 : vector<16x16xf32>
    %55 = vector.extract_strided_slice %38 {offsets = [0, 0], sizes = [16, 8], strides = [1, 1]} : vector<16x32xf32> to vector<16x8xf32>
    %cst_28 = arith.constant dense<0.000000e+00> : vector<16x8xf32>
    %56 = tpu.matmul %54, %55, %cst_28 {dimension_numbers = #tpu.dot_dimension_numbers<[1], [0], [0], [1], [0, 0, 1, 1], [], []>} : vector<16x16xf32>, vector<16x8xf32>, vector<16x8xf32> -> vector<16x8xf32>
    %c0_29 = arith.constant 0 : index
    %c0_30 = arith.constant 0 : index
    %57 = vector.load %arg25[%c0_29, %c0_30] : memref<16x32xf32, #tpu.memory_space<vmem>>, vector<16x8xf32>
    tpu.vector_store %arg25[%c0_29, %c0_30], %56 {strides = array<i32>} : memref<16x32xf32, #tpu.memory_space<vmem>>, vector<16x8xf32>,
    %58 = vector.extract_strided_slice %40 {offsets = [0, 8], sizes = [16, 8], strides = [1, 1]} : vector<16x32xf32> to vector<16x8xf32>
    %59 = vector.extract_strided_slice %36 {offsets = [8, 0], sizes = [8, 16], strides = [1, 1]} : vector<32x16xf32> to vector<8x16xf32>
    %cst_31 = arith.constant dense<0.000000e+00> : vector<16x16xf32>
    %60 = tpu.matmul %58, %59, %cst_31 {dimension_numbers = #tpu.dot_dimension_numbers<[1], [0], [0], [1], [0, 0, 1, 1], [], []>} : vector<16x8xf32>, vector<8x16xf32>, vector<16x16xf32> -> vector<16x16xf32>
    %61 = arith.addf %60, %2 : vector<16x16xf32>
    %cst_32 = arith.constant dense<0xFF800000> : vector<16xf32>
    %62 = vector.multi_reduction <maximumf>, %61, %cst_32 [1] : vector<16x16xf32> to vector<16xf32>
    %63 = vector.shape_cast %62 : vector<16xf32> to vector<16x1xf32>
    %64 = vector.broadcast %63 : vector<16x1xf32> to vector<16x16xf32>
    %65 = arith.subf %61, %64 : vector<16x16xf32>
    %66 = math.exp %65 : vector<16x16xf32>
    %cst_33 = arith.constant dense<0.000000e+00> : vector<16xf32>
    %67 = vector.multi_reduction <add>, %66, %cst_33 [1] : vector<16x16xf32> to vector<16xf32>
    %68 = vector.shape_cast %67 : vector<16xf32> to vector<16x1xf32>
    %69 = tpu.reciprocal %68 {approx = true} : vector<16x1xf32> -> vector<16x1xf32>
    %70 = vector.broadcast %69 : vector<16x1xf32> to vector<16x16xf32>
    %71 = arith.mulf %66, %70 : vector<16x16xf32>
    %72 = vector.extract_strided_slice %38 {offsets = [0, 8], sizes = [16, 8], strides = [1, 1]} : vector<16x32xf32> to vector<16x8xf32>
    %cst_34 = arith.constant dense<0.000000e+00> : vector<16x8xf32>
    %73 = tpu.matmul %71, %72, %cst_34 {dimension_numbers = #tpu.dot_dimension_numbers<[1], [0], [0], [1], [0, 0, 1, 1], [], []>} : vector<16x16xf32>, vector<16x8xf32>, vector<16x8xf32> -> vector<16x8xf32>
    %c0_35 = arith.constant 0 : index
    %c8 = arith.constant 8 : index
    %74 = vector.load %arg25[%c0_35, %c8] : memref<16x32xf32, #tpu.memory_space<vmem>>, vector<16x8xf32>
    tpu.vector_store %arg25[%c0_35, %c8], %73 {strides = array<i32>} : memref<16x32xf32, #tpu.memory_space<vmem>>, vector<16x8xf32>,
    %75 = vector.extract_strided_slice %40 {offsets = [0, 16], sizes = [16, 8], strides = [1, 1]} : vector<16x32xf32> to vector<16x8xf32>
    %76 = vector.extract_strided_slice %36 {offsets = [16, 0], sizes = [8, 16], strides = [1, 1]} : vector<32x16xf32> to vector<8x16xf32>
    %cst_36 = arith.constant dense<0.000000e+00> : vector<16x16xf32>
    %77 = tpu.matmul %75, %76, %cst_36 {dimension_numbers = #tpu.dot_dimension_numbers<[1], [0], [0], [1], [0, 0, 1, 1], [], []>} : vector<16x8xf32>, vector<8x16xf32>, vector<16x16xf32> -> vector<16x16xf32>
    %78 = arith.addf %77, %2 : vector<16x16xf32>
    %cst_37 = arith.constant dense<0xFF800000> : vector<16xf32>
    %79 = vector.multi_reduction <maximumf>, %78, %cst_37 [1] : vector<16x16xf32> to vector<16xf32>
    %80 = vector.shape_cast %79 : vector<16xf32> to vector<16x1xf32>
    %81 = vector.broadcast %80 : vector<16x1xf32> to vector<16x16xf32>
    %82 = arith.subf %78, %81 : vector<16x16xf32>
    %83 = math.exp %82 : vector<16x16xf32>
    %cst_38 = arith.constant dense<0.000000e+00> : vector<16xf32>
    %84 = vector.multi_reduction <add>, %83, %cst_38 [1] : vector<16x16xf32> to vector<16xf32>
    %85 = vector.shape_cast %84 : vector<16xf32> to vector<16x1xf32>
    %86 = tpu.reciprocal %85 {approx = true} : vector<16x1xf32> -> vector<16x1xf32>
    %87 = vector.broadcast %86 : vector<16x1xf32> to vector<16x16xf32>
    %88 = arith.mulf %83, %87 : vector<16x16xf32>
    %89 = vector.extract_strided_slice %38 {offsets = [0, 16], sizes = [16, 8], strides = [1, 1]} : vector<16x32xf32> to vector<16x8xf32>
    %cst_39 = arith.constant dense<0.000000e+00> : vector<16x8xf32>
    %90 = tpu.matmul %88, %89, %cst_39 {dimension_numbers = #tpu.dot_dimension_numbers<[1], [0], [0], [1], [0, 0, 1, 1], [], []>} : vector<16x16xf32>, vector<16x8xf32>, vector<16x8xf32> -> vector<16x8xf32>
    %c0_40 = arith.constant 0 : index
    %c16 = arith.constant 16 : index
    %91 = vector.load %arg25[%c0_40, %c16] : memref<16x32xf32, #tpu.memory_space<vmem>>, vector<16x8xf32>
    tpu.vector_store %arg25[%c0_40, %c16], %90 {strides = array<i32>} : memref<16x32xf32, #tpu.memory_space<vmem>>, vector<16x8xf32>,
    %92 = vector.extract_strided_slice %40 {offsets = [0, 24], sizes = [16, 8], strides = [1, 1]} : vector<16x32xf32> to vector<16x8xf32>
    %93 = vector.extract_strided_slice %36 {offsets = [24, 0], sizes = [8, 16], strides = [1, 1]} : vector<32x16xf32> to vector<8x16xf32>
    %cst_41 = arith.constant dense<0.000000e+00> : vector<16x16xf32>
    %94 = tpu.matmul %92, %93, %cst_41 {dimension_numbers = #tpu.dot_dimension_numbers<[1], [0], [0], [1], [0, 0, 1, 1], [], []>} : vector<16x8xf32>, vector<8x16xf32>, vector<16x16xf32> -> vector<16x16xf32>
    %95 = arith.addf %94, %2 : vector<16x16xf32>
    %cst_42 = arith.constant dense<0xFF800000> : vector<16xf32>
    %96 = vector.multi_reduction <maximumf>, %95, %cst_42 [1] : vector<16x16xf32> to vector<16xf32>
    %97 = vector.shape_cast %96 : vector<16xf32> to vector<16x1xf32>
    %98 = vector.broadcast %97 : vector<16x1xf32> to vector<16x16xf32>
    %99 = arith.subf %95, %98 : vector<16x16xf32>
    %100 = math.exp %99 : vector<16x16xf32>
    %cst_43 = arith.constant dense<0.000000e+00> : vector<16xf32>
    %101 = vector.multi_reduction <add>, %100, %cst_43 [1] : vector<16x16xf32> to vector<16xf32>
    %102 = vector.shape_cast %101 : vector<16xf32> to vector<16x1xf32>
    %103 = tpu.reciprocal %102 {approx = true} : vector<16x1xf32> -> vector<16x1xf32>
    %104 = vector.broadcast %103 : vector<16x1xf32> to vector<16x16xf32>
    %105 = arith.mulf %100, %104 : vector<16x16xf32>
    %106 = vector.extract_strided_slice %38 {offsets = [0, 24], sizes = [16, 8], strides = [1, 1]} : vector<16x32xf32> to vector<16x8xf32>
    %cst_44 = arith.constant dense<0.000000e+00> : vector<16x8xf32>
    %107 = tpu.matmul %105, %106, %cst_44 {dimension_numbers = #tpu.dot_dimension_numbers<[1], [0], [0], [1], [0, 0, 1, 1], [], []>} : vector<16x16xf32>, vector<16x8xf32>, vector<16x8xf32> -> vector<16x8xf32>
    %c0_45 = arith.constant 0 : index
    %c24 = arith.constant 24 : index
    %108 = vector.load %arg25[%c0_45, %c24] : memref<16x32xf32, #tpu.memory_space<vmem>>, vector<16x8xf32>
    tpu.vector_store %arg25[%c0_45, %c24], %107 {strides = array<i32>} : memref<16x32xf32, #tpu.memory_space<vmem>>, vector<16x8xf32>,
    %c0_46 = arith.constant 0 : index
    %c0_47 = arith.constant 0 : index
    %109 = vector.load %arg25[%c0_46, %c0_47] : memref<16x32xf32, #tpu.memory_space<vmem>>, vector<16x32xf32>
    %c0_48 = arith.constant 0 : index
    %c0_49 = arith.constant 0 : index
    %c0_50 = arith.constant 0 : index
    %110 = vector.load %arg12[%c0_48, %c0_49, %c0_50] : memref<2x32x32xf32, #tpu.memory_space<vmem>>, vector<1x32x32xf32>
    %111 = vector.shape_cast %110 : vector<1x32x32xf32> to vector<32x32xf32>
    %cst_51 = arith.constant dense<0.000000e+00> : vector<16x32xf32>
    %112 = tpu.matmul %109, %111, %cst_51 {dimension_numbers = #tpu.dot_dimension_numbers<[1], [0], [0], [1], [0, 0, 1, 1], [], []>} : vector<16x32xf32>, vector<32x32xf32>, vector<16x32xf32> -> vector<16x32xf32>
    %c0_52 = arith.constant 0 : index
    %c0_53 = arith.constant 0 : index
    %c0_54 = arith.constant 0 : index
    %113 = vector.load %arg13[%c0_52, %c0_53, %c0_54] : memref<2x1x32xf32, #tpu.memory_space<vmem>>, vector<1x1x32xf32>
    %114 = vector.shape_cast %113 : vector<1x1x32xf32> to vector<1x32xf32>
    %115 = vector.broadcast %114 : vector<1x32xf32> to vector<16x32xf32>
    %116 = arith.addf %112, %115 : vector<16x32xf32>
    %117 = arith.addf %0, %116 : vector<16x32xf32>
    %c0_55 = arith.constant 0 : index
    %c0_56 = arith.constant 0 : index
    %c0_57 = arith.constant 0 : index
    %118 = vector.load %arg6[%c0_55, %c0_56, %c0_57] : memref<2x1x32xf32, #tpu.memory_space<vmem>>, vector<1x1x32xf32>
    %119 = vector.shape_cast %118 : vector<1x1x32xf32> to vector<1x32xf32>
    %c0_58 = arith.constant 0 : index
    %c0_59 = arith.constant 0 : index
    %c0_60 = arith.constant 0 : index
    %120 = vector.load %arg7[%c0_58, %c0_59, %c0_60] : memref<2x1x32xf32, #tpu.memory_space<vmem>>, vector<1x1x32xf32>
    %121 = vector.shape_cast %120 : vector<1x1x32xf32> to vector<1x32xf32>
    %cst_61 = arith.constant dense<0.000000e+00> : vector<16xf32>
    %122 = vector.multi_reduction <add>, %117, %cst_61 [1] : vector<16x32xf32> to vector<16xf32>
    %123 = vector.shape_cast %122 : vector<16xf32> to vector<16x1xf32>
    %cst_62 = arith.constant 3.200000e+01 : f32
    %124 = vector.broadcast %cst_62 : f32 to vector<16x1xf32>
    %125 = arith.divf %123, %124 : vector<16x1xf32>
    %126 = vector.broadcast %125 : vector<16x1xf32> to vector<16x32xf32>
    %127 = arith.subf %117, %126 : vector<16x32xf32>
    %128 = arith.mulf %127, %127 : vector<16x32xf32>
    %cst_63 = arith.constant dense<0.000000e+00> : vector<16xf32>
    %129 = vector.multi_reduction <add>, %128, %cst_63 [1] : vector<16x32xf32> to vector<16xf32>
    %130 = vector.shape_cast %129 : vector<16xf32> to vector<16x1xf32>
    %cst_64 = arith.constant 3.200000e+01 : f32
    %131 = vector.broadcast %cst_64 : f32 to vector<16x1xf32>
    %132 = arith.divf %130, %131 : vector<16x1xf32>
    %cst_65 = arith.constant 9.99999974E-6 : f32
    %133 = vector.broadcast %cst_65 : f32 to vector<16x1xf32>
    %134 = arith.addf %132, %133 : vector<16x1xf32>
    %135 = math.rsqrt %134 : vector<16x1xf32>
    %136 = vector.broadcast %135 : vector<16x1xf32> to vector<16x32xf32>
    %137 = arith.mulf %127, %136 : vector<16x32xf32>
    %138 = vector.broadcast %119 : vector<1x32xf32> to vector<16x32xf32>
    %139 = arith.mulf %137, %138 : vector<16x32xf32>
    %140 = vector.broadcast %121 : vector<1x32xf32> to vector<16x32xf32>
    %141 = arith.addf %139, %140 : vector<16x32xf32>
    %c0_66 = arith.constant 0 : index
    %c0_67 = arith.constant 0 : index
    %c0_68 = arith.constant 0 : index
    %142 = vector.load %arg14[%c0_66, %c0_67, %c0_68] : memref<2x32x32xf32, #tpu.memory_space<vmem>>, vector<1x32x32xf32>
    %143 = vector.shape_cast %142 : vector<1x32x32xf32> to vector<32x32xf32>
    %cst_69 = arith.constant dense<0.000000e+00> : vector<16x32xf32>
    %144 = tpu.matmul %141, %143, %cst_69 {dimension_numbers = #tpu.dot_dimension_numbers<[1], [0], [0], [1], [0, 0, 1, 1], [], []>} : vector<16x32xf32>, vector<32x32xf32>, vector<16x32xf32> -> vector<16x32xf32>
    %c0_70 = arith.constant 0 : index
    %c0_71 = arith.constant 0 : index
    %c0_72 = arith.constant 0 : index
    %145 = vector.load %arg15[%c0_70, %c0_71, %c0_72] : memref<2x1x32xf32, #tpu.memory_space<vmem>>, vector<1x1x32xf32>
    %146 = vector.shape_cast %145 : vector<1x1x32xf32> to vector<1x32xf32>
    %147 = vector.broadcast %146 : vector<1x32xf32> to vector<16x32xf32>
    %148 = arith.addf %144, %147 : vector<16x32xf32>
    %c0_73 = arith.constant 0 : index
    %c0_74 = arith.constant 0 : index
    %c0_75 = arith.constant 0 : index
    %149 = vector.load %arg16[%c0_73, %c0_74, %c0_75] : memref<2x32x64xf32, #tpu.memory_space<vmem>>, vector<1x32x64xf32>
    %150 = vector.shape_cast %149 : vector<1x32x64xf32> to vector<32x64xf32>
    %cst_76 = arith.constant dense<0.000000e+00> : vector<32x64xf32>
    %151 = tpu.matmul %1, %150, %cst_76 {dimension_numbers = #tpu.dot_dimension_numbers<[1], [0], [0], [1], [0, 0, 1, 1], [], []>} : vector<32x32xf32>, vector<32x64xf32>, vector<32x64xf32> -> vector<32x64xf32>
    %c0_77 = arith.constant 0 : index
    %c0_78 = arith.constant 0 : index
    %c0_79 = arith.constant 0 : index
    %152 = vector.load %arg17[%c0_77, %c0_78, %c0_79] : memref<2x1x64xf32, #tpu.memory_space<vmem>>, vector<1x1x64xf32>
    %153 = vector.shape_cast %152 : vector<1x1x64xf32> to vector<1x64xf32>
    %154 = vector.broadcast %153 : vector<1x64xf32> to vector<32x64xf32>
    %155 = arith.addf %151, %154 : vector<32x64xf32>
    %156 = vector.extract_strided_slice %155 {offsets = [0, 0], sizes = [32, 32], strides = [1, 1]} : vector<32x64xf32> to vector<32x32xf32>
    %157 = tpu.transpose %156, [1, 0] : vector<32x32xf32> -> vector<32x32xf32>
    %158 = vector.extract_strided_slice %155 {offsets = [0, 32], sizes = [32, 32], strides = [1, 1]} : vector<32x64xf32> to vector<32x32xf32>
    %cst_80 = arith.constant 0.353553385 : f32
    %159 = vector.broadcast %cst_80 : f32 to vector<16x32xf32>
    %160 = arith.mulf %148, %159 : vector<16x32xf32>
    %161 = vector.extract_strided_slice %160 {offsets = [0, 0], sizes = [16, 8], strides = [1, 1]} : vector<16x32xf32> to vector<16x8xf32>
    %162 = vector.extract_strided_slice %157 {offsets = [0, 0], sizes = [8, 32], strides = [1, 1]} : vector<32x32xf32> to vector<8x32xf32>
    %cst_81 = arith.constant dense<0.000000e+00> : vector<16x32xf32>
    %163 = tpu.matmul %161, %162, %cst_81 {dimension_numbers = #tpu.dot_dimension_numbers<[1], [0], [0], [1], [0, 0, 1, 1], [], []>} : vector<16x8xf32>, vector<8x32xf32>, vector<16x32xf32> -> vector<16x32xf32>
    %164 = arith.addf %163, %3 : vector<16x32xf32>
    %cst_82 = arith.constant dense<0xFF800000> : vector<16xf32>
    %165 = vector.multi_reduction <maximumf>, %164, %cst_82 [1] : vector<16x32xf32> to vector<16xf32>
    %166 = vector.shape_cast %165 : vector<16xf32> to vector<16x1xf32>
    %167 = vector.broadcast %166 : vector<16x1xf32> to vector<16x32xf32>
    %168 = arith.subf %164, %167 : vector<16x32xf32>
    %169 = math.exp %168 : vector<16x32xf32>
    %cst_83 = arith.constant dense<0.000000e+00> : vector<16xf32>
    %170 = vector.multi_reduction <add>, %169, %cst_83 [1] : vector<16x32xf32> to vector<16xf32>
    %171 = vector.shape_cast %170 : vector<16xf32> to vector<16x1xf32>
    %172 = tpu.reciprocal %171 {approx = true} : vector<16x1xf32> -> vector<16x1xf32>
    %173 = vector.broadcast %172 : vector<16x1xf32> to vector<16x32xf32>
    %174 = arith.mulf %169, %173 : vector<16x32xf32>
    %175 = vector.extract_strided_slice %158 {offsets = [0, 0], sizes = [32, 8], strides = [1, 1]} : vector<32x32xf32> to vector<32x8xf32>
    %cst_84 = arith.constant dense<0.000000e+00> : vector<16x8xf32>
    %176 = tpu.matmul %174, %175, %cst_84 {dimension_numbers = #tpu.dot_dimension_numbers<[1], [0], [0], [1], [0, 0, 1, 1], [], []>} : vector<16x32xf32>, vector<32x8xf32>, vector<16x8xf32> -> vector<16x8xf32>
    %c0_85 = arith.constant 0 : index
    %c0_86 = arith.constant 0 : index
    %177 = vector.load %arg25[%c0_85, %c0_86] : memref<16x32xf32, #tpu.memory_space<vmem>>, vector<16x8xf32>
    tpu.vector_store %arg25[%c0_85, %c0_86], %176 {strides = array<i32>} : memref<16x32xf32, #tpu.memory_space<vmem>>, vector<16x8xf32>,
    %178 = vector.extract_strided_slice %160 {offsets = [0, 8], sizes = [16, 8], strides = [1, 1]} : vector<16x32xf32> to vector<16x8xf32>
    %179 = vector.extract_strided_slice %157 {offsets = [8, 0], sizes = [8, 32], strides = [1, 1]} : vector<32x32xf32> to vector<8x32xf32>
    %cst_87 = arith.constant dense<0.000000e+00> : vector<16x32xf32>
    %180 = tpu.matmul %178, %179, %cst_87 {dimension_numbers = #tpu.dot_dimension_numbers<[1], [0], [0], [1], [0, 0, 1, 1], [], []>} : vector<16x8xf32>, vector<8x32xf32>, vector<16x32xf32> -> vector<16x32xf32>
    %181 = arith.addf %180, %3 : vector<16x32xf32>
    %cst_88 = arith.constant dense<0xFF800000> : vector<16xf32>
    %182 = vector.multi_reduction <maximumf>, %181, %cst_88 [1] : vector<16x32xf32> to vector<16xf32>
    %183 = vector.shape_cast %182 : vector<16xf32> to vector<16x1xf32>
    %184 = vector.broadcast %183 : vector<16x1xf32> to vector<16x32xf32>
    %185 = arith.subf %181, %184 : vector<16x32xf32>
    %186 = math.exp %185 : vector<16x32xf32>
    %cst_89 = arith.constant dense<0.000000e+00> : vector<16xf32>
    %187 = vector.multi_reduction <add>, %186, %cst_89 [1] : vector<16x32xf32> to vector<16xf32>
    %188 = vector.shape_cast %187 : vector<16xf32> to vector<16x1xf32>
    %189 = tpu.reciprocal %188 {approx = true} : vector<16x1xf32> -> vector<16x1xf32>
    %190 = vector.broadcast %189 : vector<16x1xf32> to vector<16x32xf32>
    %191 = arith.mulf %186, %190 : vector<16x32xf32>
    %192 = vector.extract_strided_slice %158 {offsets = [0, 8], sizes = [32, 8], strides = [1, 1]} : vector<32x32xf32> to vector<32x8xf32>
    %cst_90 = arith.constant dense<0.000000e+00> : vector<16x8xf32>
    %193 = tpu.matmul %191, %192, %cst_90 {dimension_numbers = #tpu.dot_dimension_numbers<[1], [0], [0], [1], [0, 0, 1, 1], [], []>} : vector<16x32xf32>, vector<32x8xf32>, vector<16x8xf32> -> vector<16x8xf32>
    %c0_91 = arith.constant 0 : index
    %c8_92 = arith.constant 8 : index
    %194 = vector.load %arg25[%c0_91, %c8_92] : memref<16x32xf32, #tpu.memory_space<vmem>>, vector<16x8xf32>
    tpu.vector_store %arg25[%c0_91, %c8_92], %193 {strides = array<i32>} : memref<16x32xf32, #tpu.memory_space<vmem>>, vector<16x8xf32>,
    %195 = vector.extract_strided_slice %160 {offsets = [0, 16], sizes = [16, 8], strides = [1, 1]} : vector<16x32xf32> to vector<16x8xf32>
    %196 = vector.extract_strided_slice %157 {offsets = [16, 0], sizes = [8, 32], strides = [1, 1]} : vector<32x32xf32> to vector<8x32xf32>
    %cst_93 = arith.constant dense<0.000000e+00> : vector<16x32xf32>
    %197 = tpu.matmul %195, %196, %cst_93 {dimension_numbers = #tpu.dot_dimension_numbers<[1], [0], [0], [1], [0, 0, 1, 1], [], []>} : vector<16x8xf32>, vector<8x32xf32>, vector<16x32xf32> -> vector<16x32xf32>
    %198 = arith.addf %197, %3 : vector<16x32xf32>
    %cst_94 = arith.constant dense<0xFF800000> : vector<16xf32>
    %199 = vector.multi_reduction <maximumf>, %198, %cst_94 [1] : vector<16x32xf32> to vector<16xf32>
    %200 = vector.shape_cast %199 : vector<16xf32> to vector<16x1xf32>
    %201 = vector.broadcast %200 : vector<16x1xf32> to vector<16x32xf32>
    %202 = arith.subf %198, %201 : vector<16x32xf32>
    %203 = math.exp %202 : vector<16x32xf32>
    %cst_95 = arith.constant dense<0.000000e+00> : vector<16xf32>
    %204 = vector.multi_reduction <add>, %203, %cst_95 [1] : vector<16x32xf32> to vector<16xf32>
    %205 = vector.shape_cast %204 : vector<16xf32> to vector<16x1xf32>
    %206 = tpu.reciprocal %205 {approx = true} : vector<16x1xf32> -> vector<16x1xf32>
    %207 = vector.broadcast %206 : vector<16x1xf32> to vector<16x32xf32>
    %208 = arith.mulf %203, %207 : vector<16x32xf32>
    %209 = vector.extract_strided_slice %158 {offsets = [0, 16], sizes = [32, 8], strides = [1, 1]} : vector<32x32xf32> to vector<32x8xf32>
    %cst_96 = arith.constant dense<0.000000e+00> : vector<16x8xf32>
    %210 = tpu.matmul %208, %209, %cst_96 {dimension_numbers = #tpu.dot_dimension_numbers<[1], [0], [0], [1], [0, 0, 1, 1], [], []>} : vector<16x32xf32>, vector<32x8xf32>, vector<16x8xf32> -> vector<16x8xf32>
    %c0_97 = arith.constant 0 : index
    %c16_98 = arith.constant 16 : index
    %211 = vector.load %arg25[%c0_97, %c16_98] : memref<16x32xf32, #tpu.memory_space<vmem>>, vector<16x8xf32>
    tpu.vector_store %arg25[%c0_97, %c16_98], %210 {strides = array<i32>} : memref<16x32xf32, #tpu.memory_space<vmem>>, vector<16x8xf32>,
    %212 = vector.extract_strided_slice %160 {offsets = [0, 24], sizes = [16, 8], strides = [1, 1]} : vector<16x32xf32> to vector<16x8xf32>
    %213 = vector.extract_strided_slice %157 {offsets = [24, 0], sizes = [8, 32], strides = [1, 1]} : vector<32x32xf32> to vector<8x32xf32>
    %cst_99 = arith.constant dense<0.000000e+00> : vector<16x32xf32>
    %214 = tpu.matmul %212, %213, %cst_99 {dimension_numbers = #tpu.dot_dimension_numbers<[1], [0], [0], [1], [0, 0, 1, 1], [], []>} : vector<16x8xf32>, vector<8x32xf32>, vector<16x32xf32> -> vector<16x32xf32>
    %215 = arith.addf %214, %3 : vector<16x32xf32>
    %cst_100 = arith.constant dense<0xFF800000> : vector<16xf32>
    %216 = vector.multi_reduction <maximumf>, %215, %cst_100 [1] : vector<16x32xf32> to vector<16xf32>
    %217 = vector.shape_cast %216 : vector<16xf32> to vector<16x1xf32>
    %218 = vector.broadcast %217 : vector<16x1xf32> to vector<16x32xf32>
    %219 = arith.subf %215, %218 : vector<16x32xf32>
    %220 = math.exp %219 : vector<16x32xf32>
    %cst_101 = arith.constant dense<0.000000e+00> : vector<16xf32>
    %221 = vector.multi_reduction <add>, %220, %cst_101 [1] : vector<16x32xf32> to vector<16xf32>
    %222 = vector.shape_cast %221 : vector<16xf32> to vector<16x1xf32>
    %223 = tpu.reciprocal %222 {approx = true} : vector<16x1xf32> -> vector<16x1xf32>
    %224 = vector.broadcast %223 : vector<16x1xf32> to vector<16x32xf32>
    %225 = arith.mulf %220, %224 : vector<16x32xf32>
    %226 = vector.extract_strided_slice %158 {offsets = [0, 24], sizes = [32, 8], strides = [1, 1]} : vector<32x32xf32> to vector<32x8xf32>
    %cst_102 = arith.constant dense<0.000000e+00> : vector<16x8xf32>
    %227 = tpu.matmul %225, %226, %cst_102 {dimension_numbers = #tpu.dot_dimension_numbers<[1], [0], [0], [1], [0, 0, 1, 1], [], []>} : vector<16x32xf32>, vector<32x8xf32>, vector<16x8xf32> -> vector<16x8xf32>
    %c0_103 = arith.constant 0 : index
    %c24_104 = arith.constant 24 : index
    %228 = vector.load %arg25[%c0_103, %c24_104] : memref<16x32xf32, #tpu.memory_space<vmem>>, vector<16x8xf32>
    tpu.vector_store %arg25[%c0_103, %c24_104], %227 {strides = array<i32>} : memref<16x32xf32, #tpu.memory_space<vmem>>, vector<16x8xf32>,
    %c0_105 = arith.constant 0 : index
    %c0_106 = arith.constant 0 : index
    %229 = vector.load %arg25[%c0_105, %c0_106] : memref<16x32xf32, #tpu.memory_space<vmem>>, vector<16x32xf32>
    %c0_107 = arith.constant 0 : index
    %c0_108 = arith.constant 0 : index
    %c0_109 = arith.constant 0 : index
    %230 = vector.load %arg18[%c0_107, %c0_108, %c0_109] : memref<2x32x32xf32, #tpu.memory_space<vmem>>, vector<1x32x32xf32>
    %231 = vector.shape_cast %230 : vector<1x32x32xf32> to vector<32x32xf32>
    %cst_110 = arith.constant dense<0.000000e+00> : vector<16x32xf32>
    %232 = tpu.matmul %229, %231, %cst_110 {dimension_numbers = #tpu.dot_dimension_numbers<[1], [0], [0], [1], [0, 0, 1, 1], [], []>} : vector<16x32xf32>, vector<32x32xf32>, vector<16x32xf32> -> vector<16x32xf32>
    %c0_111 = arith.constant 0 : index
    %c0_112 = arith.constant 0 : index
    %c0_113 = arith.constant 0 : index
    %233 = vector.load %arg19[%c0_111, %c0_112, %c0_113] : memref<2x1x32xf32, #tpu.memory_space<vmem>>, vector<1x1x32xf32>
    %234 = vector.shape_cast %233 : vector<1x1x32xf32> to vector<1x32xf32>
    %235 = vector.broadcast %234 : vector<1x32xf32> to vector<16x32xf32>
    %236 = arith.addf %232, %235 : vector<16x32xf32>
    %237 = arith.addf %117, %236 : vector<16x32xf32>
    %c0_114 = arith.constant 0 : index
    %c0_115 = arith.constant 0 : index
    %c0_116 = arith.constant 0 : index
    %238 = vector.load %arg8[%c0_114, %c0_115, %c0_116] : memref<2x1x32xf32, #tpu.memory_space<vmem>>, vector<1x1x32xf32>
    %239 = vector.shape_cast %238 : vector<1x1x32xf32> to vector<1x32xf32>
    %c0_117 = arith.constant 0 : index
    %c0_118 = arith.constant 0 : index
    %c0_119 = arith.constant 0 : index
    %240 = vector.load %arg9[%c0_117, %c0_118, %c0_119] : memref<2x1x32xf32, #tpu.memory_space<vmem>>, vector<1x1x32xf32>
    %241 = vector.shape_cast %240 : vector<1x1x32xf32> to vector<1x32xf32>
    %cst_120 = arith.constant dense<0.000000e+00> : vector<16xf32>
    %242 = vector.multi_reduction <add>, %237, %cst_120 [1] : vector<16x32xf32> to vector<16xf32>
    %243 = vector.shape_cast %242 : vector<16xf32> to vector<16x1xf32>
    %cst_121 = arith.constant 3.200000e+01 : f32
    %244 = vector.broadcast %cst_121 : f32 to vector<16x1xf32>
    %245 = arith.divf %243, %244 : vector<16x1xf32>
    %246 = vector.broadcast %245 : vector<16x1xf32> to vector<16x32xf32>
    %247 = arith.subf %237, %246 : vector<16x32xf32>
    %248 = arith.mulf %247, %247 : vector<16x32xf32>
    %cst_122 = arith.constant dense<0.000000e+00> : vector<16xf32>
    %249 = vector.multi_reduction <add>, %248, %cst_122 [1] : vector<16x32xf32> to vector<16xf32>
    %250 = vector.shape_cast %249 : vector<16xf32> to vector<16x1xf32>
    %cst_123 = arith.constant 3.200000e+01 : f32
    %251 = vector.broadcast %cst_123 : f32 to vector<16x1xf32>
    %252 = arith.divf %250, %251 : vector<16x1xf32>
    %cst_124 = arith.constant 9.99999974E-6 : f32
    %253 = vector.broadcast %cst_124 : f32 to vector<16x1xf32>
    %254 = arith.addf %252, %253 : vector<16x1xf32>
    %255 = math.rsqrt %254 : vector<16x1xf32>
    %256 = vector.broadcast %255 : vector<16x1xf32> to vector<16x32xf32>
    %257 = arith.mulf %247, %256 : vector<16x32xf32>
    %258 = vector.broadcast %239 : vector<1x32xf32> to vector<16x32xf32>
    %259 = arith.mulf %257, %258 : vector<16x32xf32>
    %260 = vector.broadcast %241 : vector<1x32xf32> to vector<16x32xf32>
    %261 = arith.addf %259, %260 : vector<16x32xf32>
    %c0_125 = arith.constant 0 : index
    %c0_126 = arith.constant 0 : index
    %c0_127 = arith.constant 0 : index
    %262 = vector.load %arg20[%c0_125, %c0_126, %c0_127] : memref<2x32x64xf32, #tpu.memory_space<vmem>>, vector<1x32x64xf32>
    %263 = vector.shape_cast %262 : vector<1x32x64xf32> to vector<32x64xf32>
    %cst_128 = arith.constant dense<0.000000e+00> : vector<16x64xf32>
    %264 = tpu.matmul %261, %263, %cst_128 {dimension_numbers = #tpu.dot_dimension_numbers<[1], [0], [0], [1], [0, 0, 1, 1], [], []>} : vector<16x32xf32>, vector<32x64xf32>, vector<16x64xf32> -> vector<16x64xf32>
    %c0_129 = arith.constant 0 : index
    %c0_130 = arith.constant 0 : index
    %c0_131 = arith.constant 0 : index
    %265 = vector.load %arg21[%c0_129, %c0_130, %c0_131] : memref<2x1x64xf32, #tpu.memory_space<vmem>>, vector<1x1x64xf32>
    %266 = vector.shape_cast %265 : vector<1x1x64xf32> to vector<1x64xf32>
    %267 = vector.broadcast %266 : vector<1x64xf32> to vector<16x64xf32>
    %268 = arith.addf %264, %267 : vector<16x64xf32>
    %cst_132 = arith.constant 0.000000e+00 : f32
    %269 = vector.broadcast %cst_132 : f32 to vector<16x64xf32>
    %270 = arith.maximumf %268, %269 : vector<16x64xf32>
    %c0_133 = arith.constant 0 : index
    %c0_134 = arith.constant 0 : index
    %c0_135 = arith.constant 0 : index
    %271 = vector.load %arg22[%c0_133, %c0_134, %c0_135] : memref<2x64x32xf32, #tpu.memory_space<vmem>>, vector<1x64x32xf32>
    %272 = vector.shape_cast %271 : vector<1x64x32xf32> to vector<64x32xf32>
    %cst_136 = arith.constant dense<0.000000e+00> : vector<16x32xf32>
    %273 = tpu.matmul %270, %272, %cst_136 {dimension_numbers = #tpu.dot_dimension_numbers<[1], [0], [0], [1], [0, 0, 1, 1], [], []>} : vector<16x64xf32>, vector<64x32xf32>, vector<16x32xf32> -> vector<16x32xf32>
    %c0_137 = arith.constant 0 : index
    %c0_138 = arith.constant 0 : index
    %c0_139 = arith.constant 0 : index
    %274 = vector.load %arg23[%c0_137, %c0_138, %c0_139] : memref<2x1x32xf32, #tpu.memory_space<vmem>>, vector<1x1x32xf32>
    %275 = vector.shape_cast %274 : vector<1x1x32xf32> to vector<1x32xf32>
    %276 = vector.broadcast %275 : vector<1x32xf32> to vector<16x32xf32>
    %277 = arith.addf %273, %276 : vector<16x32xf32>
    %278 = arith.addf %237, %277 : vector<16x32xf32>
    %c1 = arith.constant 1 : index
    %c0_140 = arith.constant 0 : index
    %c0_141 = arith.constant 0 : index
    %279 = vector.load %arg4[%c1, %c0_140, %c0_141] : memref<2x1x32xf32, #tpu.memory_space<vmem>>, vector<1x1x32xf32>
    %280 = vector.shape_cast %279 : vector<1x1x32xf32> to vector<1x32xf32>
    %c1_142 = arith.constant 1 : index
    %c0_143 = arith.constant 0 : index
    %c0_144 = arith.constant 0 : index
    %281 = vector.load %arg5[%c1_142, %c0_143, %c0_144] : memref<2x1x32xf32, #tpu.memory_space<vmem>>, vector<1x1x32xf32>
    %282 = vector.shape_cast %281 : vector<1x1x32xf32> to vector<1x32xf32>
    %cst_145 = arith.constant dense<0.000000e+00> : vector<16xf32>
    %283 = vector.multi_reduction <add>, %278, %cst_145 [1] : vector<16x32xf32> to vector<16xf32>
    %284 = vector.shape_cast %283 : vector<16xf32> to vector<16x1xf32>
    %cst_146 = arith.constant 3.200000e+01 : f32
    %285 = vector.broadcast %cst_146 : f32 to vector<16x1xf32>
    %286 = arith.divf %284, %285 : vector<16x1xf32>
    %287 = vector.broadcast %286 : vector<16x1xf32> to vector<16x32xf32>
    %288 = arith.subf %278, %287 : vector<16x32xf32>
    %289 = arith.mulf %288, %288 : vector<16x32xf32>
    %cst_147 = arith.constant dense<0.000000e+00> : vector<16xf32>
    %290 = vector.multi_reduction <add>, %289, %cst_147 [1] : vector<16x32xf32> to vector<16xf32>
    %291 = vector.shape_cast %290 : vector<16xf32> to vector<16x1xf32>
    %cst_148 = arith.constant 3.200000e+01 : f32
    %292 = vector.broadcast %cst_148 : f32 to vector<16x1xf32>
    %293 = arith.divf %291, %292 : vector<16x1xf32>
    %cst_149 = arith.constant 9.99999974E-6 : f32
    %294 = vector.broadcast %cst_149 : f32 to vector<16x1xf32>
    %295 = arith.addf %293, %294 : vector<16x1xf32>
    %296 = math.rsqrt %295 : vector<16x1xf32>
    %297 = vector.broadcast %296 : vector<16x1xf32> to vector<16x32xf32>
    %298 = arith.mulf %288, %297 : vector<16x32xf32>
    %299 = vector.broadcast %280 : vector<1x32xf32> to vector<16x32xf32>
    %300 = arith.mulf %298, %299 : vector<16x32xf32>
    %301 = vector.broadcast %282 : vector<1x32xf32> to vector<16x32xf32>
    %302 = arith.addf %300, %301 : vector<16x32xf32>
    %c1_150 = arith.constant 1 : index
    %c0_151 = arith.constant 0 : index
    %c0_152 = arith.constant 0 : index
    %303 = vector.load %arg10[%c1_150, %c0_151, %c0_152] : memref<2x32x96xf32, #tpu.memory_space<vmem>>, vector<1x32x96xf32>
    %304 = vector.shape_cast %303 : vector<1x32x96xf32> to vector<32x96xf32>
    %cst_153 = arith.constant dense<0.000000e+00> : vector<16x96xf32>
    %305 = tpu.matmul %302, %304, %cst_153 {dimension_numbers = #tpu.dot_dimension_numbers<[1], [0], [0], [1], [0, 0, 1, 1], [], []>} : vector<16x32xf32>, vector<32x96xf32>, vector<16x96xf32> -> vector<16x96xf32>
    %c1_154 = arith.constant 1 : index
    %c0_155 = arith.constant 0 : index
    %c0_156 = arith.constant 0 : index
    %306 = vector.load %arg11[%c1_154, %c0_155, %c0_156] : memref<2x1x96xf32, #tpu.memory_space<vmem>>, vector<1x1x96xf32>
    %307 = vector.shape_cast %306 : vector<1x1x96xf32> to vector<1x96xf32>
    %308 = vector.broadcast %307 : vector<1x96xf32> to vector<16x96xf32>
    %309 = arith.addf %305, %308 : vector<16x96xf32>
    %310 = vector.extract_strided_slice %309 {offsets = [0, 32], sizes = [16, 32], strides = [1, 1]} : vector<16x96xf32> to vector<16x32xf32>
    %311 = tpu.transpose %310, [1, 0] : vector<16x32xf32> -> vector<32x16xf32>
    %312 = vector.extract_strided_slice %309 {offsets = [0, 0], sizes = [16, 32], strides = [1, 1]} : vector<16x96xf32> to vector<16x32xf32>
    %313 = vector.extract_strided_slice %309 {offsets = [0, 64], sizes = [16, 32], strides = [1, 1]} : vector<16x96xf32> to vector<16x32xf32>
    %cst_157 = arith.constant 0.353553385 : f32
    %314 = vector.broadcast %cst_157 : f32 to vector<16x32xf32>
    %315 = arith.mulf %312, %314 : vector<16x32xf32>
    %316 = vector.extract_strided_slice %315 {offsets = [0, 0], sizes = [16, 8], strides = [1, 1]} : vector<16x32xf32> to vector<16x8xf32>
    %317 = vector.extract_strided_slice %311 {offsets = [0, 0], sizes = [8, 16], strides = [1, 1]} : vector<32x16xf32> to vector<8x16xf32>
    %cst_158 = arith.constant dense<0.000000e+00> : vector<16x16xf32>
    %318 = tpu.matmul %316, %317, %cst_158 {dimension_numbers = #tpu.dot_dimension_numbers<[1], [0], [0], [1], [0, 0, 1, 1], [], []>} : vector<16x8xf32>, vector<8x16xf32>, vector<16x16xf32> -> vector<16x16xf32>
    %319 = arith.addf %318, %2 : vector<16x16xf32>
    %cst_159 = arith.constant dense<0xFF800000> : vector<16xf32>
    %320 = vector.multi_reduction <maximumf>, %319, %cst_159 [1] : vector<16x16xf32> to vector<16xf32>
    %321 = vector.shape_cast %320 : vector<16xf32> to vector<16x1xf32>
    %322 = vector.broadcast %321 : vector<16x1xf32> to vector<16x16xf32>
    %323 = arith.subf %319, %322 : vector<16x16xf32>
    %324 = math.exp %323 : vector<16x16xf32>
    %cst_160 = arith.constant dense<0.000000e+00> : vector<16xf32>
    %325 = vector.multi_reduction <add>, %324, %cst_160 [1] : vector<16x16xf32> to vector<16xf32>
    %326 = vector.shape_cast %325 : vector<16xf32> to vector<16x1xf32>
    %327 = tpu.reciprocal %326 {approx = true} : vector<16x1xf32> -> vector<16x1xf32>
    %328 = vector.broadcast %327 : vector<16x1xf32> to vector<16x16xf32>
    %329 = arith.mulf %324, %328 : vector<16x16xf32>
    %330 = vector.extract_strided_slice %313 {offsets = [0, 0], sizes = [16, 8], strides = [1, 1]} : vector<16x32xf32> to vector<16x8xf32>
    %cst_161 = arith.constant dense<0.000000e+00> : vector<16x8xf32>
    %331 = tpu.matmul %329, %330, %cst_161 {dimension_numbers = #tpu.dot_dimension_numbers<[1], [0], [0], [1], [0, 0, 1, 1], [], []>} : vector<16x16xf32>, vector<16x8xf32>, vector<16x8xf32> -> vector<16x8xf32>
    %c0_162 = arith.constant 0 : index
    %c0_163 = arith.constant 0 : index
    %332 = vector.load %arg25[%c0_162, %c0_163] : memref<16x32xf32, #tpu.memory_space<vmem>>, vector<16x8xf32>
    tpu.vector_store %arg25[%c0_162, %c0_163], %331 {strides = array<i32>} : memref<16x32xf32, #tpu.memory_space<vmem>>, vector<16x8xf32>,
    %333 = vector.extract_strided_slice %315 {offsets = [0, 8], sizes = [16, 8], strides = [1, 1]} : vector<16x32xf32> to vector<16x8xf32>
    %334 = vector.extract_strided_slice %311 {offsets = [8, 0], sizes = [8, 16], strides = [1, 1]} : vector<32x16xf32> to vector<8x16xf32>
    %cst_164 = arith.constant dense<0.000000e+00> : vector<16x16xf32>
    %335 = tpu.matmul %333, %334, %cst_164 {dimension_numbers = #tpu.dot_dimension_numbers<[1], [0], [0], [1], [0, 0, 1, 1], [], []>} : vector<16x8xf32>, vector<8x16xf32>, vector<16x16xf32> -> vector<16x16xf32>
    %336 = arith.addf %335, %2 : vector<16x16xf32>
    %cst_165 = arith.constant dense<0xFF800000> : vector<16xf32>
    %337 = vector.multi_reduction <maximumf>, %336, %cst_165 [1] : vector<16x16xf32> to vector<16xf32>
    %338 = vector.shape_cast %337 : vector<16xf32> to vector<16x1xf32>
    %339 = vector.broadcast %338 : vector<16x1xf32> to vector<16x16xf32>
    %340 = arith.subf %336, %339 : vector<16x16xf32>
    %341 = math.exp %340 : vector<16x16xf32>
    %cst_166 = arith.constant dense<0.000000e+00> : vector<16xf32>
    %342 = vector.multi_reduction <add>, %341, %cst_166 [1] : vector<16x16xf32> to vector<16xf32>
    %343 = vector.shape_cast %342 : vector<16xf32> to vector<16x1xf32>
    %344 = tpu.reciprocal %343 {approx = true} : vector<16x1xf32> -> vector<16x1xf32>
    %345 = vector.broadcast %344 : vector<16x1xf32> to vector<16x16xf32>
    %346 = arith.mulf %341, %345 : vector<16x16xf32>
    %347 = vector.extract_strided_slice %313 {offsets = [0, 8], sizes = [16, 8], strides = [1, 1]} : vector<16x32xf32> to vector<16x8xf32>
    %cst_167 = arith.constant dense<0.000000e+00> : vector<16x8xf32>
    %348 = tpu.matmul %346, %347, %cst_167 {dimension_numbers = #tpu.dot_dimension_numbers<[1], [0], [0], [1], [0, 0, 1, 1], [], []>} : vector<16x16xf32>, vector<16x8xf32>, vector<16x8xf32> -> vector<16x8xf32>
    %c0_168 = arith.constant 0 : index
    %c8_169 = arith.constant 8 : index
    %349 = vector.load %arg25[%c0_168, %c8_169] : memref<16x32xf32, #tpu.memory_space<vmem>>, vector<16x8xf32>
    tpu.vector_store %arg25[%c0_168, %c8_169], %348 {strides = array<i32>} : memref<16x32xf32, #tpu.memory_space<vmem>>, vector<16x8xf32>,
    %350 = vector.extract_strided_slice %315 {offsets = [0, 16], sizes = [16, 8], strides = [1, 1]} : vector<16x32xf32> to vector<16x8xf32>
    %351 = vector.extract_strided_slice %311 {offsets = [16, 0], sizes = [8, 16], strides = [1, 1]} : vector<32x16xf32> to vector<8x16xf32>
    %cst_170 = arith.constant dense<0.000000e+00> : vector<16x16xf32>
    %352 = tpu.matmul %350, %351, %cst_170 {dimension_numbers = #tpu.dot_dimension_numbers<[1], [0], [0], [1], [0, 0, 1, 1], [], []>} : vector<16x8xf32>, vector<8x16xf32>, vector<16x16xf32> -> vector<16x16xf32>
    %353 = arith.addf %352, %2 : vector<16x16xf32>
    %cst_171 = arith.constant dense<0xFF800000> : vector<16xf32>
    %354 = vector.multi_reduction <maximumf>, %353, %cst_171 [1] : vector<16x16xf32> to vector<16xf32>
    %355 = vector.shape_cast %354 : vector<16xf32> to vector<16x1xf32>
    %356 = vector.broadcast %355 : vector<16x1xf32> to vector<16x16xf32>
    %357 = arith.subf %353, %356 : vector<16x16xf32>
    %358 = math.exp %357 : vector<16x16xf32>
    %cst_172 = arith.constant dense<0.000000e+00> : vector<16xf32>
    %359 = vector.multi_reduction <add>, %358, %cst_172 [1] : vector<16x16xf32> to vector<16xf32>
    %360 = vector.shape_cast %359 : vector<16xf32> to vector<16x1xf32>
    %361 = tpu.reciprocal %360 {approx = true} : vector<16x1xf32> -> vector<16x1xf32>
    %362 = vector.broadcast %361 : vector<16x1xf32> to vector<16x16xf32>
    %363 = arith.mulf %358, %362 : vector<16x16xf32>
    %364 = vector.extract_strided_slice %313 {offsets = [0, 16], sizes = [16, 8], strides = [1, 1]} : vector<16x32xf32> to vector<16x8xf32>
    %cst_173 = arith.constant dense<0.000000e+00> : vector<16x8xf32>
    %365 = tpu.matmul %363, %364, %cst_173 {dimension_numbers = #tpu.dot_dimension_numbers<[1], [0], [0], [1], [0, 0, 1, 1], [], []>} : vector<16x16xf32>, vector<16x8xf32>, vector<16x8xf32> -> vector<16x8xf32>
    %c0_174 = arith.constant 0 : index
    %c16_175 = arith.constant 16 : index
    %366 = vector.load %arg25[%c0_174, %c16_175] : memref<16x32xf32, #tpu.memory_space<vmem>>, vector<16x8xf32>
    tpu.vector_store %arg25[%c0_174, %c16_175], %365 {strides = array<i32>} : memref<16x32xf32, #tpu.memory_space<vmem>>, vector<16x8xf32>,
    %367 = vector.extract_strided_slice %315 {offsets = [0, 24], sizes = [16, 8], strides = [1, 1]} : vector<16x32xf32> to vector<16x8xf32>
    %368 = vector.extract_strided_slice %311 {offsets = [24, 0], sizes = [8, 16], strides = [1, 1]} : vector<32x16xf32> to vector<8x16xf32>
    %cst_176 = arith.constant dense<0.000000e+00> : vector<16x16xf32>
    %369 = tpu.matmul %367, %368, %cst_176 {dimension_numbers = #tpu.dot_dimension_numbers<[1], [0], [0], [1], [0, 0, 1, 1], [], []>} : vector<16x8xf32>, vector<8x16xf32>, vector<16x16xf32> -> vector<16x16xf32>
    %370 = arith.addf %369, %2 : vector<16x16xf32>
    %cst_177 = arith.constant dense<0xFF800000> : vector<16xf32>
    %371 = vector.multi_reduction <maximumf>, %370, %cst_177 [1] : vector<16x16xf32> to vector<16xf32>
    %372 = vector.shape_cast %371 : vector<16xf32> to vector<16x1xf32>
    %373 = vector.broadcast %372 : vector<16x1xf32> to vector<16x16xf32>
    %374 = arith.subf %370, %373 : vector<16x16xf32>
    %375 = math.exp %374 : vector<16x16xf32>
    %cst_178 = arith.constant dense<0.000000e+00> : vector<16xf32>
    %376 = vector.multi_reduction <add>, %375, %cst_178 [1] : vector<16x16xf32> to vector<16xf32>
    %377 = vector.shape_cast %376 : vector<16xf32> to vector<16x1xf32>
    %378 = tpu.reciprocal %377 {approx = true} : vector<16x1xf32> -> vector<16x1xf32>
    %379 = vector.broadcast %378 : vector<16x1xf32> to vector<16x16xf32>
    %380 = arith.mulf %375, %379 : vector<16x16xf32>
    %381 = vector.extract_strided_slice %313 {offsets = [0, 24], sizes = [16, 8], strides = [1, 1]} : vector<16x32xf32> to vector<16x8xf32>
    %cst_179 = arith.constant dense<0.000000e+00> : vector<16x8xf32>
    %382 = tpu.matmul %380, %381, %cst_179 {dimension_numbers = #tpu.dot_dimension_numbers<[1], [0], [0], [1], [0, 0, 1, 1], [], []>} : vector<16x16xf32>, vector<16x8xf32>, vector<16x8xf32> -> vector<16x8xf32>
    %c0_180 = arith.constant 0 : index
    %c24_181 = arith.constant 24 : index
    %383 = vector.load %arg25[%c0_180, %c24_181] : memref<16x32xf32, #tpu.memory_space<vmem>>, vector<16x8xf32>
    tpu.vector_store %arg25[%c0_180, %c24_181], %382 {strides = array<i32>} : memref<16x32xf32, #tpu.memory_space<vmem>>, vector<16x8xf32>,
    %c0_182 = arith.constant 0 : index
    %c0_183 = arith.constant 0 : index
    %384 = vector.load %arg25[%c0_182, %c0_183] : memref<16x32xf32, #tpu.memory_space<vmem>>, vector<16x32xf32>
    %c1_184 = arith.constant 1 : index
    %c0_185 = arith.constant 0 : index
    %c0_186 = arith.constant 0 : index
    %385 = vector.load %arg12[%c1_184, %c0_185, %c0_186] : memref<2x32x32xf32, #tpu.memory_space<vmem>>, vector<1x32x32xf32>
    %386 = vector.shape_cast %385 : vector<1x32x32xf32> to vector<32x32xf32>
    %cst_187 = arith.constant dense<0.000000e+00> : vector<16x32xf32>
    %387 = tpu.matmul %384, %386, %cst_187 {dimension_numbers = #tpu.dot_dimension_numbers<[1], [0], [0], [1], [0, 0, 1, 1], [], []>} : vector<16x32xf32>, vector<32x32xf32>, vector<16x32xf32> -> vector<16x32xf32>
    %c1_188 = arith.constant 1 : index
    %c0_189 = arith.constant 0 : index
    %c0_190 = arith.constant 0 : index
    %388 = vector.load %arg13[%c1_188, %c0_189, %c0_190] : memref<2x1x32xf32, #tpu.memory_space<vmem>>, vector<1x1x32xf32>
    %389 = vector.shape_cast %388 : vector<1x1x32xf32> to vector<1x32xf32>
    %390 = vector.broadcast %389 : vector<1x32xf32> to vector<16x32xf32>
    %391 = arith.addf %387, %390 : vector<16x32xf32>
    %392 = arith.addf %278, %391 : vector<16x32xf32>
    %c1_191 = arith.constant 1 : index
    %c0_192 = arith.constant 0 : index
    %c0_193 = arith.constant 0 : index
    %393 = vector.load %arg6[%c1_191, %c0_192, %c0_193] : memref<2x1x32xf32, #tpu.memory_space<vmem>>, vector<1x1x32xf32>
    %394 = vector.shape_cast %393 : vector<1x1x32xf32> to vector<1x32xf32>
    %c1_194 = arith.constant 1 : index
    %c0_195 = arith.constant 0 : index
    %c0_196 = arith.constant 0 : index
    %395 = vector.load %arg7[%c1_194, %c0_195, %c0_196] : memref<2x1x32xf32, #tpu.memory_space<vmem>>, vector<1x1x32xf32>
    %396 = vector.shape_cast %395 : vector<1x1x32xf32> to vector<1x32xf32>
    %cst_197 = arith.constant dense<0.000000e+00> : vector<16xf32>
    %397 = vector.multi_reduction <add>, %392, %cst_197 [1] : vector<16x32xf32> to vector<16xf32>
    %398 = vector.shape_cast %397 : vector<16xf32> to vector<16x1xf32>
    %cst_198 = arith.constant 3.200000e+01 : f32
    %399 = vector.broadcast %cst_198 : f32 to vector<16x1xf32>
    %400 = arith.divf %398, %399 : vector<16x1xf32>
    %401 = vector.broadcast %400 : vector<16x1xf32> to vector<16x32xf32>
    %402 = arith.subf %392, %401 : vector<16x32xf32>
    %403 = arith.mulf %402, %402 : vector<16x32xf32>
    %cst_199 = arith.constant dense<0.000000e+00> : vector<16xf32>
    %404 = vector.multi_reduction <add>, %403, %cst_199 [1] : vector<16x32xf32> to vector<16xf32>
    %405 = vector.shape_cast %404 : vector<16xf32> to vector<16x1xf32>
    %cst_200 = arith.constant 3.200000e+01 : f32
    %406 = vector.broadcast %cst_200 : f32 to vector<16x1xf32>
    %407 = arith.divf %405, %406 : vector<16x1xf32>
    %cst_201 = arith.constant 9.99999974E-6 : f32
    %408 = vector.broadcast %cst_201 : f32 to vector<16x1xf32>
    %409 = arith.addf %407, %408 : vector<16x1xf32>
    %410 = math.rsqrt %409 : vector<16x1xf32>
    %411 = vector.broadcast %410 : vector<16x1xf32> to vector<16x32xf32>
    %412 = arith.mulf %402, %411 : vector<16x32xf32>
    %413 = vector.broadcast %394 : vector<1x32xf32> to vector<16x32xf32>
    %414 = arith.mulf %412, %413 : vector<16x32xf32>
    %415 = vector.broadcast %396 : vector<1x32xf32> to vector<16x32xf32>
    %416 = arith.addf %414, %415 : vector<16x32xf32>
    %c1_202 = arith.constant 1 : index
    %c0_203 = arith.constant 0 : index
    %c0_204 = arith.constant 0 : index
    %417 = vector.load %arg14[%c1_202, %c0_203, %c0_204] : memref<2x32x32xf32, #tpu.memory_space<vmem>>, vector<1x32x32xf32>
    %418 = vector.shape_cast %417 : vector<1x32x32xf32> to vector<32x32xf32>
    %cst_205 = arith.constant dense<0.000000e+00> : vector<16x32xf32>
    %419 = tpu.matmul %416, %418, %cst_205 {dimension_numbers = #tpu.dot_dimension_numbers<[1], [0], [0], [1], [0, 0, 1, 1], [], []>} : vector<16x32xf32>, vector<32x32xf32>, vector<16x32xf32> -> vector<16x32xf32>
    %c1_206 = arith.constant 1 : index
    %c0_207 = arith.constant 0 : index
    %c0_208 = arith.constant 0 : index
    %420 = vector.load %arg15[%c1_206, %c0_207, %c0_208] : memref<2x1x32xf32, #tpu.memory_space<vmem>>, vector<1x1x32xf32>
    %421 = vector.shape_cast %420 : vector<1x1x32xf32> to vector<1x32xf32>
    %422 = vector.broadcast %421 : vector<1x32xf32> to vector<16x32xf32>
    %423 = arith.addf %419, %422 : vector<16x32xf32>
    %c1_209 = arith.constant 1 : index
    %c0_210 = arith.constant 0 : index
    %c0_211 = arith.constant 0 : index
    %424 = vector.load %arg16[%c1_209, %c0_210, %c0_211] : memref<2x32x64xf32, #tpu.memory_space<vmem>>, vector<1x32x64xf32>
    %425 = vector.shape_cast %424 : vector<1x32x64xf32> to vector<32x64xf32>
    %cst_212 = arith.constant dense<0.000000e+00> : vector<32x64xf32>
    %426 = tpu.matmul %1, %425, %cst_212 {dimension_numbers = #tpu.dot_dimension_numbers<[1], [0], [0], [1], [0, 0, 1, 1], [], []>} : vector<32x32xf32>, vector<32x64xf32>, vector<32x64xf32> -> vector<32x64xf32>
    %c1_213 = arith.constant 1 : index
    %c0_214 = arith.constant 0 : index
    %c0_215 = arith.constant 0 : index
    %427 = vector.load %arg17[%c1_213, %c0_214, %c0_215] : memref<2x1x64xf32, #tpu.memory_space<vmem>>, vector<1x1x64xf32>
    %428 = vector.shape_cast %427 : vector<1x1x64xf32> to vector<1x64xf32>
    %429 = vector.broadcast %428 : vector<1x64xf32> to vector<32x64xf32>
    %430 = arith.addf %426, %429 : vector<32x64xf32>
    %431 = vector.extract_strided_slice %430 {offsets = [0, 0], sizes = [32, 32], strides = [1, 1]} : vector<32x64xf32> to vector<32x32xf32>
    %432 = tpu.transpose %431, [1, 0] : vector<32x32xf32> -> vector<32x32xf32>
    %433 = vector.extract_strided_slice %430 {offsets = [0, 32], sizes = [32, 32], strides = [1, 1]} : vector<32x64xf32> to vector<32x32xf32>
    %cst_216 = arith.constant 0.353553385 : f32
    %434 = vector.broadcast %cst_216 : f32 to vector<16x32xf32>
    %435 = arith.mulf %423, %434 : vector<16x32xf32>
    %436 = vector.extract_strided_slice %435 {offsets = [0, 0], sizes = [16, 8], strides = [1, 1]} : vector<16x32xf32> to vector<16x8xf32>
    %437 = vector.extract_strided_slice %432 {offsets = [0, 0], sizes = [8, 32], strides = [1, 1]} : vector<32x32xf32> to vector<8x32xf32>
    %cst_217 = arith.constant dense<0.000000e+00> : vector<16x32xf32>
    %438 = tpu.matmul %436, %437, %cst_217 {dimension_numbers = #tpu.dot_dimension_numbers<[1], [0], [0], [1], [0, 0, 1, 1], [], []>} : vector<16x8xf32>, vector<8x32xf32>, vector<16x32xf32> -> vector<16x32xf32>
    %439 = arith.addf %438, %3 : vector<16x32xf32>
    %cst_218 = arith.constant dense<0xFF800000> : vector<16xf32>
    %440 = vector.multi_reduction <maximumf>, %439, %cst_218 [1] : vector<16x32xf32> to vector<16xf32>
    %441 = vector.shape_cast %440 : vector<16xf32> to vector<16x1xf32>
    %442 = vector.broadcast %441 : vector<16x1xf32> to vector<16x32xf32>
    %443 = arith.subf %439, %442 : vector<16x32xf32>
    %444 = math.exp %443 : vector<16x32xf32>
    %cst_219 = arith.constant dense<0.000000e+00> : vector<16xf32>
    %445 = vector.multi_reduction <add>, %444, %cst_219 [1] : vector<16x32xf32> to vector<16xf32>
    %446 = vector.shape_cast %445 : vector<16xf32> to vector<16x1xf32>
    %447 = tpu.reciprocal %446 {approx = true} : vector<16x1xf32> -> vector<16x1xf32>
    %448 = vector.broadcast %447 : vector<16x1xf32> to vector<16x32xf32>
    %449 = arith.mulf %444, %448 : vector<16x32xf32>
    %450 = vector.extract_strided_slice %433 {offsets = [0, 0], sizes = [32, 8], strides = [1, 1]} : vector<32x32xf32> to vector<32x8xf32>
    %cst_220 = arith.constant dense<0.000000e+00> : vector<16x8xf32>
    %451 = tpu.matmul %449, %450, %cst_220 {dimension_numbers = #tpu.dot_dimension_numbers<[1], [0], [0], [1], [0, 0, 1, 1], [], []>} : vector<16x32xf32>, vector<32x8xf32>, vector<16x8xf32> -> vector<16x8xf32>
    %c0_221 = arith.constant 0 : index
    %c0_222 = arith.constant 0 : index
    %452 = vector.load %arg25[%c0_221, %c0_222] : memref<16x32xf32, #tpu.memory_space<vmem>>, vector<16x8xf32>
    tpu.vector_store %arg25[%c0_221, %c0_222], %451 {strides = array<i32>} : memref<16x32xf32, #tpu.memory_space<vmem>>, vector<16x8xf32>,
    %453 = vector.extract_strided_slice %435 {offsets = [0, 8], sizes = [16, 8], strides = [1, 1]} : vector<16x32xf32> to vector<16x8xf32>
    %454 = vector.extract_strided_slice %432 {offsets = [8, 0], sizes = [8, 32], strides = [1, 1]} : vector<32x32xf32> to vector<8x32xf32>
    %cst_223 = arith.constant dense<0.000000e+00> : vector<16x32xf32>
    %455 = tpu.matmul %453, %454, %cst_223 {dimension_numbers = #tpu.dot_dimension_numbers<[1], [0], [0], [1], [0, 0, 1, 1], [], []>} : vector<16x8xf32>, vector<8x32xf32>, vector<16x32xf32> -> vector<16x32xf32>
    %456 = arith.addf %455, %3 : vector<16x32xf32>
    %cst_224 = arith.constant dense<0xFF800000> : vector<16xf32>
    %457 = vector.multi_reduction <maximumf>, %456, %cst_224 [1] : vector<16x32xf32> to vector<16xf32>
    %458 = vector.shape_cast %457 : vector<16xf32> to vector<16x1xf32>
    %459 = vector.broadcast %458 : vector<16x1xf32> to vector<16x32xf32>
    %460 = arith.subf %456, %459 : vector<16x32xf32>
    %461 = math.exp %460 : vector<16x32xf32>
    %cst_225 = arith.constant dense<0.000000e+00> : vector<16xf32>
    %462 = vector.multi_reduction <add>, %461, %cst_225 [1] : vector<16x32xf32> to vector<16xf32>
    %463 = vector.shape_cast %462 : vector<16xf32> to vector<16x1xf32>
    %464 = tpu.reciprocal %463 {approx = true} : vector<16x1xf32> -> vector<16x1xf32>
    %465 = vector.broadcast %464 : vector<16x1xf32> to vector<16x32xf32>
    %466 = arith.mulf %461, %465 : vector<16x32xf32>
    %467 = vector.extract_strided_slice %433 {offsets = [0, 8], sizes = [32, 8], strides = [1, 1]} : vector<32x32xf32> to vector<32x8xf32>
    %cst_226 = arith.constant dense<0.000000e+00> : vector<16x8xf32>
    %468 = tpu.matmul %466, %467, %cst_226 {dimension_numbers = #tpu.dot_dimension_numbers<[1], [0], [0], [1], [0, 0, 1, 1], [], []>} : vector<16x32xf32>, vector<32x8xf32>, vector<16x8xf32> -> vector<16x8xf32>
    %c0_227 = arith.constant 0 : index
    %c8_228 = arith.constant 8 : index
    %469 = vector.load %arg25[%c0_227, %c8_228] : memref<16x32xf32, #tpu.memory_space<vmem>>, vector<16x8xf32>
    tpu.vector_store %arg25[%c0_227, %c8_228], %468 {strides = array<i32>} : memref<16x32xf32, #tpu.memory_space<vmem>>, vector<16x8xf32>,
    %470 = vector.extract_strided_slice %435 {offsets = [0, 16], sizes = [16, 8], strides = [1, 1]} : vector<16x32xf32> to vector<16x8xf32>
    %471 = vector.extract_strided_slice %432 {offsets = [16, 0], sizes = [8, 32], strides = [1, 1]} : vector<32x32xf32> to vector<8x32xf32>
    %cst_229 = arith.constant dense<0.000000e+00> : vector<16x32xf32>
    %472 = tpu.matmul %470, %471, %cst_229 {dimension_numbers = #tpu.dot_dimension_numbers<[1], [0], [0], [1], [0, 0, 1, 1], [], []>} : vector<16x8xf32>, vector<8x32xf32>, vector<16x32xf32> -> vector<16x32xf32>
    %473 = arith.addf %472, %3 : vector<16x32xf32>
    %cst_230 = arith.constant dense<0xFF800000> : vector<16xf32>
    %474 = vector.multi_reduction <maximumf>, %473, %cst_230 [1] : vector<16x32xf32> to vector<16xf32>
    %475 = vector.shape_cast %474 : vector<16xf32> to vector<16x1xf32>
    %476 = vector.broadcast %475 : vector<16x1xf32> to vector<16x32xf32>
    %477 = arith.subf %473, %476 : vector<16x32xf32>
    %478 = math.exp %477 : vector<16x32xf32>
    %cst_231 = arith.constant dense<0.000000e+00> : vector<16xf32>
    %479 = vector.multi_reduction <add>, %478, %cst_231 [1] : vector<16x32xf32> to vector<16xf32>
    %480 = vector.shape_cast %479 : vector<16xf32> to vector<16x1xf32>
    %481 = tpu.reciprocal %480 {approx = true} : vector<16x1xf32> -> vector<16x1xf32>
    %482 = vector.broadcast %481 : vector<16x1xf32> to vector<16x32xf32>
    %483 = arith.mulf %478, %482 : vector<16x32xf32>
    %484 = vector.extract_strided_slice %433 {offsets = [0, 16], sizes = [32, 8], strides = [1, 1]} : vector<32x32xf32> to vector<32x8xf32>
    %cst_232 = arith.constant dense<0.000000e+00> : vector<16x8xf32>
    %485 = tpu.matmul %483, %484, %cst_232 {dimension_numbers = #tpu.dot_dimension_numbers<[1], [0], [0], [1], [0, 0, 1, 1], [], []>} : vector<16x32xf32>, vector<32x8xf32>, vector<16x8xf32> -> vector<16x8xf32>
    %c0_233 = arith.constant 0 : index
    %c16_234 = arith.constant 16 : index
    %486 = vector.load %arg25[%c0_233, %c16_234] : memref<16x32xf32, #tpu.memory_space<vmem>>, vector<16x8xf32>
    tpu.vector_store %arg25[%c0_233, %c16_234], %485 {strides = array<i32>} : memref<16x32xf32, #tpu.memory_space<vmem>>, vector<16x8xf32>,
    %487 = vector.extract_strided_slice %435 {offsets = [0, 24], sizes = [16, 8], strides = [1, 1]} : vector<16x32xf32> to vector<16x8xf32>
    %488 = vector.extract_strided_slice %432 {offsets = [24, 0], sizes = [8, 32], strides = [1, 1]} : vector<32x32xf32> to vector<8x32xf32>
    %cst_235 = arith.constant dense<0.000000e+00> : vector<16x32xf32>
    %489 = tpu.matmul %487, %488, %cst_235 {dimension_numbers = #tpu.dot_dimension_numbers<[1], [0], [0], [1], [0, 0, 1, 1], [], []>} : vector<16x8xf32>, vector<8x32xf32>, vector<16x32xf32> -> vector<16x32xf32>
    %490 = arith.addf %489, %3 : vector<16x32xf32>
    %cst_236 = arith.constant dense<0xFF800000> : vector<16xf32>
    %491 = vector.multi_reduction <maximumf>, %490, %cst_236 [1] : vector<16x32xf32> to vector<16xf32>
    %492 = vector.shape_cast %491 : vector<16xf32> to vector<16x1xf32>
    %493 = vector.broadcast %492 : vector<16x1xf32> to vector<16x32xf32>
    %494 = arith.subf %490, %493 : vector<16x32xf32>
    %495 = math.exp %494 : vector<16x32xf32>
    %cst_237 = arith.constant dense<0.000000e+00> : vector<16xf32>
    %496 = vector.multi_reduction <add>, %495, %cst_237 [1] : vector<16x32xf32> to vector<16xf32>
    %497 = vector.shape_cast %496 : vector<16xf32> to vector<16x1xf32>
    %498 = tpu.reciprocal %497 {approx = true} : vector<16x1xf32> -> vector<16x1xf32>
    %499 = vector.broadcast %498 : vector<16x1xf32> to vector<16x32xf32>
    %500 = arith.mulf %495, %499 : vector<16x32xf32>
    %501 = vector.extract_strided_slice %433 {offsets = [0, 24], sizes = [32, 8], strides = [1, 1]} : vector<32x32xf32> to vector<32x8xf32>
    %cst_238 = arith.constant dense<0.000000e+00> : vector<16x8xf32>
    %502 = tpu.matmul %500, %501, %cst_238 {dimension_numbers = #tpu.dot_dimension_numbers<[1], [0], [0], [1], [0, 0, 1, 1], [], []>} : vector<16x32xf32>, vector<32x8xf32>, vector<16x8xf32> -> vector<16x8xf32>
    %c0_239 = arith.constant 0 : index
    %c24_240 = arith.constant 24 : index
    %503 = vector.load %arg25[%c0_239, %c24_240] : memref<16x32xf32, #tpu.memory_space<vmem>>, vector<16x8xf32>
    tpu.vector_store %arg25[%c0_239, %c24_240], %502 {strides = array<i32>} : memref<16x32xf32, #tpu.memory_space<vmem>>, vector<16x8xf32>,
    %c0_241 = arith.constant 0 : index
    %c0_242 = arith.constant 0 : index
    %504 = vector.load %arg25[%c0_241, %c0_242] : memref<16x32xf32, #tpu.memory_space<vmem>>, vector<16x32xf32>
    %c1_243 = arith.constant 1 : index
    %c0_244 = arith.constant 0 : index
    %c0_245 = arith.constant 0 : index
    %505 = vector.load %arg18[%c1_243, %c0_244, %c0_245] : memref<2x32x32xf32, #tpu.memory_space<vmem>>, vector<1x32x32xf32>
    %506 = vector.shape_cast %505 : vector<1x32x32xf32> to vector<32x32xf32>
    %cst_246 = arith.constant dense<0.000000e+00> : vector<16x32xf32>
    %507 = tpu.matmul %504, %506, %cst_246 {dimension_numbers = #tpu.dot_dimension_numbers<[1], [0], [0], [1], [0, 0, 1, 1], [], []>} : vector<16x32xf32>, vector<32x32xf32>, vector<16x32xf32> -> vector<16x32xf32>
    %c1_247 = arith.constant 1 : index
    %c0_248 = arith.constant 0 : index
    %c0_249 = arith.constant 0 : index
    %508 = vector.load %arg19[%c1_247, %c0_248, %c0_249] : memref<2x1x32xf32, #tpu.memory_space<vmem>>, vector<1x1x32xf32>
    %509 = vector.shape_cast %508 : vector<1x1x32xf32> to vector<1x32xf32>
    %510 = vector.broadcast %509 : vector<1x32xf32> to vector<16x32xf32>
    %511 = arith.addf %507, %510 : vector<16x32xf32>
    %512 = arith.addf %392, %511 : vector<16x32xf32>
    %c1_250 = arith.constant 1 : index
    %c0_251 = arith.constant 0 : index
    %c0_252 = arith.constant 0 : index
    %513 = vector.load %arg8[%c1_250, %c0_251, %c0_252] : memref<2x1x32xf32, #tpu.memory_space<vmem>>, vector<1x1x32xf32>
    %514 = vector.shape_cast %513 : vector<1x1x32xf32> to vector<1x32xf32>
    %c1_253 = arith.constant 1 : index
    %c0_254 = arith.constant 0 : index
    %c0_255 = arith.constant 0 : index
    %515 = vector.load %arg9[%c1_253, %c0_254, %c0_255] : memref<2x1x32xf32, #tpu.memory_space<vmem>>, vector<1x1x32xf32>
    %516 = vector.shape_cast %515 : vector<1x1x32xf32> to vector<1x32xf32>
    %cst_256 = arith.constant dense<0.000000e+00> : vector<16xf32>
    %517 = vector.multi_reduction <add>, %512, %cst_256 [1] : vector<16x32xf32> to vector<16xf32>
    %518 = vector.shape_cast %517 : vector<16xf32> to vector<16x1xf32>
    %cst_257 = arith.constant 3.200000e+01 : f32
    %519 = vector.broadcast %cst_257 : f32 to vector<16x1xf32>
    %520 = arith.divf %518, %519 : vector<16x1xf32>
    %521 = vector.broadcast %520 : vector<16x1xf32> to vector<16x32xf32>
    %522 = arith.subf %512, %521 : vector<16x32xf32>
    %523 = arith.mulf %522, %522 : vector<16x32xf32>
    %cst_258 = arith.constant dense<0.000000e+00> : vector<16xf32>
    %524 = vector.multi_reduction <add>, %523, %cst_258 [1] : vector<16x32xf32> to vector<16xf32>
    %525 = vector.shape_cast %524 : vector<16xf32> to vector<16x1xf32>
    %cst_259 = arith.constant 3.200000e+01 : f32
    %526 = vector.broadcast %cst_259 : f32 to vector<16x1xf32>
    %527 = arith.divf %525, %526 : vector<16x1xf32>
    %cst_260 = arith.constant 9.99999974E-6 : f32
    %528 = vector.broadcast %cst_260 : f32 to vector<16x1xf32>
    %529 = arith.addf %527, %528 : vector<16x1xf32>
    %530 = math.rsqrt %529 : vector<16x1xf32>
    %531 = vector.broadcast %530 : vector<16x1xf32> to vector<16x32xf32>
    %532 = arith.mulf %522, %531 : vector<16x32xf32>
    %533 = vector.broadcast %514 : vector<1x32xf32> to vector<16x32xf32>
    %534 = arith.mulf %532, %533 : vector<16x32xf32>
    %535 = vector.broadcast %516 : vector<1x32xf32> to vector<16x32xf32>
    %536 = arith.addf %534, %535 : vector<16x32xf32>
    %c1_261 = arith.constant 1 : index
    %c0_262 = arith.constant 0 : index
    %c0_263 = arith.constant 0 : index
    %537 = vector.load %arg20[%c1_261, %c0_262, %c0_263] : memref<2x32x64xf32, #tpu.memory_space<vmem>>, vector<1x32x64xf32>
    %538 = vector.shape_cast %537 : vector<1x32x64xf32> to vector<32x64xf32>
    %cst_264 = arith.constant dense<0.000000e+00> : vector<16x64xf32>
    %539 = tpu.matmul %536, %538, %cst_264 {dimension_numbers = #tpu.dot_dimension_numbers<[1], [0], [0], [1], [0, 0, 1, 1], [], []>} : vector<16x32xf32>, vector<32x64xf32>, vector<16x64xf32> -> vector<16x64xf32>
    %c1_265 = arith.constant 1 : index
    %c0_266 = arith.constant 0 : index
    %c0_267 = arith.constant 0 : index
    %540 = vector.load %arg21[%c1_265, %c0_266, %c0_267] : memref<2x1x64xf32, #tpu.memory_space<vmem>>, vector<1x1x64xf32>
    %541 = vector.shape_cast %540 : vector<1x1x64xf32> to vector<1x64xf32>
    %542 = vector.broadcast %541 : vector<1x64xf32> to vector<16x64xf32>
    %543 = arith.addf %539, %542 : vector<16x64xf32>
    %cst_268 = arith.constant 0.000000e+00 : f32
    %544 = vector.broadcast %cst_268 : f32 to vector<16x64xf32>
    %545 = arith.maximumf %543, %544 : vector<16x64xf32>
    %c1_269 = arith.constant 1 : index
    %c0_270 = arith.constant 0 : index
    %c0_271 = arith.constant 0 : index
    %546 = vector.load %arg22[%c1_269, %c0_270, %c0_271] : memref<2x64x32xf32, #tpu.memory_space<vmem>>, vector<1x64x32xf32>
    %547 = vector.shape_cast %546 : vector<1x64x32xf32> to vector<64x32xf32>
    %cst_272 = arith.constant dense<0.000000e+00> : vector<16x32xf32>
    %548 = tpu.matmul %545, %547, %cst_272 {dimension_numbers = #tpu.dot_dimension_numbers<[1], [0], [0], [1], [0, 0, 1, 1], [], []>} : vector<16x64xf32>, vector<64x32xf32>, vector<16x32xf32> -> vector<16x32xf32>
    %c1_273 = arith.constant 1 : index
    %c0_274 = arith.constant 0 : index
    %c0_275 = arith.constant 0 : index
    %549 = vector.load %arg23[%c1_273, %c0_274, %c0_275] : memref<2x1x32xf32, #tpu.memory_space<vmem>>, vector<1x1x32xf32>
    %550 = vector.shape_cast %549 : vector<1x1x32xf32> to vector<1x32xf32>
    %551 = vector.broadcast %550 : vector<1x32xf32> to vector<16x32xf32>
    %552 = arith.addf %548, %551 : vector<16x32xf32>
    %553 = arith.addf %512, %552 : vector<16x32xf32>
    %c0_276 = arith.constant 0 : index
    %c0_277 = arith.constant 0 : index
    %554 = vector.load %arg24[%c0_276, %c0_277] : memref<16x32xf32, #tpu.memory_space<vmem>>, vector<16x32xf32>
    tpu.vector_store %arg24[%c0_276, %c0_277], %553 {strides = array<i32>} : memref<16x32xf32, #tpu.memory_space<vmem>>, vector<16x32xf32>,
    return
  }
}

</mosaic_0001>

<bundles_post_ra>
// kernel: decoder_forward.1
= control target key start
LH: loop header
LB: loop body
LE: loop exit
PB: predicated region body
PF: predicated region fallthrough
CT: control target
= control target key end

     0   :  { %s4445_s0 = inlined_call_operand.vmem [shape: f32[16,32], index: 0, kind: input, shape index: {}]   ;;  %s4446_s1 = inlined_call_operand.vmem [shape: f32[32,32], index: 1, kind: input, shape index: {}]   ;;  %s4447_s2 = inlined_call_operand.vmem [shape: f32[16,16], index: 2, kind: input, shape index: {}]   ;;  %s4448_s3 = inlined_call_operand.vmem [shape: f32[16,32], index: 3, kind: input, shape index: {}]   ;;  %s4449_s4 = inlined_call_operand.vmem [shape: f32[2,1,32], index: 4, kind: input, shape index: {}]   ;;  %s4450_s5 = inlined_call_operand.vmem [shape: f32[2,1,32], index: 5, kind: input, shape index: {}]   ;;  %s4451_s6 = inlined_call_operand.vmem [shape: f32[2,1,32], index: 6, kind: input, shape index: {}]   ;;  %s4452_s7 = inlined_call_operand.vmem [shape: f32[2,1,32], index: 7, kind: input, shape index: {}]   ;;  %s4453_s8 = inlined_call_operand.vmem [shape: f32[2,1,32], index: 8, kind: input, shape index: {}]   ;;  %s4454_s9 = inlined_call_operand.vmem [shape: f32[2,1,32], index: 9, kind: input, shape index: {}]   ;;  %s4455_s10 = inlined_call_operand.vmem [shape: f32[2,32,96], index: 10, kind: input, shape index: {}]   ;;  %s4456_s11 = inlined_call_operand.vmem [shape: f32[2,1,96], index: 11, kind: input, shape index: {}]   ;;  %s4457_s12 = inlined_call_operand.vmem [shape: f32[2,32,32], index: 12, kind: input, shape index: {}]   ;;  %s4458_s13 = inlined_call_operand.vmem [shape: f32[2,1,32], index: 13, kind: input, shape index: {}]   ;;  %s4459_s14 = inlined_call_operand.vmem [shape: f32[2,32,32], index: 14, kind: input, shape index: {}]   ;;  %s4460_s15 = inlined_call_operand.vmem [shape: f32[2,1,32], index: 15, kind: input, shape index: {}]   ;;  %s4461_s16 = inlined_call_operand.vmem [shape: f32[2,32,64], index: 16, kind: input, shape index: {}]   ;;  %s4462_s17 = inlined_call_operand.vmem [shape: f32[2,1,64], index: 17, kind: input, shape index: {}]   ;;  %s4463_s18 = inlined_call_operand.vmem [shape: f32[2,32,32], index: 18, kind: input, shape index: {}]   ;;  %s4464_s19 = inlined_call_operand.vmem [shape: f32[2,1,32], index: 19, kind: input, shape index: {}]   ;;  %s4465_s20 = inlined_call_operand.vmem [shape: f32[2,32,64], index: 20, kind: input, shape index: {}]   ;;  %s4466_s21 = inlined_call_operand.vmem [shape: f32[2,1,64], index: 21, kind: input, shape index: {}]   ;;  %s4467_s22 = inlined_call_operand.vmem [shape: f32[2,64,32], index: 22, kind: input, shape index: {}]   ;;  %s4468_s23 = inlined_call_operand.vmem [shape: f32[2,1,32], index: 23, kind: input, shape index: {}]   ;;  %s4469_s24 = inlined_call_operand.hbm [shape: f32[16,32], index: 24, kind: output, shape index: {}]  }
   0x1   :  { %4512 = sst [smem:[#allocation6_spill]] %s4445_s0 }
   0x2   :  { %4513 = sst [smem:[#allocation7_spill]] %s4446_s1 }
   0x3   :  { %4514 = sst [smem:[#allocation8_spill]] %s4447_s2 }
   0x4   :  { %4515 = sst [smem:[#allocation9_spill]] %s4448_s3 }
   0x5   :  { %4516 = sst [smem:[#allocation10_spill]] %s4449_s4 }
   0x6   :  { %4517 = sst [smem:[#allocation11_spill]] %s4450_s5 }
   0x7   :  { %4518 = sst [smem:[#allocation12_spill]] %s4451_s6 }
   0x8   :  { %4519 = sst [smem:[#allocation13_spill]] %s4452_s7 }
   0x9   :  { %4520 = sst [smem:[#allocation14_spill]] %s4453_s8 }
   0xa   :  { %4521 = sst [smem:[#allocation15_spill]] %s4454_s9 }
   0xb   :  { %4522 = sst [smem:[#allocation16_spill]] %s4459_s14 }
   0xc   :  { %4523 = sst [smem:[#allocation17_spill]] %s4460_s15 }
   0xd   :  { %4524 = sst [smem:[#allocation18_spill]] %s4461_s16 }
   0xe   :  { %4525 = sst [smem:[#allocation19_spill]] %s4462_s17 }
   0xf   :  { %4526 = sst [smem:[#allocation20_spill]] %s4469_s24 }
  0x10   :  { %s4527_s27 = sld [smem:[#allocation6_spill]]  ;;  %vm90_vm0 = vcmask 261120  }
  0x16   :  { %v3497_v0 = vld [vmem:[%s4527_s27] sm:$0xff]  ;;  %v3502_v1 = vld [vmem:[%s4527_s27 + $0x8] sm:$0xff] }
  0x17   :  { %v91_v2 = vsel %vm90_vm0, %v3497_v0, 0.0  ;;  %v94_v3 = vsel %vm90_vm0, %v3502_v1, 0.0 }
  0x18   :  { %92 = vadd.xlane.f32.xlu0 %v91_v2 }
  0x20   :  { %95 = vadd.xlane.f32.xlu0 %v94_v3 }
  0x21   :  { %29 = vsyncpa [#allocation4], 0  ;;  %v3352_v4 = vmov 32.0   ;;  %v155_v21 = vld [vmem:[%s4455_s10 + $0x18] sm:$0xff]  ;;  %v154_v22 = vld [vmem:[%s4455_s10 + $0x10] sm:$0xff]  ;;  %s4528_s5 = sld [smem:[#allocation10_spill]] }
  0x22   :  { %3164 = vrcp.f32 %v3352_v4  ;;  %178 = vmatpush.msra.mxu0 %v155_v21  ;;  %v153_v23 = vld [vmem:[%s4455_s10 + $0x8] sm:$0xff]  ;;  %v152_v24 = vld [vmem:[%s4455_s10] sm:$0xff]  ;;  %s4529_s28 = sld [smem:[#allocation11_spill]]  ;;  %s4489_s29 = smov 88   ;;  %vm197_vm8 = vcmask 64512   ;;  %vm231_vm9 = vcmask 130048  }
  0x23   :  { %v3140_v53 = vld [vmem:[%s4456_s11] ss:$0 sm:$0xff]  ;;  %s4483_s0 = smov 80   ;;  %s4495_s7 = smov 96   ;;  %vm395_vm10 = vcmask 130112   ;;  %vm502_vm11 = vcmask 195712  }
  0x24   :  { %179 = vmatpush.msra.mxu0 %v154_v22  ;;  %s4497_s30 = smov 112   ;;  %s4487_s3 = smov 72   ;;  %vm609_vm12 = vcmask 261312  }
  0x25   :  { %s4501_s25 = smov 120   ;;  %s4499_s8 = smov 104  }
  0x26   :  { %180 = vmatpush.msra.mxu0 %v153_v23  ;;  %s4530_s26 = sld [smem:[#allocation8_spill]]  ;;  %s4481_s2 = smov 64  }
  0x27   :  { %v3138_v39 = vld [vmem:[%s4528_s5] ss:$0 sm:$0xff]  ;;  %s4482_s4 = smov 56   ;;  %s4480_s1 = smov 40  }
  0x28   :  { %v3165_v5 = vpop.eup %3164  ;;  %181 = vmatpush.msra.mxu0 %v152_v24  ;;  %v3139_v43 = vld [vmem:[%s4529_s28] ss:$0 sm:$0xff]  ;;  %s4479_s27 = smov 48   ;;  %s4485_s6 = smov 8  }
  0x29   :  { %v98_v6 = vmul.f32 32.0, %v3165_v5  ;;  %vm102_vm1 = vweird.f32 %v3165_v5  ;;  %s4543_s24 = smov 16  }
  0x2b   :  { %v99_v7 = vsub.f32 1.0, %v98_v6 }
  0x2d   :  { %v100_v8 = vmul.f32 %v3165_v5, %v99_v7 }
  0x2f   :  { %v101_v9 = vadd.f32 %v3165_v5, %v100_v8 }
  0x31   :  { %v3508_v10 = vsel %vm102_vm1, %v3165_v5, %v101_v9 }
  0x8b   :  { %v93_v11 = vpop.xlane.xlu0 %92 }
  0x8c   :  { %v104_v12 = vmul.f32 %v3508_v10, %v93_v11 }
  0x8e   :  { %v106_v13 = vsub.f32 %v3497_v0, %v104_v12 }
  0x90   :  { %v108_v14 = vmul.f32 %v106_v13, %v106_v13 }
  0x92   :  { %v110_v15 = vsel %vm90_vm0, %v108_v14, 0.0  ;;  %v84_v14 = vld [vmem:[%s4530_s26] sm:$0xff] }
  0x93   :  { %111 = vadd.xlane.f32.xlu1 %v110_v15  ;;  %v96_v16 = vpop.xlane.xlu0 %95 }
  0x94   :  { %v105_v17 = vmul.f32 %v3508_v10, %v96_v16 }
  0x96   :  { %v107_v18 = vsub.f32 %v3502_v1, %v105_v17 }
  0x98   :  { %v109_v19 = vmul.f32 %v107_v18, %v107_v18 }
  0x9a   :  { %v113_v20 = vsel %vm90_vm0, %v109_v19, 0.0 }
  0x9b   :  { %114 = vadd.xlane.f32.xlu1 %v113_v20 }
 0x106   :  { %v112_v25 = vpop.xlane.xlu1 %111 }
 0x107   :  { %v116_v26 = vmul.f32 %v112_v25, %v3508_v10 }
 0x109   :  { %v118_v27 = vadd.f32 1e-05, %v116_v26 }
 0x10b   :  { %3166 = vrsqrt.f32 %v118_v27  ;;  %vm126_vm3 = vweird.f32 %v118_v27 }
 0x10e   :  { %v115_v28 = vpop.xlane.xlu1 %114 }
 0x10f   :  { %v117_v29 = vmul.f32 %v115_v28, %v3508_v10 }
 0x111   :  { %v3167_v30 = vpop.eup %3166  ;;  %v119_v31 = vadd.f32 1e-05, %v117_v29 }
 0x112   :  { %v121_v32 = vmul.f32 %v3167_v30, %v118_v27  ;;  %vm127_vm2 = vweird.f32 %v3167_v30 }
 0x113   :  { %3168 = vrsqrt.f32 %v119_v31  ;;  %vm128_vm4 = vmor %vm126_vm3, %vm127_vm2  ;;  %vm136_vm6 = vweird.f32 %v119_v31 }
 0x114   :  { %v122_v33 = vmul.f32 %v3167_v30, %v121_v32 }
 0x116   :  { %v123_v34 = vmul.f32 0.5, %v122_v33 }
 0x118   :  { %v124_v35 = vsub.f32 1.5, %v123_v34 }
 0x119   :  { %v3169_v36 = vpop.eup %3168 }
 0x11a   :  { %v125_v37 = vmul.f32 %v3167_v30, %v124_v35  ;;  %v131_v38 = vmul.f32 %v3169_v36, %v119_v31  ;;  %vm137_vm5 = vweird.f32 %v3169_v36 }
 0x11b   :  { %vm138_vm7 = vmor %vm136_vm6, %vm137_vm5 }
 0x11c   :  { %v132_v40 = vmul.f32 %v3169_v36, %v131_v38  ;;  %v129_v41 = vsel %vm128_vm4, %v3167_v30, %v125_v37 }
 0x11d   :  { %v140_v42 = vmul.f32 %v129_v41, %v106_v13 }
 0x11e   :  { %v133_v44 = vmul.f32 0.5, %v132_v40 }
 0x11f   :  { %v145_v45 = vmul.f32 %v3138_v39, %v140_v42 }
 0x120   :  { %v134_v46 = vsub.f32 1.5, %v133_v44 }
 0x121   :  { %v150_v47 = vadd.f32 %v3139_v43, %v145_v45 }
 0x122   :  { %v135_v48 = vmul.f32 %v3169_v36, %v134_v46 }
 0x123   :  { %2812 = vmatmul.msk.f32.vlgmr.msra.gmra.mxu0 %vm90_vm0, %v150_v47 }
 0x124   :  { %v139_v49 = vsel %vm138_vm7, %v3169_v36, %v135_v48 }
 0x125   :  { %v141_v50 = vmul.f32 %v139_v49, %v107_v18  ;;  %v85_v18 = vld [vmem:[%s4530_s26 + $0x8] sm:$0xff] }
 0x127   :  { %v146_v51 = vmul.f32 %v3138_v39, %v141_v50 }
 0x129   :  { %v151_v52 = vadd.f32 %v3139_v43, %v146_v51 }
 0x12b   :  { %2813 = vmatmul.msk.f32.gmra.mxu0 %vm90_vm0, %v151_v52 }
 0x1a0   :  { %v183_v54 = vpop.f32.mrf.mxu0 }
 0x1a1   :  { %v184_v55 = vadd.f32 %v3140_v53, %v183_v54 }
 0x1a3   :  { %295 = vrot.lane.b32.xlu1 %v184_v55, %s4489_s29  ;;  %v189_v59 = vmul.f32 0.35355338, %v184_v55 }
 0x1a8   :  { %v186_v56 = vpop.f32.mrf.mxu0 }
 0x1a9   :  { %v187_v57 = vadd.f32 %v3140_v53, %v186_v56 }
 0x1ab   :  { %404 = vrot.lane.b32.xlu1 %v187_v57, %s4483_s0  ;;  %297 = vrot.lane.b32.xlu0 %v187_v57, %s4489_s29  ;;  %v3544_v58 = vpack.i.bf16 %v184_v55, %v187_v57  ;;  %v190_v60 = vmul.f32 0.35355338, %v187_v57  ;;  %s4538_s29 = smov 88  }
 0x1ac   :  { %195 = vrot.lane.b32.xlu2 %v187_v57, %s4495_s7 }
 0x1b3   :  { %398 = vrot.lane.b32.xlu1 %v189_v59, %s4497_s30  ;;  %509 = vrot.lane.b32.xlu0 %v184_v55, %s4487_s3 }
 0x1b4   :  { %193 = vrot.lane.b32.xlu2 %v184_v55, %s4495_s7  ;;  %s4536_s7 = smov 96  }
 0x1bb   :  { %402 = vrot.lane.b32.xlu0 %v184_v55, %s4483_s0  ;;  %s4533_s0 = sld [smem:[#allocation13_spill]] }
 0x1bc   :  { %291 = vrot.lane.b32.xlu2 %v189_v59, %s4501_s25 }
 0x1c3   :  { %400 = vrot.lane.b32.xlu0 %v190_v60, %s4497_s30  ;;  %s4540_s30 = smov 80  }
 0x1c4   :  { %511 = vrot.lane.b32.xlu2 %v187_v57, %s4487_s3  ;;  %s4539_s3 = smov 72  }
 0x1cc   :  { %293 = vrot.lane.b32.xlu2 %v190_v60, %s4501_s25 }
 0x1d4   :  { %505 = vrot.lane.b32.xlu2 %v189_v59, %s4499_s8 }
 0x1dc   :  { %507 = vrot.lane.b32.xlu2 %v190_v60, %s4499_s8  ;;  %s4531_s8 = sld [smem:[#allocation7_spill]] }
 0x206   :  { %v196_v61 = vpop.permute.xlu2 %195 }
 0x207   :  { %2814 = vmatpush.xpose.msk.msra.mxu1 %vm197_vm8, %v196_v61 }
 0x20e   :  { %v194_v62 = vpop.permute.xlu2 %193 }
 0x20f   :  { %2815 = vmatpush.xpose.msk.msra.mxu1 %vm197_vm8, %v194_v62 }
 0x212   :  { %2816 = vmatmul.msk.f32.vlgmr.msra.gmra.mxu1 %vm197_vm8, %v189_v59 }
 0x215   :  { %v296_v63 = vpop.permute.xlu1 %295 }
 0x216   :  { %v292_v2 = vpop.permute.xlu2 %291 }
 0x21a   :  { %2817 = vmatmul.msk.f32.gmra.mxu1 %vm197_vm8, %v190_v60 }
 0x21d   :  { %v298_v3 = vpop.permute.xlu0 %297  ;;  %v405_v4 = vpop.permute.xlu1 %404 }
 0x21e   :  { %v512_v5 = vpop.permute.xlu2 %511  ;;  %2820 = vmatpush.xpose.msk.msra.mxu3 %vm197_vm8, %v298_v3  ;;  %2826 = vmatpush.xpose.msk.msrb.mxu0 %vm197_vm8, %v405_v4 }
 0x222   :  { %2821 = vmatpush.xpose.msk.msra.mxu3 %vm197_vm8, %v296_v63 }
 0x225   :  { %v510_v6 = vpop.permute.xlu0 %509  ;;  %2822 = vmatmul.msk.f32.vlgmr.msra.gmra.mxu3 %vm197_vm8, %v292_v2  ;;  %v399_v9 = vpop.permute.xlu1 %398 }
 0x226   :  { %2832 = vmatpush.xpose.msk.msrb.mxu3 %vm197_vm8, %v512_v5  ;;  %v294_v7 = vpop.permute.xlu2 %293 }
 0x22a   :  { %2833 = vmatpush.xpose.msk.msrb.mxu3 %vm197_vm8, %v510_v6 }
 0x22d   :  { %v403_v8 = vpop.permute.xlu0 %402  ;;  %2823 = vmatmul.msk.f32.gmra.mxu3 %vm197_vm8, %v294_v7 }
 0x22e   :  { %2827 = vmatpush.xpose.msk.msrb.mxu0 %vm197_vm8, %v403_v8  ;;  %v506_v11 = vpop.permute.xlu2 %505 }
 0x231   :  { %2828 = vmatmul.msk.f32.vlgmr.msrb.gmra.mxu0 %vm197_vm8, %v399_v9 }
 0x235   :  { %2834 = vmatmul.msk.f32.vlgmr.msrb.gmra.mxu3 %vm197_vm8, %v506_v11  ;;  %v401_v12 = vpop.permute.xlu0 %400 }
 0x236   :  { %v508_v13 = vpop.permute.xlu2 %507 }
 0x239   :  { %2829 = vmatmul.msk.f32.gmra.mxu0 %vm197_vm8, %v401_v12 }
 0x23d   :  { %2835 = vmatmul.msk.f32.gmra.mxu3 %vm197_vm8, %v508_v13 }
 0x28f   :  { %v225_v15 = vpop.f32.mrf.mxu1 }
 0x290   :  { %v226_v16 = vadd.f32 %v225_v15, %v84_v14 }
 0x292   :  { %v232_v17 = vsel %vm231_vm9, %v226_v16, -inf }
 0x293   :  { %233 = vmax.xlane.f32.xlu2 %v232_v17 }
 0x297   :  { %v228_v19 = vpop.f32.mrf.mxu1 }
 0x298   :  { %v229_v20 = vadd.f32 %v228_v19, %v85_v18 }
 0x29a   :  { %v235_v21 = vsel %vm231_vm9, %v229_v20, -inf }
 0x29b   :  { %236 = vmax.xlane.f32.xlu1 %v235_v21 }
 0x2a8   :  { %v324_v22 = vpop.f32.mrf.mxu3 }
 0x2a9   :  { %v325_v29 = vadd.f32 %v324_v22, %v84_v14 }
 0x2ab   :  { %v330_v34 = vsel %vm231_vm9, %v325_v29, -inf }
 0x2ae   :  { %v431_v23 = vpop.f32.mrf.mxu0 }
 0x2af   :  { %v432_v24 = vadd.f32 %v431_v23, %v84_v14 }
 0x2b0   :  { %v327_v25 = vpop.f32.mrf.mxu3 }
 0x2b1   :  { %v3581_v26 = vadd.f32 %v327_v25, %v85_v18  ;;  %v437_v27 = vsel %vm231_vm9, %v432_v24, -inf }
 0x2b2   :  { %438 = vmax.xlane.f32.xlu0 %v437_v27 }
 0x2b3   :  { %v333_v28 = vsel %vm231_vm9, %v3581_v26, -inf }
 0x2b4   :  { %334 = vmax.xlane.f32.xlu2 %v333_v28 }
 0x2b6   :  { %v434_v30 = vpop.f32.mrf.mxu0 }
 0x2b7   :  { %v3586_v31 = vadd.f32 %v434_v30, %v85_v18 }
 0x2b8   :  { %v538_v32 = vpop.f32.mrf.mxu3 }
 0x2b9   :  { %v440_v33 = vsel %vm231_vm9, %v3586_v31, -inf  ;;  %v539_v35 = vadd.f32 %v538_v32, %v84_v14 }
 0x2ba   :  { %441 = vmax.xlane.f32.xlu1 %v440_v33  ;;  %331 = vmax.xlane.f32.xlu0 %v330_v34 }
 0x2bb   :  { %v544_v38 = vsel %vm231_vm9, %v539_v35, -inf }
 0x2c0   :  { %v541_v36 = vpop.f32.mrf.mxu3 }
 0x2c1   :  { %v542_v37 = vadd.f32 %v541_v36, %v85_v18 }
 0x2c2   :  { %545 = vmax.xlane.f32.xlu1 %v544_v38 }
 0x2c3   :  { %v547_v39 = vsel %vm231_vm9, %v542_v37, -inf }
 0x2c4   :  { %548 = vmax.xlane.f32.xlu2 %v547_v39 }
 0x2dc   :  { %3019 = vrot.lane.b32.xlu2 %v3544_v58, %s4481_s2  ;;  %s4537_s2 = sld [smem:[#allocation9_spill]] }
 0x306   :  { %v234_v40 = vpop.xlane.xlu2 %233 }
 0x307   :  { %v238_v41 = vsub.f32 %v226_v16, %v234_v40 }
 0x309   :  { %v240_v42 = vmul.f32 1.442695, %v238_v41 }
 0x30b   :  { %3170 = vpow2.f32 %v240_v42 }
 0x30e   :  { %v237_v43 = vpop.xlane.xlu1 %236 }
 0x30f   :  { %v239_v44 = vsub.f32 %v229_v20, %v237_v43 }
 0x311   :  { %v3171_v45 = vpop.eup %3170  ;;  %v242_v46 = vmul.f32 1.442695, %v239_v44 }
 0x312   :  { %v244_v47 = vsel %vm231_vm9, %v3171_v45, 0.0 }
 0x313   :  { %3172 = vpow2.f32 %v242_v46  ;;  %245 = vadd.xlane.f32.xlu0 %v244_v47 }
 0x319   :  { %v3173_v48 = vpop.eup %3172 }
 0x31a   :  { %v247_v49 = vsel %vm231_vm9, %v3173_v48, 0.0 }
 0x31b   :  { %248 = vadd.xlane.f32.xlu1 %v247_v49 }
 0x325   :  { %v439_v50 = vpop.xlane.xlu0 %438 }
 0x326   :  { %v443_v51 = vsub.f32 %v432_v24, %v439_v50 }
 0x327   :  { %v335_v55 = vpop.xlane.xlu2 %334 }
 0x328   :  { %v445_v52 = vmul.f32 1.442695, %v443_v51  ;;  %v337_v9 = vsub.f32 %v3581_v26, %v335_v55 }
 0x32a   :  { %3174 = vpow2.f32 %v445_v52  ;;  %v340_v11 = vmul.f32 1.442695, %v337_v9 }
 0x32d   :  { %v332_v53 = vpop.xlane.xlu0 %331  ;;  %v442_v8 = vpop.xlane.xlu1 %441 }
 0x32e   :  { %v336_v54 = vsub.f32 %v325_v29, %v332_v53  ;;  %v444_v28 = vsub.f32 %v3586_v31, %v442_v8  ;;  %v614_v8 = vld [vmem:[%s4457_s12] sm:$0xff] }
 0x330   :  { %v3597_v56 = vpop.eup %3174  ;;  %v338_v57 = vmul.f32 1.442695, %v336_v54  ;;  %v447_v30 = vmul.f32 1.442695, %v444_v28  ;;  %v749_v28 = vld [vmem:[%s4461_s16 + $0x18] sm:$0xff] }
 0x331   :  { %v449_v59 = vsel %vm231_vm9, %v3597_v56, 0.0  ;;  %778 = vmatpush.msra.mxu3 %v749_v28 }
 0x332   :  { %3176 = vpow2.f32 %v338_v57  ;;  %450 = vadd.xlane.f32.xlu2 %v449_v59 }
 0x334   :  { %3024 = vrot.lane.b32.xlu1 %v3544_v58, %s4482_s4  ;;  %s4534_s4 = smov 104  }
 0x335   :  { %v546_v12 = vpop.xlane.xlu1 %545 }
 0x336   :  { %v550_v13 = vsub.f32 %v539_v35, %v546_v12 }
 0x337   :  { %v549_v60 = vpop.xlane.xlu2 %548 }
 0x338   :  { %v3177_v61 = vpop.eup %3176  ;;  %v551_v4 = vsub.f32 %v542_v37, %v549_v60  ;;  %v552_v14 = vmul.f32 1.442695, %v550_v13 }
 0x339   :  { %v342_v62 = vsel %vm231_vm9, %v3177_v61, 0.0 }
 0x33a   :  { %343 = vadd.xlane.f32.xlu0 %v342_v62  ;;  %v554_v5 = vmul.f32 1.442695, %v551_v4  ;;  %v617_v4 = vld [vmem:[%s4457_s12 + $0x18] sm:$0xff] }
 0x33b   :  { %640 = vmatpush.msra.mxu0 %v617_v4 }
 0x33c   :  { %3178 = vpow2.f32 %v554_v5  ;;  %v616_v5 = vld [vmem:[%s4457_s12 + $0x10] sm:$0xff] }
 0x33d   :  { %3180 = vpow2.f32 %v340_v11  ;;  %641 = vmatpush.msra.mxu0 %v616_v5 }
 0x33e   :  { %3182 = vpow2.f32 %v552_v14 }
 0x33f   :  { %v3020_v63 = vpop.permute.xlu2 %3019 }
 0x340   :  { %v3021_v2 = vunpack.i.l.bf16 %v3020_v63  ;;  %v3022_v3 = vunpack.i.h.bf16 %v3020_v63 }
 0x342   :  { %280 = vmatpush.msra.mxu2 %v3021_v2  ;;  %v3606_v6 = vpop.eup %3178 }
 0x343   :  { %v559_v7 = vsel %vm231_vm9, %v3606_v6, 0.0  ;;  %v3181_v15 = vpop.eup %3180 }
 0x344   :  { %281 = vmatpush.msra.mxu2 %v3022_v3  ;;  %v345_v16 = vsel %vm231_vm9, %v3181_v15, 0.0  ;;  %v3183_v17 = vpop.eup %3182 }
 0x345   :  { %v556_v18 = vsel %vm231_vm9, %v3183_v17, 0.0 }
 0x34e   :  { %3029 = vrot.lane.b32.xlu0 %v3544_v58, %s4480_s1  ;;  %s4491_s1 = smov 16  }
 0x35e   :  { %560 = vadd.xlane.f32.xlu1 %v559_v7 }
 0x378   :  { %346 = vadd.xlane.f32.xlu0 %v345_v16 }
 0x380   :  { %557 = vadd.xlane.f32.xlu0 %v556_v18 }
 0x386   :  { %v246_v19 = vpop.xlane.xlu0 %245 }
 0x387   :  { %3184 = vrcp.f32 %v246_v19 }
 0x38d   :  { %v3185_v20 = vpop.eup %3184 }
 0x38e   :  { %v249_v21 = vpop.xlane.xlu1 %248  ;;  %v252_v22 = vmul.f32 %v3185_v20, %v3171_v45 }
 0x38f   :  { %3186 = vrcp.f32 %v249_v21 }
 0x390   :  { %2818 = vmatmul.msk.f32.vlgmr.msra.gmra.mxu2 %vm231_vm9, %v252_v22 }
 0x394   :  { %3034 = vrot.lane.b32.xlu0 %v3544_v58, %s4479_s27  ;;  %s4493_s27 = smov 24  }
 0x395   :  { %v3187_v23 = vpop.eup %3186 }
 0x396   :  { %v253_v24 = vmul.f32 %v3187_v23, %v3173_v48 }
 0x398   :  { %2819 = vmatmul.msk.f32.gmra.mxu2 %vm231_vm9, %v253_v24 }
 0x3a5   :  { %v451_v44 = vpop.xlane.xlu2 %450 }
 0x3a6   :  { %v3025_v25 = vpop.permute.xlu1 %3024 }
 0x3a7   :  { %v3026_v26 = vunpack.i.l.bf16 %v3025_v25  ;;  %v3027_v27 = vunpack.i.h.bf16 %v3025_v25 }
 0x3a9   :  { %378 = vmatpush.msrb.mxu2 %v3026_v26 }
 0x3ab   :  { %379 = vmatpush.msrb.mxu2 %v3027_v27 }
 0x3ad   :  { %v344_v29 = vpop.xlane.xlu0 %343 }
 0x3ae   :  { %3188 = vrcp.f32 %v344_v29  ;;  %v747_v29 = vld [vmem:[%s4461_s16 + $0x8] sm:$0xff] }
 0x3af   :  { %3190 = vpow2.f32 %v447_v30  ;;  %v746_v30 = vld [vmem:[%s4461_s16] sm:$0xff] }
 0x3b4   :  { %v3189_v32 = vpop.eup %3188 }
 0x3b5   :  { %v350_v33 = vmul.f32 %v3189_v32, %v3177_v61  ;;  %v3191_v58 = vpop.eup %3190  ;;  %v80_v32 = vld [vmem:[%s4531_s8] sm:$0xff] }
 0x3b6   :  { %v452_v34 = vsel %vm231_vm9, %v3191_v58, 0.0 }
 0x3b7   :  { %2824 = vmatmul.msk.f32.vlgmr.msrb.gmra.mxu2 %vm231_vm9, %v350_v33  ;;  %v81_v33 = vld [vmem:[%s4531_s8 + $0x8] sm:$0xff] }
 0x3be   :  { %453 = vadd.xlane.f32.xlu0 %v452_v34 }
 0x3c0   :  { %v3030_v35 = vpop.permute.xlu0 %3029 }
 0x3c1   :  { %v3031_v36 = vunpack.i.l.bf16 %v3030_v35  ;;  %v3032_v37 = vunpack.i.h.bf16 %v3030_v35 }
 0x3c3   :  { %592 = vmatpush.msra.mxu2 %v3031_v36 }
 0x3c5   :  { %593 = vmatpush.msra.mxu2 %v3032_v37 }
 0x3d1   :  { %v561_v41 = vpop.xlane.xlu1 %560 }
 0x3eb   :  { %v347_v38 = vpop.xlane.xlu0 %346 }
 0x3ec   :  { %3192 = vrcp.f32 %v347_v38  ;;  %v83_v38 = vld [vmem:[%s4531_s8 + $0x18] sm:$0xff] }
 0x3f2   :  { %v3193_v31 = vpop.eup %3192 }
 0x3f3   :  { %v558_v39 = vpop.xlane.xlu0 %557  ;;  %v351_v40 = vmul.f32 %v3193_v31, %v3181_v15  ;;  %v3141_v15 = vld [vmem:[%s4458_s13] ss:$0 sm:$0xff] }
 0x3f4   :  { %3194 = vrcp.f32 %v558_v39  ;;  %v712_v39 = vld [vmem:[%s4459_s14 + $0x18] sm:$0xff] }
 0x3f5   :  { %2825 = vmatmul.msk.f32.gmra.mxu2 %vm231_vm9, %v351_v40  ;;  %3196 = vrcp.f32 %v561_v41  ;;  %v711_v40 = vld [vmem:[%s4459_s14 + $0x10] sm:$0xff]  ;;  %v710_v41 = vld [vmem:[%s4459_s14 + $0x8] sm:$0xff] }
 0x3f6   :  { %3198 = vrcp.f32 %v451_v44 }
 0x3fa   :  { %v3195_v42 = vpop.eup %3194 }
 0x3fb   :  { %v564_v43 = vmul.f32 %v3195_v42, %v3183_v17  ;;  %v3197_v45 = vpop.eup %3196  ;;  %v709_v42 = vld [vmem:[%s4459_s14] sm:$0xff]  ;;  %s4556_s14 = sld [smem:[#allocation17_spill]] }
 0x3fc   :  { %v565_v46 = vmul.f32 %v3197_v45, %v3606_v6  ;;  %v3199_v48 = vpop.eup %3198  ;;  %v615_v6 = vld [vmem:[%s4457_s12 + $0x8] sm:$0xff] }
 0x3fd   :  { %2836 = vmatmul.msk.f32.vlgmr.msra.gmra.mxu2 %vm231_vm9, %v564_v43  ;;  %v457_v51 = vmul.f32 %v3199_v48, %v3597_v56  ;;  %642 = vmatpush.msra.mxu0 %v615_v6 }
 0x3ff   :  { %643 = vmatpush.msra.mxu0 %v614_v8 }
 0x405   :  { %2837 = vmatmul.msk.f32.gmra.mxu2 %vm231_vm9, %v565_v46 }
 0x406   :  { %v3035_v47 = vpop.permute.xlu0 %3034 }
 0x407   :  { %v3036_v49 = vunpack.i.l.bf16 %v3035_v47  ;;  %v3037_v50 = vunpack.i.h.bf16 %v3035_v47 }
 0x409   :  { %485 = vmatpush.msrb.mxu1 %v3036_v49 }
 0x40b   :  { %486 = vmatpush.msrb.mxu1 %v3037_v50 }
 0x40c   :  { %2830 = vmatmul.msk.f32.vlgmr.msrb.gmra.mxu1 %vm231_vm9, %v457_v51 }
 0x40d   :  { %735 = vmatpush.msra.mxu1 %v712_v39 }
 0x40f   :  { %736 = vmatpush.msra.mxu1 %v711_v40 }
 0x411   :  { %737 = vmatpush.msra.mxu1 %v710_v41 }
 0x413   :  { %v283_v52 = vpop.f32.mrf.mxu2  ;;  %738 = vmatpush.msra.mxu1 %v709_v42  ;;  %v3785_v42 = vld [vmem:[%s4537_s2] sm:$0xff] }
 0x414   :  { %289 = vst.msk [vmem:[#allocation2] sm:$0xff] %vm197_vm8, %v283_v52 }
 0x41b   :  { %v286_v53 = vpop.f32.mrf.mxu2 }
 0x41c   :  { %290 = vst.msk [vmem:[#allocation2 + $0x8] sm:$0xff] %vm197_vm8, %v286_v53 }
 0x431   :  { %v454_v54 = vpop.xlane.xlu0 %453 }
 0x432   :  { %3200 = vrcp.f32 %v454_v54 }
 0x438   :  { %v3201_v55 = vpop.eup %3200 }
 0x439   :  { %v458_v57 = vmul.f32 %v3201_v55, %v3191_v58  ;;  %v82_v58 = vld [vmem:[%s4531_s8 + $0x10] sm:$0xff]  ;;  %v3143_v55 = vld [vmem:[%s4533_s0] ss:$0 sm:$0xff]  ;;  %s4544_s0 = sld [smem:[#allocation14_spill]] }
 0x43a   :  { %v381_v59 = vpop.f32.mrf.mxu2 }
 0x43b   :  { %2831 = vmatmul.msk.f32.gmra.mxu1 %vm231_vm9, %v458_v57  ;;  %389 = vrot.lane.b32.xlu2 %v381_v59, %s4485_s6 }
 0x478   :  { %v384_v56 = vpop.f32.mrf.mxu2 }
 0x480   :  { %v595_v60 = vpop.f32.mrf.mxu2 }
 0x481   :  { %603 = vrot.lane.b32.xlu2 %v595_v60, %s4493_s27 }
 0x488   :  { %v598_v62 = vpop.f32.mrf.mxu2 }
 0x489   :  { %v488_v61 = vpop.f32.mrf.mxu1  ;;  %391 = vrot.lane.b32.xlu2 %v384_v56, %s4485_s6  ;;  %s4541_s6 = smov 8  }
 0x48a   :  { %496 = vrot.lane.b32.xlu1 %v488_v61, %s4491_s1 }
 0x492   :  { %605 = vrot.lane.b32.xlu1 %v598_v62, %s4493_s27  ;;  %s4532_s27 = sld [smem:[#allocation12_spill]] }
 0x495   :  { %v390_v63 = vpop.permute.xlu2 %389 }
 0x496   :  { %396 = vst.msk [vmem:[#allocation2] sm:$0xff] %vm395_vm10, %v390_v63  ;;  %v3144_v63 = vld [vmem:[%s4462_s17] ss:$0 sm:$0xff]  ;;  %s4554_s17 = sld [smem:[#allocation13_spill]] }
 0x498   :  { %v3142_v52 = vld [vmem:[%s4532_s27] ss:$0 sm:$0xff]  ;;  %s4545_s27 = smov 120  }
 0x4b8   :  { %v491_v2 = vpop.f32.mrf.mxu1 }
 0x4b9   :  { %498 = vrot.lane.b32.xlu0 %v491_v2, %s4491_s1  ;;  %s4535_s1 = smov 112  }
 0x4db   :  { %v604_v3 = vpop.permute.xlu2 %603 }
 0x4e3   :  { %v392_v7 = vpop.permute.xlu2 %391 }
 0x4e4   :  { %397 = vst.msk [vmem:[#allocation2 + $0x8] sm:$0xff] %vm395_vm10, %v392_v7 }
 0x4fc   :  { %v497_v9 = vpop.permute.xlu1 %496 }
 0x4fd   :  { %503 = vst.msk [vmem:[#allocation2] sm:$0xff] %vm502_vm11, %v497_v9 }
 0x4fe   :  { %610 = vst.msk [vmem:[#allocation2] sm:$0xff] %vm609_vm12, %v604_v3 }
 0x504   :  { %v606_v13 = vpop.permute.xlu1 %605 }
 0x505   :  { %v612_v11 = vld [vmem:[#allocation2] sm:$0xff] }
 0x506   :  { %2838 = vmatmul.msk.f32.vlgmr.msra.gmra.mxu0 %vm90_vm0, %v612_v11 }
 0x52b   :  { %v499_v12 = vpop.permute.xlu0 %498 }
 0x52c   :  { %504 = vst.msk [vmem:[#allocation2 + $0x8] sm:$0xff] %vm502_vm11, %v499_v12 }
 0x52d   :  { %611 = vst.msk [vmem:[#allocation2 + $0x8] sm:$0xff] %vm609_vm12, %v606_v13 }
 0x534   :  { %v613_v14 = vld [vmem:[#allocation2 + $0x8] sm:$0xff] }
 0x535   :  { %2839 = vmatmul.msk.f32.gmra.mxu0 %vm90_vm0, %v613_v14 }
 0x583   :  { %v645_v16 = vpop.f32.mrf.mxu0 }
 0x584   :  { %v646_v17 = vadd.f32 %v3141_v15, %v645_v16 }
 0x586   :  { %v3659_v18 = vadd.f32 %v646_v17, %v3497_v0 }
 0x588   :  { %v655_v19 = vsel %vm90_vm0, %v3659_v18, 0.0 }
 0x589   :  { %656 = vadd.xlane.f32.xlu2 %v655_v19 }
 0x5b2   :  { %v648_v20 = vpop.f32.mrf.mxu0 }
 0x5b3   :  { %v649_v21 = vadd.f32 %v3141_v15, %v648_v20 }
 0x5b5   :  { %v3664_v22 = vadd.f32 %v649_v21, %v3502_v1  ;;  %v748_v1 = vld [vmem:[%s4461_s16 + $0x10] sm:$0xff]  ;;  %s4547_s16 = smov 64  }
 0x5b6   :  { %779 = vmatpush.msra.mxu3 %v748_v1 }
 0x5b7   :  { %v658_v23 = vsel %vm90_vm0, %v3664_v22, 0.0 }
 0x5b8   :  { %659 = vadd.xlane.f32.xlu1 %v658_v23  ;;  %780 = vmatpush.msra.mxu3 %v747_v29 }
 0x5ba   :  { %781 = vmatpush.msra.mxu3 %v746_v30 }
 0x5bb   :  { %2842 = vmatmul.msk.f32.vlgmr.msra.gmra.mxu3 %vm90_vm0, %v80_v32 }
 0x5c3   :  { %2843 = vmatmul.msk.f32.gmra.mxu3 %vm90_vm0, %v81_v33 }
 0x5cb   :  { %2844 = vmatmul.msk.f32.gmra.mxu3 %vm90_vm0, %v82_v58 }
 0x5d3   :  { %2845 = vmatmul.msk.f32.gmra.mxu3 %vm90_vm0, %v83_v38 }
 0x5fc   :  { %v657_v24 = vpop.xlane.xlu2 %656 }
 0x5fd   :  { %v661_v25 = vmul.f32 %v657_v24, %v3508_v10  ;;  %v3145_v24 = vld [vmem:[%s4460_s15] ss:$0 sm:$0xff]  ;;  %s4551_s15 = sld [smem:[#allocation7_spill]] }
 0x5ff   :  { %v663_v26 = vsub.f32 %v3659_v18, %v661_v25 }
 0x601   :  { %v665_v0 = vmul.f32 %v663_v26, %v663_v26 }
 0x603   :  { %v667_v27 = vsel %vm90_vm0, %v665_v0, 0.0 }
 0x604   :  { %668 = vadd.xlane.f32.xlu0 %v667_v27 }
 0x62b   :  { %v660_v34 = vpop.xlane.xlu1 %659 }
 0x62c   :  { %v662_v35 = vmul.f32 %v660_v34, %v3508_v10 }
 0x62e   :  { %v664_v36 = vsub.f32 %v3664_v22, %v662_v35 }
 0x630   :  { %v666_v37 = vmul.f32 %v664_v36, %v664_v36 }
 0x632   :  { %v670_v31 = vsel %vm90_vm0, %v666_v37, 0.0 }
 0x633   :  { %671 = vadd.xlane.f32.xlu2 %v670_v31 }
 0x63e   :  { %v783_v56 = vpop.f32.mrf.mxu3 }
 0x63f   :  { %v3727_v6 = vadd.f32 %v3144_v63, %v783_v56 }
 0x646   :  { %v786_v2 = vpop.f32.mrf.mxu3 }
 0x647   :  { %v787_v3 = vadd.f32 %v3144_v63, %v786_v2 }
 0x649   :  { %v3761_v23 = vpack.i.bf16 %v3727_v6, %v787_v3 }
 0x64b   :  { %909 = vrot.lane.b32.xlu2 %v787_v3, %s4501_s25 }
 0x64e   :  { %v789_v7 = vpop.f32.mrf.mxu3 }
 0x64f   :  { %v3729_v9 = vadd.f32 %v3144_v63, %v789_v7 }
 0x651   :  { %911 = vrot.lane.b32.xlu0 %v3729_v9, %s4501_s25 }
 0x653   :  { %907 = vrot.lane.b32.xlu2 %v3727_v6, %s4501_s25 }
 0x656   :  { %v792_v14 = vpop.f32.mrf.mxu3 }
 0x657   :  { %v3735_v16 = vadd.f32 %v3144_v63, %v792_v14 }
 0x659   :  { %913 = vrot.lane.b32.xlu1 %v3735_v16, %s4501_s25  ;;  %2846 = vmatpush.xpose.msk.msrb.mxu2 %vm197_vm8, %v3735_v16  ;;  %v3754_v21 = vpack.i.bf16 %v3729_v9, %v3735_v16 }
 0x65a   :  { %1147 = vrot.lane.b32.xlu0 %v3727_v6, %s4534_s4 }
 0x65b   :  { %1151 = vrot.lane.b32.xlu2 %v3729_v9, %s4534_s4 }
 0x65d   :  { %2847 = vmatpush.xpose.msk.msrb.mxu2 %vm197_vm8, %v3729_v9 }
 0x661   :  { %1153 = vrot.lane.b32.xlu1 %v3735_v16, %s4534_s4  ;;  %2848 = vmatpush.xpose.msk.msrb.mxu2 %vm197_vm8, %v787_v3 }
 0x662   :  { %1029 = vrot.lane.b32.xlu0 %v787_v3, %s4535_s1 }
 0x663   :  { %3044 = vrot.lane.b32.xlu2 %v3761_v23, %s4536_s7 }
 0x665   :  { %2849 = vmatpush.xpose.msk.msrb.mxu2 %vm197_vm8, %v3727_v6 }
 0x669   :  { %3039 = vrot.lane.b32.xlu1 %v3754_v21, %s4536_s7 }
 0x66b   :  { %1149 = vrot.lane.b32.xlu2 %v787_v3, %s4534_s4 }
 0x677   :  { %v669_v43 = vpop.xlane.xlu0 %668 }
 0x678   :  { %v673_v44 = vmul.f32 %v669_v43, %v3508_v10 }
 0x67a   :  { %v675_v45 = vadd.f32 1e-05, %v673_v44 }
 0x67c   :  { %3202 = vrsqrt.f32 %v675_v45  ;;  %vm683_vm14 = vweird.f32 %v675_v45 }
 0x682   :  { %v3203_v46 = vpop.eup %3202 }
 0x683   :  { %v678_v47 = vmul.f32 %v3203_v46, %v675_v45  ;;  %vm684_vm13 = vweird.f32 %v3203_v46 }
 0x684   :  { %vm685_vm15 = vmor %vm683_vm14, %vm684_vm13 }
 0x685   :  { %v679_v48 = vmul.f32 %v3203_v46, %v678_v47 }
 0x687   :  { %v680_v49 = vmul.f32 0.5, %v679_v48 }
 0x689   :  { %v681_v50 = vsub.f32 1.5, %v680_v49 }
 0x68b   :  { %v682_v51 = vmul.f32 %v3203_v46, %v681_v50 }
 0x68d   :  { %v686_v53 = vsel %vm685_vm15, %v3203_v46, %v682_v51  ;;  %v3794_v46 = vld [vmem:[%s4537_s2 + $0x8] sm:$0xff]  ;;  %vm1411_vm15 = vcmask 523264   ;;  %s4559_s2 = sld [smem:[#allocation20_spill]] }
 0x68e   :  { %v697_v54 = vmul.f32 %v686_v53, %v663_v26 }
 0x690   :  { %v702_v57 = vmul.f32 %v3142_v52, %v697_v54 }
 0x692   :  { %v707_v59 = vadd.f32 %v3143_v55, %v702_v57 }
 0x694   :  { %2840 = vmatmul.msk.f32.vlgmr.msra.gmra.mxu1 %vm90_vm0, %v707_v59 }
 0x6a6   :  { %v672_v60 = vpop.xlane.xlu2 %671 }
 0x6a7   :  { %v674_v61 = vmul.f32 %v672_v60, %v3508_v10 }
 0x6a9   :  { %v676_v62 = vadd.f32 1e-05, %v674_v61 }
 0x6ab   :  { %3204 = vrsqrt.f32 %v676_v62  ;;  %vm693_vm2 = vweird.f32 %v676_v62 }
 0x6ae   :  { %v910_v27 = vpop.permute.xlu2 %909 }
 0x6b1   :  { %v3205_v4 = vpop.eup %3204 }
 0x6b2   :  { %v688_v5 = vmul.f32 %v3205_v4, %v676_v62  ;;  %vm694_vm1 = vweird.f32 %v3205_v4 }
 0x6b3   :  { %vm695_vm3 = vmor %vm693_vm2, %vm694_vm1 }
 0x6b4   :  { %v689_v8 = vmul.f32 %v3205_v4, %v688_v5 }
 0x6b6   :  { %v690_v11 = vmul.f32 0.5, %v689_v8  ;;  %v908_v1 = vpop.permute.xlu2 %907 }
 0x6b8   :  { %v691_v12 = vsub.f32 1.5, %v690_v11 }
 0x6ba   :  { %v692_v13 = vmul.f32 %v3205_v4, %v691_v12 }
 0x6bc   :  { %v696_v15 = vsel %vm695_vm3, %v3205_v4, %v692_v13 }
 0x6bd   :  { %v698_v17 = vmul.f32 %v696_v15, %v664_v36 }
 0x6be   :  { %v1152_v32 = vpop.permute.xlu2 %1151 }
 0x6bf   :  { %v703_v19 = vmul.f32 %v3142_v52, %v698_v17 }
 0x6c1   :  { %v708_v20 = vadd.f32 %v3143_v55, %v703_v19 }
 0x6c3   :  { %2841 = vmatmul.msk.f32.gmra.mxu1 %vm90_vm0, %v708_v20  ;;  %v912_v29 = vpop.permute.xlu0 %911 }
 0x6c6   :  { %v3045_v38 = vpop.permute.xlu2 %3044 }
 0x6c7   :  { %v3047_v31 = vunpack.i.h.bf16 %v3045_v38  ;;  %v3046_v39 = vunpack.i.l.bf16 %v3045_v38 }
 0x6cb   :  { %v914_v28 = vpop.permute.xlu1 %913 }
 0x6cc   :  { %2854 = vmatpush.xpose.msk.msrb.mxu1 %vm197_vm8, %v914_v28  ;;  %v1148_v41 = vpop.permute.xlu0 %1147 }
 0x6ce   :  { %v1150_v40 = vpop.permute.xlu2 %1149 }
 0x6d0   :  { %2855 = vmatpush.xpose.msk.msrb.mxu1 %vm197_vm8, %v912_v29 }
 0x6d3   :  { %v1154_v30 = vpop.permute.xlu1 %1153 }
 0x6d4   :  { %2856 = vmatpush.xpose.msk.msrb.mxu1 %vm197_vm8, %v910_v27  ;;  %2870 = vmatpush.xpose.msk.msrb.mxu3 %vm197_vm8, %v1154_v30  ;;  %v1030_v3 = vpop.permute.xlu0 %1029 }
 0x6d8   :  { %2857 = vmatpush.xpose.msk.msrb.mxu1 %vm197_vm8, %v908_v1  ;;  %2871 = vmatpush.xpose.msk.msrb.mxu3 %vm197_vm8, %v1152_v32 }
 0x6db   :  { %v3040_v58 = vpop.permute.xlu1 %3039 }
 0x6dc   :  { %v3042_v35 = vunpack.i.h.bf16 %v3040_v58  ;;  %v3041_v36 = vunpack.i.l.bf16 %v3040_v58  ;;  %2872 = vmatpush.xpose.msk.msrb.mxu3 %vm197_vm8, %v1150_v40 }
 0x6de   :  { %890 = vmatpush.msrb.mxu0 %v3041_v36 }
 0x6e0   :  { %891 = vmatpush.msrb.mxu0 %v3042_v35  ;;  %2873 = vmatpush.xpose.msk.msrb.mxu3 %vm197_vm8, %v1148_v41 }
 0x6e2   :  { %892 = vmatpush.msrb.mxu0 %v3046_v39 }
 0x6e4   :  { %893 = vmatpush.msrb.mxu0 %v3047_v31 }
 0x711   :  { %v740_v25 = vpop.f32.mrf.mxu1 }
 0x712   :  { %v741_v26 = vadd.f32 %v3145_v24, %v740_v25 }
 0x714   :  { %v3769_v0 = vmul.f32 0.35355338, %v741_v26 }
 0x716   :  { %2850 = vmatmul.msk.f32.vlgmr.msrb.gmra.mxu2 %vm197_vm8, %v3769_v0 }
 0x740   :  { %v743_v33 = vpop.f32.mrf.mxu1 }
 0x741   :  { %v744_v34 = vadd.f32 %v3145_v24, %v743_v33 }
 0x743   :  { %v796_v37 = vmul.f32 0.35355338, %v744_v34 }
 0x745   :  { %2851 = vmatmul.msk.f32.gmra.mxu2 %vm197_vm8, %v796_v37 }
 0x799   :  { %v832_v43 = vpop.f32.mrf.mxu2 }
 0x79a   :  { %v833_v44 = vadd.f32 %v832_v43, %v3785_v42 }
 0x79c   :  { %v838_v45 = vsel %vm90_vm0, %v833_v44, -inf }
 0x79d   :  { %839 = vmax.xlane.f32.xlu1 %v838_v45 }
 0x7b6   :  { %903 = vrot.lane.b32.xlu1 %v3769_v0, %s4501_s25 }
 0x7c8   :  { %v835_v47 = vpop.f32.mrf.mxu2 }
 0x7c9   :  { %v836_v48 = vadd.f32 %v835_v47, %v3794_v46 }
 0x7cb   :  { %v841_v49 = vsel %vm90_vm0, %v836_v48, -inf }
 0x7cc   :  { %842 = vmax.xlane.f32.xlu2 %v841_v49 }
 0x7e4   :  { %1033 = vrot.lane.b32.xlu2 %v3735_v16, %s4535_s1 }
 0x7ec   :  { %905 = vrot.lane.b32.xlu2 %v796_v37, %s4501_s25  ;;  %s4542_s25 = smov 24  }
 0x7f4   :  { %1031 = vrot.lane.b32.xlu2 %v3729_v9, %s4535_s1 }
 0x7fc   :  { %1143 = vrot.lane.b32.xlu2 %v3769_v0, %s4534_s4 }
 0x804   :  { %1027 = vrot.lane.b32.xlu2 %v3727_v6, %s4535_s1 }
 0x80c   :  { %1025 = vrot.lane.b32.xlu2 %v796_v37, %s4535_s1 }
 0x810   :  { %v840_v50 = vpop.xlane.xlu1 %839 }
 0x811   :  { %v844_v51 = vsub.f32 %v833_v44, %v840_v50 }
 0x813   :  { %v846_v52 = vmul.f32 1.442695, %v844_v51 }
 0x815   :  { %3206 = vpow2.f32 %v846_v52 }
 0x81b   :  { %v3207_v53 = vpop.eup %3206 }
 0x81c   :  { %v850_v54 = vsel %vm90_vm0, %v3207_v53, 0.0 }
 0x81d   :  { %851 = vadd.xlane.f32.xlu0 %v850_v54 }
 0x828   :  { %v904_v55 = vpop.permute.xlu1 %903 }
 0x829   :  { %2858 = vmatmul.msk.f32.vlgmr.msrb.gmra.mxu1 %vm197_vm8, %v904_v55 }
 0x831   :  { %1145 = vrot.lane.b32.xlu0 %v796_v37, %s4534_s4 }
 0x83f   :  { %v843_v57 = vpop.xlane.xlu2 %842 }
 0x840   :  { %v845_v59 = vsub.f32 %v836_v48, %v843_v57 }
 0x842   :  { %v848_v56 = vmul.f32 1.442695, %v845_v59 }
 0x844   :  { %3208 = vpow2.f32 %v848_v56 }
 0x847   :  { %v1034_v60 = vpop.permute.xlu2 %1033 }
 0x848   :  { %2862 = vmatpush.xpose.msk.msra.mxu0 %vm197_vm8, %v1034_v60 }
 0x84a   :  { %v3209_v61 = vpop.eup %3208 }
 0x84b   :  { %v853_v62 = vsel %vm90_vm0, %v3209_v61, 0.0 }
 0x84c   :  { %854 = vadd.xlane.f32.xlu1 %v853_v62 }
 0x84f   :  { %v906_v63 = vpop.permute.xlu2 %905 }
 0x850   :  { %2859 = vmatmul.msk.f32.gmra.mxu1 %vm197_vm8, %v906_v63 }
 0x857   :  { %v1032_v2 = vpop.permute.xlu2 %1031 }
 0x858   :  { %2863 = vmatpush.xpose.msk.msra.mxu0 %vm197_vm8, %v1032_v2 }
 0x85c   :  { %2864 = vmatpush.xpose.msk.msra.mxu0 %vm197_vm8, %v1030_v3 }
 0x85f   :  { %v1144_v4 = vpop.permute.xlu2 %1143 }
 0x860   :  { %2874 = vmatmul.msk.f32.vlgmr.msrb.gmra.mxu3 %vm197_vm8, %v1144_v4 }
 0x865   :  { %1023 = vrot.lane.b32.xlu1 %v3769_v0, %s4535_s1 }
 0x867   :  { %v1028_v5 = vpop.permute.xlu2 %1027 }
 0x868   :  { %2865 = vmatpush.xpose.msk.msra.mxu0 %vm197_vm8, %v1028_v5 }
 0x86f   :  { %v1026_v25 = vpop.permute.xlu2 %1025 }
 0x890   :  { %v852_v6 = vpop.xlane.xlu0 %851 }
 0x891   :  { %3210 = vrcp.f32 %v852_v6 }
 0x897   :  { %v3211_v7 = vpop.eup %3210 }
 0x898   :  { %v858_v8 = vmul.f32 %v3211_v7, %v3207_v53 }
 0x89a   :  { %2852 = vmatmul.msk.f32.vlgmr.msrb.gmra.mxu0 %vm90_vm0, %v858_v8 }
 0x8a3   :  { %v1146_v9 = vpop.permute.xlu0 %1145 }
 0x8a4   :  { %2875 = vmatmul.msk.f32.gmra.mxu3 %vm197_vm8, %v1146_v9 }
 0x8a6   :  { %v944_v11 = vpop.f32.mrf.mxu1 }
 0x8a7   :  { %v945_v12 = vadd.f32 %v944_v11, %v3785_v42 }
 0x8a9   :  { %v950_v13 = vsel %vm90_vm0, %v945_v12, -inf }
 0x8aa   :  { %951 = vmax.xlane.f32.xlu0 %v950_v13 }
 0x8be   :  { %3049 = vrot.lane.b32.xlu0 %v3754_v21, %s4538_s29 }
 0x8bf   :  { %v855_v14 = vpop.xlane.xlu1 %854 }
 0x8c0   :  { %3212 = vrcp.f32 %v855_v14 }
 0x8c6   :  { %v3213_v15 = vpop.eup %3212  ;;  %3059 = vrot.lane.b32.xlu0 %v3754_v21, %s4539_s3 }
 0x8c7   :  { %v859_v16 = vmul.f32 %v3213_v15, %v3209_v61 }
 0x8c9   :  { %2853 = vmatmul.msk.f32.gmra.mxu0 %vm90_vm0, %v859_v16 }
 0x8cd   :  { %v947_v17 = vpop.f32.mrf.mxu1 }
 0x8ce   :  { %v948_v19 = vadd.f32 %v947_v17, %v3794_v46 }
 0x8d0   :  { %v953_v20 = vsel %vm90_vm0, %v948_v19, -inf }
 0x8d1   :  { %954 = vmax.xlane.f32.xlu2 %v953_v20 }
 0x8d7   :  { %v1024_v24 = vpop.permute.xlu1 %1023 }
 0x8d8   :  { %2866 = vmatmul.msk.f32.vlgmr.msra.gmra.mxu0 %vm197_vm8, %v1024_v24 }
 0x8e0   :  { %2867 = vmatmul.msk.f32.gmra.mxu0 %vm197_vm8, %v1026_v25 }
 0x8e3   :  { %v1184_v26 = vpop.f32.mrf.mxu3 }
 0x8e4   :  { %v1185_v0 = vadd.f32 %v1184_v26, %v3785_v42 }
 0x8e6   :  { %v1190_v27 = vsel %vm90_vm0, %v1185_v0, -inf }
 0x8e7   :  { %1191 = vmax.xlane.f32.xlu1 %v1190_v27 }
 0x900   :  { %3054 = vrot.lane.b32.xlu1 %v3761_v23, %s4538_s29 }
 0x908   :  { %3064 = vrot.lane.b32.xlu1 %v3761_v23, %s4539_s3 }
 0x910   :  { %3074 = vrot.lane.b32.xlu1 %v3761_v23, %s4540_s30 }
 0x917   :  { %v895_v28 = vpop.f32.mrf.mxu0 }
 0x918   :  { %901 = vst.msk [vmem:[#allocation2] sm:$0xff] %vm197_vm8, %v895_v28 }
 0x91d   :  { %v952_v1 = vpop.xlane.xlu0 %951 }
 0x91e   :  { %v956_v29 = vsub.f32 %v945_v12, %v952_v1 }
 0x920   :  { %v958_v30 = vmul.f32 1.442695, %v956_v29 }
 0x922   :  { %3214 = vpow2.f32 %v958_v30 }
 0x927   :  { %v1187_v32 = vpop.f32.mrf.mxu3 }
 0x928   :  { %v3843_v33 = vadd.f32 %v1187_v32, %v3794_v46  ;;  %v3215_v34 = vpop.eup %3214 }
 0x929   :  { %v962_v23 = vsel %vm90_vm0, %v3215_v34, 0.0 }
 0x92a   :  { %v1193_v58 = vsel %vm90_vm0, %v3843_v33, -inf }
 0x92b   :  { %1194 = vmax.xlane.f32.xlu2 %v1193_v58 }
 0x930   :  { %v3050_v35 = vpop.permute.xlu0 %3049 }
 0x931   :  { %v3051_v36 = vunpack.i.l.bf16 %v3050_v35  ;;  %v3052_v37 = vunpack.i.h.bf16 %v3050_v35 }
 0x933   :  { %963 = vadd.xlane.f32.xlu2 %v962_v23  ;;  %1002 = vmatpush.msra.mxu2 %v3051_v36 }
 0x935   :  { %1003 = vmatpush.msra.mxu2 %v3052_v37 }
 0x938   :  { %v3060_v57 = vpop.permute.xlu0 %3059 }
 0x939   :  { %v3061_v56 = vunpack.i.l.bf16 %v3060_v57  ;;  %v3062_v60 = vunpack.i.h.bf16 %v3060_v57 }
 0x944   :  { %v955_v41 = vpop.xlane.xlu2 %954 }
 0x945   :  { %v957_v45 = vsub.f32 %v948_v19, %v955_v41 }
 0x946   :  { %v898_v38 = vpop.f32.mrf.mxu0 }
 0x947   :  { %902 = vst.msk [vmem:[#allocation2 + $0x8] sm:$0xff] %vm197_vm8, %v898_v38  ;;  %v960_v51 = vmul.f32 1.442695, %v957_v45 }
 0x955   :  { %v1064_v31 = vpop.f32.mrf.mxu0 }
 0x956   :  { %v1065_v39 = vadd.f32 %v1064_v31, %v3785_v42 }
 0x958   :  { %v1070_v40 = vsel %vm90_vm0, %v1065_v39, -inf }
 0x959   :  { %1071 = vmax.xlane.f32.xlu0 %v1070_v40 }
 0x95a   :  { %v1192_v43 = vpop.xlane.xlu1 %1191 }
 0x95b   :  { %v1196_v44 = vsub.f32 %v1185_v0, %v1192_v43 }
 0x95d   :  { %v1198_v47 = vmul.f32 1.442695, %v1196_v44  ;;  %v1067_v48 = vpop.f32.mrf.mxu0 }
 0x95e   :  { %v1068_v49 = vadd.f32 %v1067_v48, %v3794_v46 }
 0x95f   :  { %3216 = vpow2.f32 %v1198_v47 }
 0x960   :  { %v1073_v50 = vsel %vm90_vm0, %v1068_v49, -inf  ;;  %3218 = vpow2.f32 %v960_v51  ;;  %v1267_v51 = vld [vmem:[%s4463_s18 + $0x10] sm:$0xff] }
 0x961   :  { %1074 = vmax.xlane.f32.xlu0 %v1073_v50  ;;  %v1268_v50 = vld [vmem:[%s4463_s18 + $0x18] sm:$0xff] }
 0x962   :  { %1291 = vmatpush.msrb.mxu0 %v1268_v50 }
 0x964   :  { %1292 = vmatpush.msrb.mxu0 %v1267_v51 }
 0x965   :  { %v3853_v52 = vpop.eup %3216 }
 0x966   :  { %v1202_v42 = vsel %vm90_vm0, %v3853_v52, 0.0  ;;  %v3219_v53 = vpop.eup %3218 }
 0x967   :  { %1203 = vadd.xlane.f32.xlu2 %v1202_v42  ;;  %v965_v54 = vsel %vm90_vm0, %v3219_v53, 0.0  ;;  %v1265_v42 = vld [vmem:[%s4463_s18] sm:$0xff] }
 0x96f   :  { %966 = vadd.xlane.f32.xlu2 %v965_v54 }
 0x972   :  { %v3055_v55 = vpop.permute.xlu1 %3054 }
 0x973   :  { %v3056_v59 = vunpack.i.l.bf16 %v3055_v55  ;;  %v3057_v46 = vunpack.i.h.bf16 %v3055_v55 }
 0x975   :  { %3069 = vrot.lane.b32.xlu0 %v3754_v21, %s4540_s30  ;;  %1004 = vmatpush.msra.mxu2 %v3056_v59 }
 0x977   :  { %1005 = vmatpush.msra.mxu2 %v3057_v46 }
 0x979   :  { %1242 = vmatpush.msrb.mxu2 %v3061_v56 }
 0x97a   :  { %v3065_v61 = vpop.permute.xlu1 %3064 }
 0x97b   :  { %1243 = vmatpush.msrb.mxu2 %v3062_v60  ;;  %v3066_v62 = vunpack.i.l.bf16 %v3065_v61  ;;  %v3067_v63 = vunpack.i.h.bf16 %v3065_v61  ;;  %v3146_v60 = vld [vmem:[%s4464_s19] ss:$0 sm:$0xff] }
 0x97d   :  { %1244 = vmatpush.msrb.mxu2 %v3066_v62 }
 0x97f   :  { %1245 = vmatpush.msrb.mxu2 %v3067_v63 }
 0x982   :  { %v3075_v28 = vpop.permute.xlu1 %3074 }
 0x983   :  { %v3076_v30 = vunpack.i.l.bf16 %v3075_v28  ;;  %v3077_v32 = vunpack.i.h.bf16 %v3075_v28  ;;  %v1405_v28 = vld [vmem:[%s4467_s22 + $0x30] sm:$0xff] }
 0x99e   :  { %v1195_v2 = vpop.xlane.xlu2 %1194 }
 0x99f   :  { %v1197_v7 = vsub.f32 %v3843_v33, %v1195_v2 }
 0x9a1   :  { %v1200_v9 = vmul.f32 1.442695, %v1197_v7 }
 0x9a6   :  { %v964_v3 = vpop.xlane.xlu2 %963 }
 0x9a7   :  { %3220 = vrcp.f32 %v964_v3 }
 0x9ad   :  { %v3221_v4 = vpop.eup %3220 }
 0x9ae   :  { %v970_v5 = vmul.f32 %v3221_v4, %v3215_v34 }
 0x9b0   :  { %2860 = vmatmul.msk.f32.vlgmr.msra.gmra.mxu2 %vm90_vm0, %v970_v5 }
 0x9cc   :  { %v1072_v6 = vpop.xlane.xlu0 %1071 }
 0x9cd   :  { %v1076_v21 = vsub.f32 %v1065_v39, %v1072_v6 }
 0x9cf   :  { %v1078_v8 = vmul.f32 1.442695, %v1076_v21 }
 0x9d1   :  { %3222 = vpow2.f32 %v1078_v8 }
 0x9d2   :  { %3224 = vpow2.f32 %v1200_v9 }
 0x9d4   :  { %v1075_v11 = vpop.xlane.xlu0 %1074 }
 0x9d5   :  { %v1077_v12 = vsub.f32 %v1068_v49, %v1075_v11 }
 0x9d7   :  { %v3223_v13 = vpop.eup %3222  ;;  %v1080_v14 = vmul.f32 1.442695, %v1077_v12 }
 0x9d8   :  { %v1082_v15 = vsel %vm90_vm0, %v3223_v13, 0.0  ;;  %v3225_v17 = vpop.eup %3224 }
 0x9d9   :  { %3226 = vpow2.f32 %v1080_v14  ;;  %1083 = vadd.xlane.f32.xlu2 %v1082_v15  ;;  %v1205_v24 = vsel %vm90_vm0, %v3225_v17, 0.0  ;;  %v1363_v15 = vld [vmem:[%s4465_s20 + $0x18] sm:$0xff] }
 0x9da   :  { %v1204_v16 = vpop.xlane.xlu2 %1203 }
 0x9df   :  { %v3227_v19 = vpop.eup %3226 }
 0x9e0   :  { %v1085_v20 = vsel %vm90_vm0, %v3227_v19, 0.0 }
 0x9e1   :  { %1086 = vadd.xlane.f32.xlu0 %v1085_v20  ;;  %1206 = vadd.xlane.f32.xlu2 %v1205_v24 }
 0x9e2   :  { %v967_v25 = vpop.xlane.xlu2 %966 }
 0x9e3   :  { %3228 = vrcp.f32 %v967_v25 }
 0x9e4   :  { %3230 = vrcp.f32 %v1204_v16  ;;  %v1362_v16 = vld [vmem:[%s4465_s20 + $0x10] sm:$0xff] }
 0x9e7   :  { %v3070_v26 = vpop.permute.xlu0 %3069 }
 0x9e8   :  { %v3071_v0 = vunpack.i.l.bf16 %v3070_v26  ;;  %v3072_v1 = vunpack.i.h.bf16 %v3070_v26 }
 0x9e9   :  { %v3229_v27 = vpop.eup %3228 }
 0x9ea   :  { %1122 = vmatpush.msra.mxu1 %v3071_v0  ;;  %v971_v29 = vmul.f32 %v3229_v27, %v3219_v53  ;;  %v3231_v33 = vpop.eup %3230  ;;  %v1406_v27 = vld [vmem:[%s4467_s22 + $0x38] sm:$0xff] }
 0x9eb   :  { %v1210_v58 = vmul.f32 %v3231_v33, %v3853_v52  ;;  %v1266_v52 = vld [vmem:[%s4463_s18 + $0x8] sm:$0xff]  ;;  %1426 = vmatpush.msra.mxu3 %v1406_v27 }
 0x9ec   :  { %2861 = vmatmul.msk.f32.gmra.mxu2 %vm90_vm0, %v971_v29  ;;  %1123 = vmatpush.msra.mxu1 %v3072_v1  ;;  %v1404_v29 = vld [vmem:[%s4467_s22 + $0x28] sm:$0xff] }
 0x9ed   :  { %1293 = vmatpush.msrb.mxu0 %v1266_v52  ;;  %1427 = vmatpush.msra.mxu3 %v1405_v28 }
 0x9ee   :  { %1124 = vmatpush.msra.mxu1 %v3076_v30 }
 0x9ef   :  { %1294 = vmatpush.msrb.mxu0 %v1265_v42  ;;  %1428 = vmatpush.msra.mxu3 %v1404_v29 }
 0x9f0   :  { %1125 = vmatpush.msra.mxu1 %v3077_v32 }
 0x9f2   :  { %1386 = vmatpush.msrb.mxu1 %v1363_v15 }
 0x9f4   :  { %2876 = vmatmul.msk.f32.vlgmr.msrb.gmra.mxu2 %vm90_vm0, %v1210_v58  ;;  %1387 = vmatpush.msrb.mxu1 %v1362_v16  ;;  %v1403_v58 = vld [vmem:[%s4467_s22 + $0x20] sm:$0xff] }
 0x9f5   :  { %1429 = vmatpush.msra.mxu3 %v1403_v58 }
 0xa33   :  { %v1007_v34 = vpop.f32.mrf.mxu2 }
 0xa34   :  { %1015 = vrot.lane.b32.xlu2 %v1007_v34, %s4541_s6 }
 0xa4c   :  { %v1084_v35 = vpop.xlane.xlu2 %1083 }
 0xa4d   :  { %3232 = vrcp.f32 %v1084_v35 }
 0xa53   :  { %v3233_v36 = vpop.eup %3232 }
 0xa54   :  { %v1090_v23 = vmul.f32 %v3233_v36, %v3223_v13  ;;  %v1087_v37 = vpop.xlane.xlu0 %1086  ;;  %v1207_v38 = vpop.xlane.xlu2 %1206  ;;  %v1402_v36 = vld [vmem:[%s4467_s22 + $0x18] sm:$0xff] }
 0xa55   :  { %3234 = vrcp.f32 %v1087_v37  ;;  %v3147_v37 = vld [vmem:[%s4544_s0] ss:$0 sm:$0xff]  ;;  %1430 = vmatpush.msra.mxu3 %v1402_v36  ;;  %v3151_v36 = vld [vmem:[%s4528_s5 + $0x1] ss:$0 sm:$0xff]  ;;  %s4552_s5 = sld [smem:[#allocation16_spill]] }
 0xa56   :  { %3236 = vrcp.f32 %v1207_v38  ;;  %2868 = vmatmul.msk.f32.vlgmr.msra.gmra.mxu1 %vm90_vm0, %v1090_v23 }
 0xa5b   :  { %v3235_v31 = vpop.eup %3234 }
 0xa5c   :  { %v3237_v39 = vpop.eup %3236  ;;  %v1091_v40 = vmul.f32 %v3235_v31, %v3227_v19  ;;  %v1360_v19 = vld [vmem:[%s4465_s20] sm:$0xff] }
 0xa5d   :  { %v1211_v41 = vmul.f32 %v3237_v39, %v3225_v17  ;;  %v1361_v17 = vld [vmem:[%s4465_s20 + $0x8] sm:$0xff]  ;;  %v3148_v39 = vld [vmem:[%s4454_s9] ss:$0 sm:$0xff]  ;;  %s4549_s9 = smov 48  }
 0xa5e   :  { %2869 = vmatmul.msk.f32.gmra.mxu1 %vm90_vm0, %v1091_v40 }
 0xa5f   :  { %2877 = vmatmul.msk.f32.gmra.mxu2 %vm90_vm0, %v1211_v41  ;;  %1388 = vmatpush.msrb.mxu1 %v1361_v17 }
 0xa61   :  { %1389 = vmatpush.msrb.mxu1 %v1360_v19  ;;  %v2889_v19 = vld [vmem:[%s4455_s10 + $0x38] sm:$0xff] }
 0xa62   :  { %1529 = vmatpush.msra.mxu2 %v2889_v19 }
 0xa6f   :  { %v1010_v43 = vpop.f32.mrf.mxu2 }
 0xa77   :  { %v1247_v44 = vpop.f32.mrf.mxu2 }
 0xa78   :  { %1255 = vrot.lane.b32.xlu1 %v1247_v44, %s4542_s25 }
 0xa8e   :  { %v1016_v45 = vpop.permute.xlu2 %1015 }
 0xa8f   :  { %1021 = vst.msk [vmem:[#allocation2] sm:$0xff] %vm395_vm10, %v1016_v45 }
 0xad3   :  { %v1127_v47 = vpop.f32.mrf.mxu1 }
 0xad4   :  { %1135 = vrot.lane.b32.xlu1 %v1127_v47, %s4543_s24 }
 0xadb   :  { %v1130_v48 = vpop.f32.mrf.mxu1 }
 0xadc   :  { %1137 = vrot.lane.b32.xlu2 %v1130_v48, %s4543_s24  ;;  %1017 = vrot.lane.b32.xlu1 %v1010_v43, %s4541_s6 }
 0xae2   :  { %v1250_v49 = vpop.f32.mrf.mxu2 }
 0xae4   :  { %1257 = vrot.lane.b32.xlu1 %v1250_v49, %s4542_s25 }
 0xaea   :  { %v1256_v53 = vpop.permute.xlu1 %1255 }
 0xb36   :  { %v1138_v57 = vpop.permute.xlu2 %1137 }
 0xb46   :  { %v1136_v54 = vpop.permute.xlu1 %1135 }
 0xb47   :  { %1141 = vst.msk [vmem:[#allocation2] sm:$0xff] %vm502_vm11, %v1136_v54  ;;  %v1400_v54 = vld [vmem:[%s4467_s22 + $0x8] sm:$0xff] }
 0xb48   :  { %1261 = vst.msk [vmem:[#allocation2] sm:$0xff] %vm609_vm12, %v1256_v53  ;;  %v1401_v53 = vld [vmem:[%s4467_s22 + $0x10] sm:$0xff] }
 0xb49   :  { %1431 = vmatpush.msra.mxu3 %v1401_v53 }
 0xb4b   :  { %1432 = vmatpush.msra.mxu3 %v1400_v54 }
 0xb4e   :  { %v1018_v55 = vpop.permute.xlu1 %1017 }
 0xb4f   :  { %1022 = vst.msk [vmem:[#allocation2 + $0x8] sm:$0xff] %vm395_vm10, %v1018_v55  ;;  %v1263_v59 = vld [vmem:[#allocation2] sm:$0xff] }
 0xb50   :  { %1142 = vst.msk [vmem:[#allocation2 + $0x8] sm:$0xff] %vm502_vm11, %v1138_v57  ;;  %2878 = vmatmul.msk.f32.vlgmr.msrb.gmra.mxu0 %vm90_vm0, %v1263_v59  ;;  %v1399_v55 = vld [vmem:[%s4467_s22] sm:$0xff] }
 0xb51   :  { %1433 = vmatpush.msra.mxu3 %v1399_v55  ;;  %v3149_v57 = vld [vmem:[%s4466_s21] ss:$0 sm:$0xff] }
 0xb56   :  { %v1258_v46 = vpop.permute.xlu1 %1257 }
 0xb57   :  { %1262 = vst.msk [vmem:[#allocation2 + $0x8] sm:$0xff] %vm609_vm12, %v1258_v46 }
 0xb5e   :  { %v1264_v56 = vld [vmem:[#allocation2 + $0x8] sm:$0xff] }
 0xb5f   :  { %2879 = vmatmul.msk.f32.gmra.mxu0 %vm90_vm0, %v1264_v56 }
 0xbcd   :  { %v1296_v61 = vpop.f32.mrf.mxu0 }
 0xbce   :  { %v1297_v62 = vadd.f32 %v3146_v60, %v1296_v61 }
 0xbd0   :  { %v3901_v63 = vadd.f32 %v1297_v62, %v3659_v18 }
 0xbd2   :  { %v1306_v2 = vsel %vm90_vm0, %v3901_v63, 0.0 }
 0xbd3   :  { %1307 = vadd.xlane.f32.xlu2 %v1306_v2  ;;  %v3150_v2 = vld [vmem:[%s4468_s23] ss:$0 sm:$0xff] }
 0xbdc   :  { %v1299_v3 = vpop.f32.mrf.mxu0 }
 0xbdd   :  { %v1300_v4 = vadd.f32 %v3146_v60, %v1299_v3 }
 0xbdf   :  { %v3906_v5 = vadd.f32 %v1300_v4, %v3664_v22 }
 0xbe1   :  { %v1309_v6 = vsel %vm90_vm0, %v3906_v5, 0.0 }
 0xbe2   :  { %1310 = vadd.xlane.f32.xlu1 %v1309_v6 }
 0xc46   :  { %v1308_v21 = vpop.xlane.xlu2 %1307 }
 0xc47   :  { %v1312_v7 = vmul.f32 %v1308_v21, %v3508_v10 }
 0xc49   :  { %v1314_v8 = vsub.f32 %v3901_v63, %v1312_v7 }
 0xc4b   :  { %v1316_v18 = vmul.f32 %v1314_v8, %v1314_v8 }
 0xc4d   :  { %v1318_v9 = vsel %vm90_vm0, %v1316_v18, 0.0 }
 0xc4e   :  { %1319 = vadd.xlane.f32.xlu0 %v1318_v9 }
 0xc55   :  { %v1311_v11 = vpop.xlane.xlu1 %1310 }
 0xc56   :  { %v1313_v12 = vmul.f32 %v1311_v11, %v3508_v10 }
 0xc58   :  { %v1315_v13 = vsub.f32 %v3906_v5, %v1313_v12 }
 0xc5a   :  { %v1317_v22 = vmul.f32 %v1315_v13, %v1315_v13 }
 0xc5c   :  { %v1321_v14 = vsel %vm90_vm0, %v1317_v22, 0.0 }
 0xc5d   :  { %1322 = vadd.xlane.f32.xlu0 %v1321_v14 }
 0xcc1   :  { %v1320_v20 = vpop.xlane.xlu0 %1319 }
 0xcc2   :  { %v1324_v24 = vmul.f32 %v1320_v20, %v3508_v10  ;;  %v2888_v20 = vld [vmem:[%s4455_s10 + $0x30] sm:$0xff] }
 0xcc3   :  { %1530 = vmatpush.msra.mxu2 %v2888_v20  ;;  %v3319_v20 = vld [vmem:[%s4530_s26 + $0x8] sm:$0xff] }
 0xcc4   :  { %v1326_v25 = vadd.f32 1e-05, %v1324_v24  ;;  %v2887_v24 = vld [vmem:[%s4455_s10 + $0x28] sm:$0xff] }
 0xcc5   :  { %1531 = vmatpush.msra.mxu2 %v2887_v24 }
 0xcc6   :  { %3238 = vrsqrt.f32 %v1326_v25  ;;  %vm1334_vm5 = vweird.f32 %v1326_v25 }
 0xccc   :  { %v3239_v26 = vpop.eup %3238 }
 0xccd   :  { %v1329_v0 = vmul.f32 %v3239_v26, %v1326_v25  ;;  %vm1335_vm4 = vweird.f32 %v3239_v26  ;;  %v2886_v25 = vld [vmem:[%s4455_s10 + $0x20] sm:$0xff]  ;;  %s4548_s10 = smov 40  }
 0xcce   :  { %vm1336_vm6 = vmor %vm1334_vm5, %vm1335_vm4  ;;  %1532 = vmatpush.msra.mxu2 %v2886_v25 }
 0xccf   :  { %v1330_v1 = vmul.f32 %v3239_v26, %v1329_v0 }
 0xcd0   :  { %v1323_v30 = vpop.xlane.xlu0 %1322 }
 0xcd1   :  { %v1331_v32 = vmul.f32 0.5, %v1330_v1  ;;  %v1325_v33 = vmul.f32 %v1323_v30, %v3508_v10 }
 0xcd3   :  { %v1332_v34 = vsub.f32 1.5, %v1331_v32  ;;  %v1327_v35 = vadd.f32 1e-05, %v1325_v33 }
 0xcd5   :  { %v1333_v23 = vmul.f32 %v3239_v26, %v1332_v34  ;;  %3240 = vrsqrt.f32 %v1327_v35  ;;  %vm1344_vm13 = vweird.f32 %v1327_v35 }
 0xcd7   :  { %v1337_v38 = vsel %vm1336_vm6, %v3239_v26, %v1333_v23 }
 0xcd8   :  { %v1348_v31 = vmul.f32 %v1337_v38, %v1314_v8  ;;  %v3152_v38 = vld [vmem:[%s4529_s28 + $0x1] ss:$0 sm:$0xff]  ;;  %s4555_s28 = sld [smem:[#allocation19_spill]] }
 0xcda   :  { %v1353_v40 = vmul.f32 %v3147_v37, %v1348_v31 }
 0xcdb   :  { %v3241_v41 = vpop.eup %3240 }
 0xcdc   :  { %v1339_v43 = vmul.f32 %v3241_v41, %v1327_v35  ;;  %v1358_v44 = vadd.f32 %v3148_v39, %v1353_v40  ;;  %vm1345_vm7 = vweird.f32 %v3241_v41 }
 0xcdd   :  { %vm1346_vm14 = vmor %vm1344_vm13, %vm1345_vm7 }
 0xcde   :  { %v1340_v45 = vmul.f32 %v3241_v41, %v1339_v43  ;;  %2880 = vmatmul.msk.f32.vlgmr.msrb.gmra.mxu1 %vm90_vm0, %v1358_v44 }
 0xce0   :  { %v1341_v47 = vmul.f32 0.5, %v1340_v45 }
 0xce2   :  { %v1342_v48 = vsub.f32 1.5, %v1341_v47 }
 0xce4   :  { %v1343_v49 = vmul.f32 %v3241_v41, %v1342_v48 }
 0xce6   :  { %v1347_v50 = vsel %vm1346_vm14, %v3241_v41, %v1343_v49 }
 0xce7   :  { %v1349_v51 = vmul.f32 %v1347_v50, %v1315_v13 }
 0xce9   :  { %v1354_v52 = vmul.f32 %v3147_v37, %v1349_v51 }
 0xceb   :  { %v1359_v42 = vadd.f32 %v3148_v39, %v1354_v52  ;;  %v3153_v52 = vld [vmem:[%s4456_s11 + $0x1] ss:$0 sm:$0xff] }
 0xced   :  { %2881 = vmatmul.msk.f32.gmra.mxu1 %vm90_vm0, %v1359_v42 }
 0xd5b   :  { %v1391_v59 = vpop.f32.mrf.mxu1 }
 0xd5c   :  { %v1392_v46 = vadd.f32 %v3149_v57, %v1391_v59 }
 0xd5e   :  { %v1397_v56 = vmax.f32 %v1392_v46, 0.0 }
 0xd60   :  { %2882 = vmatmul.msk.f32.vlgmr.msra.gmra.mxu3 %vm1411_vm15, %v1397_v56 }
 0xd6a   :  { %v1394_v60 = vpop.f32.mrf.mxu1 }
 0xd6b   :  { %v1395_v61 = vadd.f32 %v3149_v57, %v1394_v60 }
 0xd6d   :  { %v1398_v62 = vmax.f32 %v1395_v61, 0.0 }
 0xd6f   :  { %2883 = vmatmul.msk.f32.gmra.mxu3 %vm1411_vm15, %v1398_v62 }
 0xde3   :  { %v1435_v3 = vpop.f32.mrf.mxu3 }
 0xde4   :  { %v1436_v4 = vadd.f32 %v3150_v2, %v1435_v3 }
 0xde6   :  { %v3971_v6 = vadd.f32 %v1436_v4, %v3901_v63 }
 0xde8   :  { %v1447_v21 = vsel %vm90_vm0, %v3971_v6, 0.0 }
 0xde9   :  { %1448 = vadd.xlane.f32.xlu0 %v1447_v21 }
 0xdf2   :  { %v1438_v7 = vpop.f32.mrf.mxu3 }
 0xdf3   :  { %v1439_v8 = vadd.f32 %v3150_v2, %v1438_v7 }
 0xdf5   :  { %v3976_v18 = vadd.f32 %v1439_v8, %v3906_v5 }
 0xdf7   :  { %v1450_v9 = vsel %vm90_vm0, %v3976_v18, 0.0 }
 0xdf8   :  { %1451 = vadd.xlane.f32.xlu0 %v1450_v9 }
 0xe5c   :  { %v1449_v11 = vpop.xlane.xlu0 %1448 }
 0xe5d   :  { %v1453_v12 = vmul.f32 %v1449_v11, %v3508_v10 }
 0xe5f   :  { %v1455_v13 = vsub.f32 %v3971_v6, %v1453_v12 }
 0xe61   :  { %v1457_v63 = vmul.f32 %v1455_v13, %v1455_v13 }
 0xe63   :  { %v1459_v22 = vsel %vm90_vm0, %v1457_v63, 0.0 }
 0xe64   :  { %1460 = vadd.xlane.f32.xlu0 %v1459_v22  ;;  %v3318_v22 = vld [vmem:[%s4530_s26] sm:$0xff]  ;;  %s4546_s26 = smov 56  }
 0xe6b   :  { %v1452_v14 = vpop.xlane.xlu0 %1451 }
 0xe6c   :  { %v1454_v15 = vmul.f32 %v1452_v14, %v3508_v10 }
 0xe6e   :  { %v1456_v16 = vsub.f32 %v3976_v18, %v1454_v15 }
 0xe70   :  { %v1458_v5 = vmul.f32 %v1456_v16, %v1456_v16 }
 0xe72   :  { %v1462_v17 = vsel %vm90_vm0, %v1458_v5, 0.0 }
 0xe73   :  { %1463 = vadd.xlane.f32.xlu2 %v1462_v17 }
 0xed7   :  { %v1461_v26 = vpop.xlane.xlu0 %1460 }
 0xed8   :  { %v1465_v0 = vmul.f32 %v1461_v26, %v3508_v10 }
 0xeda   :  { %v1467_v27 = vadd.f32 1e-05, %v1465_v0 }
 0xedc   :  { %3242 = vrsqrt.f32 %v1467_v27  ;;  %vm1475_vm2 = vweird.f32 %v1467_v27 }
 0xee2   :  { %v3243_v28 = vpop.eup %3242 }
 0xee3   :  { %v1470_v1 = vmul.f32 %v3243_v28, %v1467_v27  ;;  %vm1476_vm1 = vweird.f32 %v3243_v28 }
 0xee4   :  { %vm1477_vm3 = vmor %vm1475_vm2, %vm1476_vm1 }
 0xee5   :  { %v1471_v29 = vmul.f32 %v3243_v28, %v1470_v1 }
 0xee6   :  { %v1464_v30 = vpop.xlane.xlu2 %1463 }
 0xee7   :  { %v1472_v32 = vmul.f32 0.5, %v1471_v29  ;;  %v1466_v33 = vmul.f32 %v1464_v30, %v3508_v10 }
 0xee9   :  { %v1473_v58 = vsub.f32 1.5, %v1472_v32  ;;  %v1468_v34 = vadd.f32 1e-05, %v1466_v33 }
 0xeeb   :  { %v1474_v35 = vmul.f32 %v3243_v28, %v1473_v58  ;;  %3244 = vrsqrt.f32 %v1468_v34  ;;  %vm1485_vm5 = vweird.f32 %v1468_v34 }
 0xeed   :  { %v1478_v23 = vsel %vm1477_vm3, %v3243_v28, %v1474_v35 }
 0xeee   :  { %v1489_v37 = vmul.f32 %v1478_v23, %v1455_v13 }
 0xef0   :  { %v1494_v31 = vmul.f32 %v3151_v36, %v1489_v37 }
 0xef1   :  { %v3245_v39 = vpop.eup %3244 }
 0xef2   :  { %v1480_v40 = vmul.f32 %v3245_v39, %v1468_v34  ;;  %v1499_v41 = vadd.f32 %v3152_v38, %v1494_v31  ;;  %vm1486_vm4 = vweird.f32 %v3245_v39 }
 0xef3   :  { %vm1487_vm6 = vmor %vm1485_vm5, %vm1486_vm4 }
 0xef4   :  { %v1481_v43 = vmul.f32 %v3245_v39, %v1480_v40  ;;  %2891 = vmatmul.msk.f32.vlgmr.msra.gmra.mxu2 %vm90_vm0, %v1499_v41 }
 0xef6   :  { %v1482_v44 = vmul.f32 0.5, %v1481_v43 }
 0xef8   :  { %v1483_v45 = vsub.f32 1.5, %v1482_v44 }
 0xefa   :  { %v1484_v47 = vmul.f32 %v3245_v39, %v1483_v45 }
 0xefc   :  { %v1488_v48 = vsel %vm1487_vm6, %v3245_v39, %v1484_v47 }
 0xefd   :  { %v1490_v49 = vmul.f32 %v1488_v48, %v1456_v16 }
 0xeff   :  { %v1495_v50 = vmul.f32 %v3151_v36, %v1490_v49 }
 0xf01   :  { %v1500_v51 = vadd.f32 %v3152_v38, %v1495_v50 }
 0xf03   :  { %2892 = vmatmul.msk.f32.gmra.mxu2 %vm90_vm0, %v1500_v51 }
 0xf77   :  { %v1534_v42 = vpop.f32.mrf.mxu2 }
 0xf78   :  { %v1535_v53 = vadd.f32 %v3153_v52, %v1534_v42 }
 0xf7a   :  { %1644 = vrot.lane.b32.xlu0 %v1535_v53, %s4538_s29  ;;  %v1540_v54 = vmul.f32 0.35355338, %v1535_v53 }
 0xf7c   :  { %1640 = vrot.lane.b32.xlu2 %v1540_v54, %s4545_s27 }
 0xf86   :  { %v1537_v55 = vpop.f32.mrf.mxu2 }
 0xf87   :  { %v1538_v57 = vadd.f32 %v3153_v52, %v1537_v55 }
 0xf89   :  { %1646 = vrot.lane.b32.xlu1 %v1538_v57, %s4538_s29  ;;  %1546 = vrot.lane.b32.xlu0 %v1538_v57, %s4536_s7  ;;  %v1541_v59 = vmul.f32 0.35355338, %v1538_v57  ;;  %v4015_v46 = vpack.i.bf16 %v1535_v53, %v1538_v57 }
 0xf8b   :  { %1642 = vrot.lane.b32.xlu2 %v1541_v59, %s4545_s27 }
 0xf91   :  { %1544 = vrot.lane.b32.xlu1 %v1535_v53, %s4536_s7  ;;  %1858 = vrot.lane.b32.xlu0 %v1538_v57, %s4539_s3 }
 0xf93   :  { %1852 = vrot.lane.b32.xlu2 %v1540_v54, %s4534_s4 }
 0xf99   :  { %1856 = vrot.lane.b32.xlu1 %v1535_v53, %s4539_s3  ;;  %1752 = vrot.lane.b32.xlu0 %v1538_v57, %s4540_s30 }
 0xf9b   :  { %1854 = vrot.lane.b32.xlu2 %v1541_v59, %s4534_s4 }
 0xfa1   :  { %1750 = vrot.lane.b32.xlu1 %v1535_v53, %s4540_s30  ;;  %1746 = vrot.lane.b32.xlu0 %v1540_v54, %s4535_s1 }
 0xfa9   :  { %1748 = vrot.lane.b32.xlu1 %v1541_v59, %s4535_s1 }
 0xfd6   :  { %v1641_v62 = vpop.permute.xlu2 %1640 }
 0xfe5   :  { %v1643_v4 = vpop.permute.xlu2 %1642 }
 0xfec   :  { %v1645_v56 = vpop.permute.xlu0 %1644 }
 0xfed   :  { %v1853_v8 = vpop.permute.xlu2 %1852 }
 0xff5   :  { %v1855_v12 = vpop.permute.xlu2 %1854 }
 0xffb   :  { %v1647_v60 = vpop.permute.xlu1 %1646  ;;  %v1547_v61 = vpop.permute.xlu0 %1546 }
 0xffc   :  { %2893 = vmatpush.xpose.msk.msra.mxu0 %vm197_vm8, %v1547_v61  ;;  %2899 = vmatpush.xpose.msk.msrb.mxu3 %vm197_vm8, %v1647_v60 }
0x1000   :  { %2900 = vmatpush.xpose.msk.msrb.mxu3 %vm197_vm8, %v1645_v56 }
0x1003   :  { %v1545_v2 = vpop.permute.xlu1 %1544  ;;  %v1859_v3 = vpop.permute.xlu0 %1858  ;;  %2901 = vmatmul.msk.f32.vlgmr.msrb.gmra.mxu3 %vm197_vm8, %v1641_v62 }
0x1004   :  { %2894 = vmatpush.xpose.msk.msra.mxu0 %vm197_vm8, %v1545_v2  ;;  %2911 = vmatpush.xpose.msk.msra.mxu3 %vm197_vm8, %v1859_v3 }
0x1007   :  { %2895 = vmatmul.msk.f32.vlgmr.msra.gmra.mxu0 %vm197_vm8, %v1540_v54 }
0x100b   :  { %v1857_v21 = vpop.permute.xlu1 %1856  ;;  %v1753_v7 = vpop.permute.xlu0 %1752  ;;  %2902 = vmatmul.msk.f32.gmra.mxu3 %vm197_vm8, %v1643_v4 }
0x100c   :  { %2905 = vmatpush.xpose.msk.msrb.mxu0 %vm197_vm8, %v1753_v7  ;;  %2912 = vmatpush.xpose.msk.msra.mxu3 %vm197_vm8, %v1857_v21 }
0x100f   :  { %2896 = vmatmul.msk.f32.gmra.mxu0 %vm197_vm8, %v1541_v59 }
0x1013   :  { %v1751_v9 = vpop.permute.xlu1 %1750  ;;  %2913 = vmatmul.msk.f32.vlgmr.msra.gmra.mxu3 %vm197_vm8, %v1853_v8  ;;  %v1747_v11 = vpop.permute.xlu0 %1746 }
0x1014   :  { %2906 = vmatpush.xpose.msk.msrb.mxu0 %vm197_vm8, %v1751_v9 }
0x1017   :  { %2907 = vmatmul.msk.f32.vlgmr.msrb.gmra.mxu0 %vm197_vm8, %v1747_v11 }
0x101b   :  { %2914 = vmatmul.msk.f32.gmra.mxu3 %vm197_vm8, %v1855_v12  ;;  %v1749_v13 = vpop.permute.xlu1 %1748 }
0x101f   :  { %2908 = vmatmul.msk.f32.gmra.mxu0 %vm197_vm8, %v1749_v13 }
0x1084   :  { %v1575_v63 = vpop.f32.mrf.mxu0 }
0x1085   :  { %v1576_v14 = vadd.f32 %v3318_v22, %v1575_v63 }
0x1086   :  { %v1673_v15 = vpop.f32.mrf.mxu3 }
0x1087   :  { %v1674_v16 = vadd.f32 %v3318_v22, %v1673_v15  ;;  %v1581_v5 = vsel %vm231_vm9, %v1576_v14, -inf }
0x1088   :  { %1582 = vmax.xlane.f32.xlu0 %v1581_v5 }
0x1089   :  { %v1679_v17 = vsel %vm231_vm9, %v1674_v16, -inf }
0x108a   :  { %1680 = vmax.xlane.f32.xlu2 %v1679_v17 }
0x108c   :  { %v1578_v19 = vpop.f32.mrf.mxu0 }
0x108d   :  { %v1579_v24 = vadd.f32 %v3319_v20, %v1578_v19 }
0x108e   :  { %v1676_v25 = vpop.f32.mrf.mxu3 }
0x108f   :  { %v1677_v26 = vadd.f32 %v3319_v20, %v1676_v25  ;;  %v1584_v27 = vsel %vm231_vm9, %v1579_v24, -inf }
0x1091   :  { %v1682_v0 = vsel %vm231_vm9, %v1677_v26, -inf }
0x1092   :  { %1683 = vmax.xlane.f32.xlu1 %v1682_v0  ;;  %1585 = vmax.xlane.f32.xlu2 %v1584_v27 }
0x1094   :  { %v1779_v28 = vpop.f32.mrf.mxu0 }
0x1095   :  { %v1780_v1 = vadd.f32 %v3318_v22, %v1779_v28 }
0x1096   :  { %v1885_v29 = vpop.f32.mrf.mxu3 }
0x1097   :  { %v4053_v30 = vadd.f32 %v3318_v22, %v1885_v29  ;;  %v1785_v32 = vsel %vm231_vm9, %v1780_v1, -inf }
0x1099   :  { %v1891_v33 = vsel %vm231_vm9, %v4053_v30, -inf }
0x109a   :  { %1786 = vmax.xlane.f32.xlu1 %v1785_v32  ;;  %1892 = vmax.xlane.f32.xlu0 %v1891_v33 }
0x109c   :  { %v1782_v58 = vpop.f32.mrf.mxu0 }
0x109d   :  { %v4058_v34 = vadd.f32 %v3319_v20, %v1782_v58 }
0x109e   :  { %v1888_v35 = vpop.f32.mrf.mxu3 }
0x109f   :  { %v1889_v36 = vadd.f32 %v3319_v20, %v1888_v35  ;;  %v1788_v37 = vsel %vm231_vm9, %v4058_v34, -inf }
0x10a1   :  { %v1894_v23 = vsel %vm231_vm9, %v1889_v36, -inf }
0x10a2   :  { %1895 = vmax.xlane.f32.xlu2 %v1894_v23  ;;  %1789 = vmax.xlane.f32.xlu0 %v1788_v37 }
0x10b6   :  { %3079 = vrot.lane.b32.xlu0 %v4015_v46, %s4546_s26 }
0x10fb   :  { %v1583_v38 = vpop.xlane.xlu0 %1582 }
0x10fc   :  { %v1587_v31 = vsub.f32 %v1576_v14, %v1583_v38 }
0x10fd   :  { %v1681_v39 = vpop.xlane.xlu2 %1680 }
0x10fe   :  { %v1589_v40 = vmul.f32 1.442695, %v1587_v31  ;;  %v1685_v41 = vsub.f32 %v1674_v16, %v1681_v39 }
0x1100   :  { %3246 = vpow2.f32 %v1589_v40  ;;  %v1687_v43 = vmul.f32 1.442695, %v1685_v41 }
0x1102   :  { %3248 = vpow2.f32 %v1687_v43 }
0x1105   :  { %v1684_v44 = vpop.xlane.xlu1 %1683  ;;  %v1586_v45 = vpop.xlane.xlu2 %1585 }
0x1106   :  { %v3247_v47 = vpop.eup %3246  ;;  %v1588_v48 = vsub.f32 %v1579_v24, %v1586_v45  ;;  %v1686_v52 = vsub.f32 %v1677_v26, %v1684_v44 }
0x1107   :  { %v1593_v49 = vsel %vm231_vm9, %v3247_v47, 0.0 }
0x1108   :  { %v3249_v50 = vpop.eup %3248  ;;  %v1591_v51 = vmul.f32 1.442695, %v1588_v48  ;;  %1594 = vadd.xlane.f32.xlu2 %v1593_v49  ;;  %v1689_v53 = vmul.f32 1.442695, %v1686_v52 }
0x1109   :  { %v1691_v42 = vsel %vm231_vm9, %v3249_v50, 0.0 }
0x110a   :  { %1692 = vadd.xlane.f32.xlu1 %v1691_v42  ;;  %3250 = vpow2.f32 %v1591_v51 }
0x110b   :  { %3252 = vpow2.f32 %v1689_v53 }
0x110d   :  { %v1787_v54 = vpop.xlane.xlu1 %1786  ;;  %v1893_v60 = vpop.xlane.xlu0 %1892 }
0x110e   :  { %v1791_v55 = vsub.f32 %v1780_v1, %v1787_v54  ;;  %v1897_v22 = vsub.f32 %v4053_v30, %v1893_v60 }
0x1110   :  { %v1793_v57 = vmul.f32 1.442695, %v1791_v55  ;;  %v3251_v59 = vpop.eup %3250  ;;  %v1899_v14 = vmul.f32 1.442695, %v1897_v22  ;;  %v3154_v22 = vld [vmem:[%s4458_s13 + $0x1] ss:$0 sm:$0xff] }
0x1111   :  { %v1596_v56 = vsel %vm231_vm9, %v3251_v59, 0.0  ;;  %v3253_v61 = vpop.eup %3252 }
0x1112   :  { %3254 = vpow2.f32 %v1793_v57  ;;  %1597 = vadd.xlane.f32.xlu1 %v1596_v56  ;;  %v1694_v3 = vsel %vm231_vm9, %v3253_v61, 0.0 }
0x1115   :  { %v1790_v4 = vpop.xlane.xlu0 %1789  ;;  %v1896_v9 = vpop.xlane.xlu2 %1895 }
0x1116   :  { %v1898_v11 = vsub.f32 %v1889_v36, %v1896_v9  ;;  %v1792_v29 = vsub.f32 %v4058_v34, %v1790_v4  ;;  %v2919_v4 = vld [vmem:[%s4457_s12 + $0x30] sm:$0xff] }
0x1118   :  { %v4068_v62 = vpop.eup %3254  ;;  %v1901_v12 = vmul.f32 1.442695, %v1898_v11  ;;  %v1795_v32 = vmul.f32 1.442695, %v1792_v29  ;;  %v3320_v29 = vld [vmem:[%s4551_s15] sm:$0xff] }
0x1119   :  { %v1797_v2 = vsel %vm231_vm9, %v4068_v62, 0.0 }
0x111a   :  { %1798 = vadd.xlane.f32.xlu0 %v1797_v2  ;;  %1695 = vadd.xlane.f32.xlu1 %v1694_v3  ;;  %3256 = vpow2.f32 %v1901_v12  ;;  %v2920_v3 = vld [vmem:[%s4457_s12 + $0x38] sm:$0xff] }
0x111b   :  { %3258 = vpow2.f32 %v1899_v14  ;;  %1988 = vmatpush.msra.mxu0 %v2920_v3 }
0x111d   :  { %1989 = vmatpush.msra.mxu0 %v2919_v4 }
0x1120   :  { %3084 = vrot.lane.b32.xlu2 %v4015_v46, %s4547_s16  ;;  %v3257_v13 = vpop.eup %3256  ;;  %s4553_s16 = sld [smem:[#allocation12_spill]] }
0x1121   :  { %v1906_v63 = vsel %vm231_vm9, %v3257_v13, 0.0  ;;  %v3259_v15 = vpop.eup %3258 }
0x1122   :  { %v1903_v16 = vsel %vm231_vm9, %v3259_v15, 0.0 }
0x1128   :  { %v3080_v21 = vpop.permute.xlu0 %3079 }
0x1129   :  { %v3081_v7 = vunpack.i.l.bf16 %v3080_v21  ;;  %v3082_v8 = vunpack.i.h.bf16 %v3080_v21  ;;  %v2918_v21 = vld [vmem:[%s4457_s12 + $0x28] sm:$0xff] }
0x112a   :  { %1990 = vmatpush.msra.mxu0 %v2918_v21 }
0x112b   :  { %1727 = vmatpush.msrb.mxu2 %v3081_v7  ;;  %v2917_v7 = vld [vmem:[%s4457_s12 + $0x20] sm:$0xff] }
0x112c   :  { %1991 = vmatpush.msra.mxu0 %v2917_v7 }
0x112d   :  { %1728 = vmatpush.msrb.mxu2 %v3082_v8 }
0x1133   :  { %3089 = vrot.lane.b32.xlu1 %v4015_v46, %s4548_s10  ;;  %s4550_s10 = sld [smem:[#allocation18_spill]] }
0x1149   :  { %1907 = vadd.xlane.f32.xlu2 %v1906_v63 }
0x115d   :  { %1904 = vadd.xlane.f32.xlu1 %v1903_v16 }
0x1176   :  { %3094 = vrot.lane.b32.xlu1 %v4015_v46, %s4549_s9 }
0x117b   :  { %v1595_v5 = vpop.xlane.xlu2 %1594 }
0x117c   :  { %3260 = vrcp.f32 %v1595_v5 }
0x117d   :  { %v1693_v17 = vpop.xlane.xlu1 %1692 }
0x117e   :  { %3262 = vrcp.f32 %v1693_v17 }
0x1182   :  { %v3261_v19 = vpop.eup %3260 }
0x1183   :  { %v3085_v20 = vpop.permute.xlu2 %3084  ;;  %v1601_v28 = vmul.f32 %v3261_v19, %v3247_v47 }
0x1184   :  { %v3263_v24 = vpop.eup %3262  ;;  %v3086_v25 = vunpack.i.l.bf16 %v3085_v20  ;;  %v3087_v0 = vunpack.i.h.bf16 %v3085_v20 }
0x1185   :  { %v1699_v26 = vmul.f32 %v3263_v24, %v3249_v50  ;;  %v1598_v27 = vpop.xlane.xlu1 %1597 }
0x1186   :  { %1629 = vmatpush.msra.mxu1 %v3086_v25  ;;  %3264 = vrcp.f32 %v1598_v27 }
0x1187   :  { %2903 = vmatmul.msk.f32.vlgmr.msrb.gmra.mxu2 %vm231_vm9, %v1699_v26 }
0x1188   :  { %1630 = vmatpush.msra.mxu1 %v3087_v0 }
0x1189   :  { %2897 = vmatmul.msk.f32.vlgmr.msra.gmra.mxu1 %vm231_vm9, %v1601_v28  ;;  %v2936_v28 = vld [vmem:[%s4550_s10 + $0x38] sm:$0xff] }
0x118a   :  { %2120 = vmatpush.msrb.mxu3 %v2936_v28 }
0x118c   :  { %v3265_v46 = vpop.eup %3264 }
0x118d   :  { %v1696_v1 = vpop.xlane.xlu1 %1695  ;;  %v1602_v30 = vmul.f32 %v3265_v46, %v3251_v59  ;;  %v1799_v43 = vpop.xlane.xlu0 %1798  ;;  %v2934_v46 = vld [vmem:[%s4550_s10 + $0x28] sm:$0xff] }
0x118e   :  { %3266 = vrcp.f32 %v1696_v1  ;;  %v2933_v1 = vld [vmem:[%s4550_s10 + $0x20] sm:$0xff] }
0x118f   :  { %3268 = vpow2.f32 %v1795_v32 }
0x1191   :  { %2898 = vmatmul.msk.f32.gmra.mxu1 %vm231_vm9, %v1602_v30  ;;  %v3321_v30 = vld [vmem:[%s4551_s15 + $0x8] sm:$0xff] }
0x1194   :  { %v3267_v33 = vpop.eup %3266 }
0x1195   :  { %v1700_v58 = vmul.f32 %v3267_v33, %v3253_v61  ;;  %v3269_v35 = vpop.eup %3268  ;;  %v3322_v33 = vld [vmem:[%s4551_s15 + $0x10] sm:$0xff] }
0x1196   :  { %v1800_v36 = vsel %vm231_vm9, %v3269_v35, 0.0 }
0x1197   :  { %2904 = vmatmul.msk.f32.gmra.mxu2 %vm231_vm9, %v1700_v58 }
0x11a0   :  { %1801 = vadd.xlane.f32.xlu1 %v1800_v36 }
0x11a5   :  { %v3090_v23 = vpop.permute.xlu1 %3089 }
0x11a6   :  { %v3091_v37 = vunpack.i.l.bf16 %v3090_v23  ;;  %v3092_v38 = vunpack.i.h.bf16 %v3090_v23 }
0x11a8   :  { %1939 = vmatpush.msra.mxu2 %v3091_v37  ;;  %v3323_v37 = vld [vmem:[%s4551_s15 + $0x18] sm:$0xff] }
0x11aa   :  { %1940 = vmatpush.msra.mxu2 %v3092_v38  ;;  %v2929_v38 = vld [vmem:[%s4552_s5 + $0x38] sm:$0xff] }
0x11bc   :  { %v1908_v31 = vpop.xlane.xlu2 %1907 }
0x11d0   :  { %v1905_v34 = vpop.xlane.xlu1 %1904 }
0x11d1   :  { %3270 = vrcp.f32 %v1905_v34  ;;  %v2928_v34 = vld [vmem:[%s4552_s5 + $0x30] sm:$0xff] }
0x11d2   :  { %3272 = vrcp.f32 %v1908_v31  ;;  %v2927_v31 = vld [vmem:[%s4552_s5 + $0x28] sm:$0xff] }
0x11d3   :  { %3274 = vrcp.f32 %v1799_v43 }
0x11d7   :  { %v3271_v39 = vpop.eup %3270 }
0x11d8   :  { %v1911_v40 = vmul.f32 %v3271_v39, %v3259_v15  ;;  %v3273_v41 = vpop.eup %3272  ;;  %v2926_v39 = vld [vmem:[%s4552_s5 + $0x20] sm:$0xff] }
0x11d9   :  { %v1912_v44 = vmul.f32 %v3273_v41, %v3257_v13  ;;  %v3275_v47 = vpop.eup %3274 }
0x11da   :  { %2915 = vmatmul.msk.f32.vlgmr.msra.gmra.mxu2 %vm231_vm9, %v1911_v40  ;;  %v1805_v50 = vmul.f32 %v3275_v47, %v4068_v62 }
0x11e2   :  { %2916 = vmatmul.msk.f32.gmra.mxu2 %vm231_vm9, %v1912_v44 }
0x11e8   :  { %v3095_v45 = vpop.permute.xlu1 %3094 }
0x11e9   :  { %v3096_v48 = vunpack.i.l.bf16 %v3095_v45  ;;  %v3097_v49 = vunpack.i.h.bf16 %v3095_v45 }
0x11eb   :  { %1833 = vmatpush.msrb.mxu1 %v3096_v48 }
0x11ed   :  { %1834 = vmatpush.msrb.mxu1 %v3097_v49 }
0x11ee   :  { %2909 = vmatmul.msk.f32.vlgmr.msrb.gmra.mxu1 %vm231_vm9, %v1805_v50 }
0x11ef   :  { %2087 = vmatpush.msra.mxu1 %v2929_v38 }
0x11f1   :  { %2088 = vmatpush.msra.mxu1 %v2928_v34 }
0x11f3   :  { %2089 = vmatpush.msra.mxu1 %v2927_v31 }
0x11f5   :  { %2090 = vmatpush.msra.mxu1 %v2926_v39 }
0x1206   :  { %v1632_v51 = vpop.f32.mrf.mxu1 }
0x1207   :  { %1638 = vst.msk [vmem:[#allocation2] sm:$0xff] %vm197_vm8, %v1632_v51  ;;  %v3155_v51 = vld [vmem:[%s4553_s16 + $0x1] ss:$0 sm:$0xff]  ;;  %s4558_s16 = sld [smem:[#allocation15_spill]] }
0x120a   :  { %v1730_v52 = vpop.f32.mrf.mxu2 }
0x120b   :  { %1738 = vrot.lane.b32.xlu0 %v1730_v52, %s4541_s6 }
0x120e   :  { %v1635_v42 = vpop.f32.mrf.mxu1 }
0x120f   :  { %1639 = vst.msk [vmem:[#allocation2 + $0x8] sm:$0xff] %vm197_vm8, %v1635_v42 }
0x1213   :  { %v1802_v53 = vpop.xlane.xlu1 %1801 }
0x1214   :  { %3276 = vrcp.f32 %v1802_v53  ;;  %v3156_v53 = vld [vmem:[%s4554_s17 + $0x1] ss:$0 sm:$0xff] }
0x121a   :  { %v3277_v54 = vpop.eup %3276  ;;  %v1733_v55 = vpop.f32.mrf.mxu2 }
0x121b   :  { %1740 = vrot.lane.b32.xlu0 %v1733_v55, %s4541_s6  ;;  %v1806_v57 = vmul.f32 %v3277_v54, %v3269_v35 }
0x121d   :  { %2910 = vmatmul.msk.f32.gmra.mxu1 %vm231_vm9, %v1806_v57 }
0x125d   :  { %v1942_v59 = vpop.f32.mrf.mxu2 }
0x125e   :  { %1950 = vrot.lane.b32.xlu0 %v1942_v59, %s4542_s25 }
0x1265   :  { %v1945_v56 = vpop.f32.mrf.mxu2 }
0x1266   :  { %1952 = vrot.lane.b32.xlu0 %v1945_v56, %s4542_s25 }
0x126b   :  { %v1836_v60 = vpop.f32.mrf.mxu1 }
0x126c   :  { %1844 = vrot.lane.b32.xlu2 %v1836_v60, %s4543_s24  ;;  %v3157_v60 = vld [vmem:[%s4555_s28 + $0x1] ss:$0 sm:$0xff] }
0x127d   :  { %v1739_v61 = vpop.permute.xlu0 %1738 }
0x127e   :  { %1744 = vst.msk [vmem:[#allocation2] sm:$0xff] %vm395_vm10, %v1739_v61 }
0x128d   :  { %v1741_v62 = vpop.permute.xlu0 %1740 }
0x128e   :  { %1745 = vst.msk [vmem:[#allocation2 + $0x8] sm:$0xff] %vm395_vm10, %v1741_v62 }
0x129a   :  { %v1839_v2 = vpop.f32.mrf.mxu1 }
0x129b   :  { %1846 = vrot.lane.b32.xlu2 %v1839_v2, %s4543_s24 }
0x12c6   :  { %v1845_v8 = vpop.permute.xlu2 %1844 }
0x12c7   :  { %1850 = vst.msk [vmem:[#allocation2] sm:$0xff] %vm502_vm11, %v1845_v8 }
0x12d0   :  { %v1951_v9 = vpop.permute.xlu0 %1950 }
0x12d1   :  { %1956 = vst.msk [vmem:[#allocation2] sm:$0xff] %vm609_vm12, %v1951_v9 }
0x12d8   :  { %v1958_v11 = vld [vmem:[#allocation2] sm:$0xff]  ;;  %v1953_v13 = vpop.permute.xlu0 %1952 }
0x12d9   :  { %2922 = vmatmul.msk.f32.vlgmr.msra.gmra.mxu0 %vm90_vm0, %v1958_v11 }
0x12f5   :  { %v1847_v12 = vpop.permute.xlu2 %1846 }
0x12f6   :  { %1851 = vst.msk [vmem:[#allocation2 + $0x8] sm:$0xff] %vm502_vm11, %v1847_v12 }
0x12f7   :  { %1957 = vst.msk [vmem:[#allocation2 + $0x8] sm:$0xff] %vm609_vm12, %v1953_v13 }
0x12fe   :  { %v1959_v63 = vld [vmem:[#allocation2 + $0x8] sm:$0xff] }
0x12ff   :  { %2923 = vmatmul.msk.f32.gmra.mxu0 %vm90_vm0, %v1959_v63 }
0x1356   :  { %v1993_v14 = vpop.f32.mrf.mxu0 }
0x1357   :  { %v1994_v15 = vadd.f32 %v3154_v22, %v1993_v14 }
0x1359   :  { %v4125_v16 = vadd.f32 %v1994_v15, %v3971_v6 }
0x135b   :  { %v2005_v5 = vsel %vm90_vm0, %v4125_v16, 0.0 }
0x135c   :  { %2006 = vadd.xlane.f32.xlu2 %v2005_v5 }
0x137c   :  { %v1996_v17 = vpop.f32.mrf.mxu0 }
0x137d   :  { %v1997_v19 = vadd.f32 %v3154_v22, %v1996_v17 }
0x137f   :  { %v4130_v20 = vadd.f32 %v1997_v19, %v3976_v18  ;;  %v2935_v18 = vld [vmem:[%s4550_s10 + $0x30] sm:$0xff] }
0x1380   :  { %2121 = vmatpush.msrb.mxu3 %v2935_v18 }
0x1381   :  { %v2008_v24 = vsel %vm90_vm0, %v4130_v20, 0.0 }
0x1382   :  { %2009 = vadd.xlane.f32.xlu1 %v2008_v24  ;;  %2122 = vmatpush.msrb.mxu3 %v2934_v46 }
0x1384   :  { %2123 = vmatpush.msrb.mxu3 %v2933_v1 }
0x1385   :  { %2938 = vmatmul.msk.f32.vlgmr.msrb.gmra.mxu3 %vm90_vm0, %v3320_v29 }
0x138d   :  { %2939 = vmatmul.msk.f32.gmra.mxu3 %vm90_vm0, %v3321_v30 }
0x1395   :  { %2940 = vmatmul.msk.f32.gmra.mxu3 %vm90_vm0, %v3322_v33 }
0x139d   :  { %2941 = vmatmul.msk.f32.gmra.mxu3 %vm90_vm0, %v3323_v37 }
0x13cf   :  { %v2007_v25 = vpop.xlane.xlu2 %2006 }
0x13d0   :  { %v2011_v26 = vmul.f32 %v2007_v25, %v3508_v10  ;;  %v3158_v25 = vld [vmem:[%s4556_s14 + $0x1] ss:$0 sm:$0xff]  ;;  %s2800_s14 = sshll.u32 %s4559_s2, 4  ;;  %s2801_s14 = int_to_ptr.hbm [resolvable:$true] %s2800_s14 }
0x13d2   :  { %v2013_v0 = vsub.f32 %v4125_v16, %v2011_v26 }
0x13d4   :  { %v2015_v6 = vmul.f32 %v2013_v0, %v2013_v0 }
0x13d6   :  { %v2017_v27 = vsel %vm90_vm0, %v2015_v6, 0.0 }
0x13d7   :  { %2018 = vadd.xlane.f32.xlu0 %v2017_v27 }
0x13f5   :  { %v2010_v32 = vpop.xlane.xlu1 %2009 }
0x13f6   :  { %v2012_v58 = vmul.f32 %v2010_v32, %v3508_v10 }
0x13f8   :  { %v2014_v35 = vsub.f32 %v4130_v20, %v2012_v58 }
0x13fa   :  { %v2016_v36 = vmul.f32 %v2014_v35, %v2014_v35 }
0x13fc   :  { %v2020_v23 = vsel %vm90_vm0, %v2016_v36, 0.0 }
0x13fd   :  { %2021 = vadd.xlane.f32.xlu1 %v2020_v23 }
0x1408   :  { %v2125_v57 = vpop.f32.mrf.mxu3 }
0x1409   :  { %v4196_v21 = vadd.f32 %v3157_v60, %v2125_v57 }
0x1410   :  { %v2128_v62 = vpop.f32.mrf.mxu3 }
0x1411   :  { %v4192_v2 = vadd.f32 %v3157_v60, %v2128_v62 }
0x1413   :  { %2251 = vrot.lane.b32.xlu0 %v4192_v2, %s4545_s27  ;;  %v4207_v19 = vpack.i.bf16 %v4196_v21, %v4192_v2 }
0x1418   :  { %v2131_v7 = vpop.f32.mrf.mxu3 }
0x1419   :  { %v2132_v9 = vadd.f32 %v3157_v60, %v2131_v7 }
0x141b   :  { %2249 = vrot.lane.b32.xlu0 %v4196_v21, %s4545_s27  ;;  %2253 = vrot.lane.b32.xlu2 %v2132_v9, %s4545_s27 }
0x1420   :  { %v2134_v63 = vpop.f32.mrf.mxu3 }
0x1421   :  { %v2135_v14 = vadd.f32 %v3157_v60, %v2134_v63 }
0x1423   :  { %2255 = vrot.lane.b32.xlu1 %v2135_v14, %s4545_s27  ;;  %2493 = vrot.lane.b32.xlu0 %v2132_v9, %s4534_s4  ;;  %v4211_v24 = vpack.i.bf16 %v2132_v9, %v2135_v14 }
0x1424   :  { %2495 = vrot.lane.b32.xlu2 %v2135_v14, %s4534_s4  ;;  %2942 = vmatpush.xpose.msk.msrb.mxu2 %vm197_vm8, %v2135_v14 }
0x1428   :  { %2943 = vmatpush.xpose.msk.msrb.mxu2 %vm197_vm8, %v2132_v9 }
0x142b   :  { %3104 = vrot.lane.b32.xlu0 %v4207_v19, %s4536_s7  ;;  %2489 = vrot.lane.b32.xlu1 %v4196_v21, %s4534_s4 }
0x142c   :  { %3099 = vrot.lane.b32.xlu2 %v4211_v24, %s4536_s7  ;;  %2944 = vmatpush.xpose.msk.msrb.mxu2 %vm197_vm8, %v4192_v2 }
0x1430   :  { %2945 = vmatpush.xpose.msk.msrb.mxu2 %vm197_vm8, %v4196_v21 }
0x1433   :  { %2491 = vrot.lane.b32.xlu0 %v4192_v2, %s4534_s4 }
0x143b   :  { %2375 = vrot.lane.b32.xlu0 %v2135_v14, %s4535_s1 }
0x1443   :  { %2373 = vrot.lane.b32.xlu0 %v2132_v9, %s4535_s1 }
0x144a   :  { %v2019_v40 = vpop.xlane.xlu0 %2018 }
0x144b   :  { %v2023_v41 = vmul.f32 %v2019_v40, %v3508_v10 }
0x144d   :  { %v2025_v43 = vadd.f32 1e-05, %v2023_v41 }
0x144f   :  { %3278 = vrsqrt.f32 %v2025_v43  ;;  %vm2033_vm7 = vweird.f32 %v2025_v43 }
0x1455   :  { %v3279_v44 = vpop.eup %3278 }
0x1456   :  { %v2028_v45 = vmul.f32 %v3279_v44, %v2025_v43  ;;  %vm2034_vm9 = vweird.f32 %v3279_v44 }
0x1457   :  { %vm2035_vm13 = vmor %vm2033_vm7, %vm2034_vm9 }
0x1458   :  { %v2029_v47 = vmul.f32 %v3279_v44, %v2028_v45 }
0x145a   :  { %v2030_v48 = vmul.f32 0.5, %v2029_v47 }
0x145c   :  { %v2031_v49 = vsub.f32 1.5, %v2030_v48 }
0x145e   :  { %v2032_v50 = vmul.f32 %v3279_v44, %v2031_v49 }
0x1460   :  { %v2036_v52 = vsel %vm2035_vm13, %v3279_v44, %v2032_v50 }
0x1461   :  { %v2047_v42 = vmul.f32 %v2036_v52, %v2013_v0 }
0x1463   :  { %v2052_v54 = vmul.f32 %v3155_v51, %v2047_v42 }
0x1465   :  { %v2057_v55 = vadd.f32 %v3156_v53, %v2052_v54 }
0x1467   :  { %2931 = vmatmul.msk.f32.vlgmr.msra.gmra.mxu1 %vm90_vm0, %v2057_v55 }
0x1470   :  { %v2022_v59 = vpop.xlane.xlu1 %2021 }
0x1471   :  { %v2024_v56 = vmul.f32 %v2022_v59, %v3508_v10 }
0x1473   :  { %v2026_v61 = vadd.f32 1e-05, %v2024_v56 }
0x1475   :  { %3280 = vrsqrt.f32 %v2026_v61  ;;  %vm2043_vm1 = vweird.f32 %v2026_v61  ;;  %v2254_v27 = vpop.permute.xlu2 %2253 }
0x147b   :  { %v3281_v3 = vpop.eup %3280 }
0x147c   :  { %v2038_v4 = vmul.f32 %v3281_v3, %v2026_v61  ;;  %vm2044_vm14 = vweird.f32 %v3281_v3 }
0x147d   :  { %vm2045_vm2 = vmor %vm2043_vm1, %vm2044_vm14 }
0x147e   :  { %v2039_v8 = vmul.f32 %v3281_v3, %v2038_v4  ;;  %v2496_v30 = vpop.permute.xlu2 %2495 }
0x147f   :  { %2966 = vmatpush.xpose.msk.msra.mxu3 %vm197_vm8, %v2496_v30 }
0x1480   :  { %v2040_v11 = vmul.f32 0.5, %v2039_v8 }
0x1482   :  { %v2041_v12 = vsub.f32 1.5, %v2040_v11 }
0x1484   :  { %v2042_v13 = vmul.f32 %v3281_v3, %v2041_v12 }
0x1485   :  { %v2252_v18 = vpop.permute.xlu0 %2251 }
0x1486   :  { %v2046_v22 = vsel %vm2045_vm2, %v3281_v3, %v2042_v13  ;;  %v3100_v33 = vpop.permute.xlu2 %3099 }
0x1487   :  { %v2048_v15 = vmul.f32 %v2046_v22, %v2014_v35  ;;  %v3102_v58 = vunpack.i.h.bf16 %v3100_v33  ;;  %v3101_v35 = vunpack.i.l.bf16 %v3100_v33 }
0x1489   :  { %v2053_v5 = vmul.f32 %v3155_v51, %v2048_v15  ;;  %2232 = vmatpush.msrb.mxu0 %v3101_v35 }
0x148b   :  { %v2058_v17 = vadd.f32 %v3156_v53, %v2053_v5  ;;  %2233 = vmatpush.msrb.mxu0 %v3102_v58 }
0x148d   :  { %2932 = vmatmul.msk.f32.gmra.mxu1 %vm90_vm0, %v2058_v17  ;;  %v2250_v32 = vpop.permute.xlu0 %2249 }
0x1495   :  { %v2256_v28 = vpop.permute.xlu1 %2255  ;;  %v2494_v36 = vpop.permute.xlu0 %2493 }
0x1496   :  { %2950 = vmatpush.xpose.msk.msrb.mxu1 %vm197_vm8, %v2256_v28  ;;  %2967 = vmatpush.xpose.msk.msra.mxu3 %vm197_vm8, %v2494_v36 }
0x149a   :  { %2951 = vmatpush.xpose.msk.msrb.mxu1 %vm197_vm8, %v2254_v27 }
0x149d   :  { %v3105_v23 = vpop.permute.xlu0 %3104  ;;  %v2490_v31 = vpop.permute.xlu1 %2489 }
0x149e   :  { %2952 = vmatpush.xpose.msk.msrb.mxu1 %vm197_vm8, %v2252_v18  ;;  %v3107_v37 = vunpack.i.h.bf16 %v3105_v23  ;;  %v3106_v38 = vunpack.i.l.bf16 %v3105_v23 }
0x14a0   :  { %2234 = vmatpush.msrb.mxu0 %v3106_v38 }
0x14a2   :  { %2953 = vmatpush.xpose.msk.msrb.mxu1 %vm197_vm8, %v2250_v32  ;;  %2235 = vmatpush.msrb.mxu0 %v3107_v37 }
0x14a5   :  { %v2492_v34 = vpop.permute.xlu0 %2491 }
0x14a6   :  { %2968 = vmatpush.xpose.msk.msra.mxu3 %vm197_vm8, %v2492_v34 }
0x14aa   :  { %2969 = vmatpush.xpose.msk.msra.mxu3 %vm197_vm8, %v2490_v31 }
0x14ad   :  { %v2376_v39 = vpop.permute.xlu0 %2375 }
0x14ae   :  { %2958 = vmatpush.xpose.msk.msra.mxu0 %vm197_vm8, %v2376_v39 }
0x14b5   :  { %v2374_v40 = vpop.permute.xlu0 %2373 }
0x14b6   :  { %2959 = vmatpush.xpose.msk.msra.mxu0 %vm197_vm8, %v2374_v40 }
0x14e4   :  { %v2092_v26 = vpop.f32.mrf.mxu1 }
0x14e5   :  { %v2093_v0 = vadd.f32 %v3158_v25, %v2092_v26 }
0x14e7   :  { %v4230_v6 = vmul.f32 0.35355338, %v2093_v0 }
0x14e9   :  { %2245 = vrot.lane.b32.xlu2 %v4230_v6, %s4545_s27  ;;  %2946 = vmatmul.msk.f32.vlgmr.msrb.gmra.mxu2 %vm197_vm8, %v4230_v6 }
0x150a   :  { %v2095_v46 = vpop.f32.mrf.mxu1 }
0x150b   :  { %v2096_v1 = vadd.f32 %v3158_v25, %v2095_v46 }
0x150d   :  { %v2138_v29 = vmul.f32 0.35355338, %v2096_v1 }
0x150f   :  { %2247 = vrot.lane.b32.xlu0 %v2138_v29, %s4545_s27  ;;  %2947 = vmatmul.msk.f32.gmra.mxu2 %vm197_vm8, %v2138_v29  ;;  %s4557_s27 = sld [smem:[#allocation9_spill]] }
0x1515   :  { %v4256_v44 = vld [vmem:[%s4557_s27] sm:$0xff]  ;;  %v4266_v52 = vld [vmem:[%s4557_s27 + $0x8] sm:$0xff] }
0x1517   :  { %2485 = vrot.lane.b32.xlu0 %v4230_v6, %s4534_s4 }
0x151f   :  { %2487 = vrot.lane.b32.xlu0 %v2138_v29, %s4534_s4 }
0x1527   :  { %2367 = vrot.lane.b32.xlu0 %v2138_v29, %s4535_s1 }
0x1543   :  { %v2246_v41 = vpop.permute.xlu2 %2245 }
0x1544   :  { %2954 = vmatmul.msk.f32.vlgmr.msrb.gmra.mxu1 %vm197_vm8, %v2246_v41 }
0x156c   :  { %v2174_v43 = vpop.f32.mrf.mxu2 }
0x156d   :  { %v2175_v45 = vadd.f32 %v4256_v44, %v2174_v43 }
0x156f   :  { %v2180_v47 = vsel %vm90_vm0, %v2175_v45, -inf }
0x1570   :  { %2181 = vmax.xlane.f32.xlu1 %v2180_v47 }
0x1581   :  { %v2248_v48 = vpop.permute.xlu0 %2247 }
0x1582   :  { %2955 = vmatmul.msk.f32.gmra.mxu1 %vm197_vm8, %v2248_v48 }
0x1589   :  { %v2486_v49 = vpop.permute.xlu0 %2485 }
0x158a   :  { %2970 = vmatmul.msk.f32.vlgmr.msra.gmra.mxu3 %vm197_vm8, %v2486_v49 }
0x1591   :  { %v2488_v50 = vpop.permute.xlu0 %2487 }
0x1592   :  { %v2177_v51 = vpop.f32.mrf.mxu2  ;;  %2971 = vmatmul.msk.f32.gmra.mxu3 %vm197_vm8, %v2488_v50 }
0x1593   :  { %v2178_v42 = vadd.f32 %v4266_v52, %v2177_v51 }
0x1595   :  { %v2183_v53 = vsel %vm90_vm0, %v2178_v42, -inf }
0x1596   :  { %2184 = vmax.xlane.f32.xlu1 %v2183_v53 }
0x15af   :  { %2371 = vrot.lane.b32.xlu1 %v4192_v2, %s4535_s1 }
0x15c1   :  { %v2286_v60 = vpop.f32.mrf.mxu1 }
0x15c2   :  { %v2287_v14 = vadd.f32 %v4256_v44, %v2286_v60 }
0x15c4   :  { %v2292_v15 = vsel %vm90_vm0, %v2287_v14, -inf }
0x15e3   :  { %v2182_v54 = vpop.xlane.xlu1 %2181 }
0x15e4   :  { %v2186_v55 = vsub.f32 %v2175_v45, %v2182_v54 }
0x15e6   :  { %v2188_v57 = vmul.f32 1.442695, %v2186_v55 }
0x15e8   :  { %3282 = vpow2.f32 %v2188_v57 }
0x15ee   :  { %v3283_v59 = vpop.eup %3282 }
0x15ef   :  { %v2192_v56 = vsel %vm90_vm0, %v3283_v59, 0.0 }
0x15f0   :  { %2193 = vadd.xlane.f32.xlu1 %v2192_v56 }
0x15ff   :  { %v2289_v61 = vpop.f32.mrf.mxu1 }
0x1600   :  { %v2290_v62 = vadd.f32 %v4266_v52, %v2289_v61 }
0x1602   :  { %v2295_v3 = vsel %vm90_vm0, %v2290_v62, -inf }
0x1603   :  { %2296 = vmax.xlane.f32.xlu0 %v2295_v3 }
0x1609   :  { %2365 = vrot.lane.b32.xlu1 %v4230_v6, %s4535_s1  ;;  %v2185_v4 = vpop.xlane.xlu1 %2184 }
0x160a   :  { %v2187_v2 = vsub.f32 %v2178_v42, %v2185_v4 }
0x160c   :  { %v2190_v7 = vmul.f32 1.442695, %v2187_v2 }
0x160d   :  { %v2526_v8 = vpop.f32.mrf.mxu3 }
0x160e   :  { %3284 = vpow2.f32 %v2190_v7  ;;  %v2527_v5 = vadd.f32 %v4256_v44, %v2526_v8 }
0x1610   :  { %v2532_v17 = vsel %vm90_vm0, %v2527_v5, -inf }
0x1614   :  { %v3285_v9 = vpop.eup %3284 }
0x1615   :  { %v2529_v11 = vpop.f32.mrf.mxu3  ;;  %v2195_v12 = vsel %vm90_vm0, %v3285_v9, 0.0 }
0x1616   :  { %v4279_v13 = vadd.f32 %v4266_v52, %v2529_v11  ;;  %2196 = vadd.xlane.f32.xlu2 %v2195_v12 }
0x1618   :  { %v2535_v63 = vsel %vm90_vm0, %v4279_v13, -inf }
0x1619   :  { %2536 = vmax.xlane.f32.xlu0 %v2535_v63 }
0x1621   :  { %v2372_v22 = vpop.permute.xlu1 %2371 }
0x1622   :  { %2960 = vmatpush.xpose.msk.msra.mxu0 %vm197_vm8, %v2372_v22 }
0x162d   :  { %3109 = vrot.lane.b32.xlu0 %v4211_v24, %s4538_s29 }
0x162e   :  { %2369 = vrot.lane.b32.xlu2 %v4196_v21, %s4535_s1  ;;  %v2368_v21 = vpop.permute.xlu0 %2367 }
0x1633   :  { %2293 = vmax.xlane.f32.xlu1 %v2292_v15 }
0x1635   :  { %3119 = vrot.lane.b32.xlu0 %v4211_v24, %s4539_s3 }
0x163d   :  { %3129 = vrot.lane.b32.xlu0 %v4211_v24, %s4540_s30 }
0x1657   :  { %2533 = vmax.xlane.f32.xlu2 %v2532_v17 }
0x1663   :  { %v2194_v25 = vpop.xlane.xlu1 %2193 }
0x1664   :  { %3286 = vrcp.f32 %v2194_v25 }
0x166a   :  { %v3287_v26 = vpop.eup %3286 }
0x166b   :  { %v2200_v0 = vmul.f32 %v3287_v26, %v3283_v59 }
0x166d   :  { %2948 = vmatmul.msk.f32.vlgmr.msrb.gmra.mxu0 %vm90_vm0, %v2200_v0 }
0x1676   :  { %v2297_v27 = vpop.xlane.xlu0 %2296 }
0x1677   :  { %v2299_v36 = vsub.f32 %v2290_v62, %v2297_v27 }
0x1679   :  { %v2302_v37 = vmul.f32 1.442695, %v2299_v36 }
0x167b   :  { %v2366_v1 = vpop.permute.xlu1 %2365 }
0x1689   :  { %v2197_v6 = vpop.xlane.xlu2 %2196 }
0x168a   :  { %3288 = vrcp.f32 %v2197_v6 }
0x168c   :  { %v2537_v24 = vpop.xlane.xlu0 %2536 }
0x168d   :  { %v2539_v61 = vsub.f32 %v4279_v13, %v2537_v24 }
0x168f   :  { %v2542_v3 = vmul.f32 1.442695, %v2539_v61 }
0x1690   :  { %v3289_v28 = vpop.eup %3288 }
0x1691   :  { %v2370_v18 = vpop.permute.xlu2 %2369  ;;  %v2201_v46 = vmul.f32 %v3289_v28, %v3285_v9 }
0x1692   :  { %2961 = vmatpush.xpose.msk.msra.mxu0 %vm197_vm8, %v2370_v18 }
0x1693   :  { %2949 = vmatmul.msk.f32.gmra.mxu0 %vm90_vm0, %v2201_v46 }
0x169b   :  { %2962 = vmatmul.msk.f32.vlgmr.msra.gmra.mxu0 %vm197_vm8, %v2366_v1 }
0x169f   :  { %v3110_v29 = vpop.permute.xlu0 %3109 }
0x16a0   :  { %v3111_v30 = vunpack.i.l.bf16 %v3110_v29  ;;  %v3112_v32 = vunpack.i.h.bf16 %v3110_v29 }
0x16a2   :  { %2344 = vmatpush.msra.mxu2 %v3111_v30 }
0x16a3   :  { %2963 = vmatmul.msk.f32.gmra.mxu0 %vm197_vm8, %v2368_v21 }
0x16a4   :  { %2345 = vmatpush.msra.mxu2 %v3112_v32 }
0x16a6   :  { %v2294_v33 = vpop.xlane.xlu1 %2293 }
0x16a7   :  { %v2298_v58 = vsub.f32 %v2287_v14, %v2294_v33  ;;  %v4301_v35 = vpop.permute.xlu0 %3119 }
0x16a8   :  { %v3121_v25 = vunpack.i.l.bf16 %v4301_v35  ;;  %v3122_v26 = vunpack.i.h.bf16 %v4301_v35 }
0x16a9   :  { %v2300_v23 = vmul.f32 1.442695, %v2298_v58 }
0x16ab   :  { %3290 = vpow2.f32 %v2300_v23 }
0x16ac   :  { %3292 = vpow2.f32 %v2302_v37 }
0x16af   :  { %v3130_v38 = vpop.permute.xlu0 %3129 }
0x16b0   :  { %v3131_v34 = vunpack.i.l.bf16 %v3130_v38  ;;  %v3132_v39 = vunpack.i.h.bf16 %v3130_v38 }
0x16b1   :  { %v3291_v31 = vpop.eup %3290 }
0x16b2   :  { %2464 = vmatpush.msra.mxu1 %v3131_v34  ;;  %v2304_v40 = vsel %vm90_vm0, %v3291_v31, 0.0  ;;  %v4304_v41 = vpop.eup %3292 }
0x16b3   :  { %2305 = vadd.xlane.f32.xlu2 %v2304_v40  ;;  %v2307_v43 = vsel %vm90_vm0, %v4304_v41, 0.0 }
0x16b4   :  { %2465 = vmatpush.msra.mxu1 %v3132_v39 }
0x16bb   :  { %2308 = vadd.xlane.f32.xlu2 %v2307_v43 }
0x16ca   :  { %v2534_v45 = vpop.xlane.xlu2 %2533 }
0x16cb   :  { %v2538_v47 = vsub.f32 %v2527_v5, %v2534_v45 }
0x16cd   :  { %v2540_v48 = vmul.f32 1.442695, %v2538_v47 }
0x16cf   :  { %3294 = vpow2.f32 %v2540_v48  ;;  %v2977_v48 = vld [vmem:[%s4463_s18 + $0x38] sm:$0xff] }
0x16d0   :  { %2635 = vmatpush.msrb.mxu0 %v2977_v48 }
0x16d5   :  { %v4308_v49 = vpop.eup %3294 }
0x16d6   :  { %v2544_v50 = vsel %vm90_vm0, %v4308_v49, 0.0 }
0x16d7   :  { %2545 = vadd.xlane.f32.xlu2 %v2544_v50  ;;  %v2975_v50 = vld [vmem:[%s4463_s18 + $0x28] sm:$0xff] }
0x16ea   :  { %v2237_v51 = vpop.f32.mrf.mxu0 }
0x16eb   :  { %2243 = vst.msk [vmem:[#allocation2] sm:$0xff] %vm197_vm8, %v2237_v51  ;;  %v2974_v51 = vld [vmem:[%s4463_s18 + $0x20] sm:$0xff] }
0x1710   :  { %v2240_v42 = vpop.f32.mrf.mxu0 }
0x1711   :  { %2244 = vst.msk [vmem:[#allocation2 + $0x8] sm:$0xff] %vm197_vm8, %v2240_v42 }
0x1718   :  { %v2406_v53 = vpop.f32.mrf.mxu0 }
0x1719   :  { %v2407_v54 = vadd.f32 %v4256_v44, %v2406_v53 }
0x171b   :  { %v2412_v55 = vsel %vm90_vm0, %v2407_v54, -inf }
0x171c   :  { %2413 = vmax.xlane.f32.xlu1 %v2412_v55 }
0x1720   :  { %v2409_v57 = vpop.f32.mrf.mxu0 }
0x1721   :  { %v2410_v59 = vadd.f32 %v4266_v52, %v2409_v57 }
0x1723   :  { %v2415_v56 = vsel %vm90_vm0, %v2410_v59, -inf }
0x1724   :  { %2416 = vmax.xlane.f32.xlu1 %v2415_v56 }
0x1726   :  { %v2306_v13 = vpop.xlane.xlu2 %2305 }
0x172e   :  { %v2309_v63 = vpop.xlane.xlu2 %2308 }
0x173d   :  { %3114 = vrot.lane.b32.xlu1 %v4207_v19, %s4538_s29 }
0x1745   :  { %3124 = vrot.lane.b32.xlu1 %v4207_v19, %s4539_s3 }
0x174a   :  { %v2546_v0 = vpop.xlane.xlu2 %2545 }
0x174d   :  { %3134 = vrot.lane.b32.xlu1 %v4207_v19, %s4540_s30 }
0x178f   :  { %v2414_v60 = vpop.xlane.xlu1 %2413 }
0x1790   :  { %v2418_v44 = vsub.f32 %v2407_v54, %v2414_v60  ;;  %v3159_v60 = vld [vmem:[%s4464_s19 + $0x1] ss:$0 sm:$0xff] }
0x1792   :  { %v2420_v62 = vmul.f32 1.442695, %v2418_v44 }
0x1794   :  { %3296 = vpow2.f32 %v2420_v62 }
0x1795   :  { %3298 = vpow2.f32 %v2542_v3 }
0x1797   :  { %v2417_v52 = vpop.xlane.xlu1 %2416 }
0x1798   :  { %v2419_v4 = vsub.f32 %v2410_v59, %v2417_v52 }
0x179a   :  { %v3297_v2 = vpop.eup %3296  ;;  %v2422_v7 = vmul.f32 1.442695, %v2419_v4 }
0x179b   :  { %v2424_v8 = vsel %vm90_vm0, %v3297_v2, 0.0  ;;  %v3299_v9 = vpop.eup %3298 }
0x179c   :  { %3300 = vpow2.f32 %v2422_v7  ;;  %2425 = vadd.xlane.f32.xlu2 %v2424_v8  ;;  %v2547_v19 = vsel %vm90_vm0, %v3299_v9, 0.0 }
0x179d   :  { %3302 = vrcp.f32 %v2306_v13 }
0x179e   :  { %3304 = vrcp.f32 %v2309_v63 }
0x179f   :  { %3306 = vrcp.f32 %v2546_v0 }
0x17a2   :  { %v3301_v11 = vpop.eup %3300 }
0x17a3   :  { %v2427_v12 = vsel %vm90_vm0, %v3301_v11, 0.0  ;;  %v3303_v14 = vpop.eup %3302 }
0x17a4   :  { %2548 = vadd.xlane.f32.xlu2 %v2547_v19  ;;  %2428 = vadd.xlane.f32.xlu0 %v2427_v12  ;;  %v2312_v17 = vmul.f32 %v3303_v14, %v3291_v31  ;;  %v3305_v6 = vpop.eup %3304  ;;  %v2986_v14 = vld [vmem:[%s4465_s20 + $0x38] sm:$0xff] }
0x17a5   :  { %v2313_v18 = vmul.f32 %v3305_v6, %v4304_v41  ;;  %v3307_v24 = vpop.eup %3306 }
0x17a6   :  { %v2552_v30 = vmul.f32 %v3307_v24, %v4308_v49  ;;  %v2976_v49 = vld [vmem:[%s4463_s18 + $0x30] sm:$0xff] }
0x17a7   :  { %2636 = vmatpush.msrb.mxu0 %v2976_v49 }
0x17a9   :  { %2637 = vmatpush.msrb.mxu0 %v2975_v50 }
0x17ab   :  { %2638 = vmatpush.msrb.mxu0 %v2974_v51  ;;  %v2992_v51 = vld [vmem:[%s4467_s22 + $0x50] sm:$0xff] }
0x17af   :  { %v3115_v22 = vpop.permute.xlu1 %3114 }
0x17b0   :  { %v3116_v15 = vunpack.i.l.bf16 %v3115_v22  ;;  %v3117_v5 = vunpack.i.h.bf16 %v3115_v22 }
0x17b2   :  { %2346 = vmatpush.msra.mxu2 %v3116_v15  ;;  %v2985_v15 = vld [vmem:[%s4465_s20 + $0x30] sm:$0xff] }
0x17b4   :  { %2347 = vmatpush.msra.mxu2 %v3117_v5  ;;  %v2984_v5 = vld [vmem:[%s4465_s20 + $0x28] sm:$0xff] }
0x17b5   :  { %2956 = vmatmul.msk.f32.vlgmr.msra.gmra.mxu2 %vm90_vm0, %v2312_v17  ;;  %v2983_v17 = vld [vmem:[%s4465_s20 + $0x20] sm:$0xff] }
0x17b6   :  { %2584 = vmatpush.msrb.mxu2 %v3121_v25 }
0x17b7   :  { %v3125_v21 = vpop.permute.xlu1 %3124 }
0x17b8   :  { %v3126_v27 = vunpack.i.l.bf16 %v3125_v21  ;;  %2585 = vmatpush.msrb.mxu2 %v3122_v26  ;;  %v3127_v28 = vunpack.i.h.bf16 %v3125_v21 }
0x17ba   :  { %2586 = vmatpush.msrb.mxu2 %v3126_v27  ;;  %v2997_v27 = vld [vmem:[%s4467_s22 + $0x78] sm:$0xff] }
0x17bb   :  { %2775 = vmatpush.msrb.mxu3 %v2997_v27 }
0x17bc   :  { %2587 = vmatpush.msrb.mxu2 %v3127_v28  ;;  %v2996_v28 = vld [vmem:[%s4467_s22 + $0x70] sm:$0xff] }
0x17bd   :  { %2957 = vmatmul.msk.f32.gmra.mxu2 %vm90_vm0, %v2313_v18  ;;  %2776 = vmatpush.msrb.mxu3 %v2996_v28 }
0x17bf   :  { %v3135_v46 = vpop.permute.xlu1 %3134 }
0x17c0   :  { %v3136_v1 = vunpack.i.l.bf16 %v3135_v46  ;;  %v3137_v29 = vunpack.i.h.bf16 %v3135_v46  ;;  %v2995_v46 = vld [vmem:[%s4467_s22 + $0x68] sm:$0xff] }
0x17c1   :  { %2777 = vmatpush.msrb.mxu3 %v2995_v46 }
0x17c2   :  { %2466 = vmatpush.msra.mxu1 %v3136_v1 }
0x17c4   :  { %2467 = vmatpush.msra.mxu1 %v3137_v29 }
0x17c5   :  { %2972 = vmatmul.msk.f32.vlgmr.msrb.gmra.mxu2 %vm90_vm0, %v2552_v30  ;;  %v2994_v30 = vld [vmem:[%s4467_s22 + $0x60] sm:$0xff] }
0x17c6   :  { %2734 = vmatpush.msrb.mxu1 %v2986_v14  ;;  %2778 = vmatpush.msrb.mxu3 %v2994_v30 }
0x17c8   :  { %2735 = vmatpush.msrb.mxu1 %v2985_v15 }
0x17ca   :  { %2736 = vmatpush.msrb.mxu1 %v2984_v5 }
0x17cc   :  { %2737 = vmatpush.msrb.mxu1 %v2983_v17 }
0x180f   :  { %v2426_v32 = vpop.xlane.xlu2 %2425 }
0x1810   :  { %3308 = vrcp.f32 %v2426_v32 }
0x1816   :  { %v3309_v33 = vpop.eup %3308 }
0x1817   :  { %v2432_v58 = vmul.f32 %v3309_v33, %v3297_v2  ;;  %v2549_v35 = vpop.xlane.xlu2 %2548  ;;  %v2429_v36 = vpop.xlane.xlu0 %2428 }
0x1818   :  { %3310 = vrcp.f32 %v2549_v35 }
0x1819   :  { %3312 = vrcp.f32 %v2429_v36  ;;  %2964 = vmatmul.msk.f32.vlgmr.msra.gmra.mxu1 %vm90_vm0, %v2432_v58  ;;  %v2993_v58 = vld [vmem:[%s4467_s22 + $0x58] sm:$0xff] }
0x181a   :  { %2779 = vmatpush.msrb.mxu3 %v2993_v58 }
0x181c   :  { %2780 = vmatpush.msrb.mxu3 %v2992_v51 }
0x181e   :  { %v3311_v23 = vpop.eup %3310 }
0x181f   :  { %v3313_v37 = vpop.eup %3312  ;;  %v2553_v38 = vmul.f32 %v3311_v23, %v3299_v9 }
0x1820   :  { %v2433_v34 = vmul.f32 %v3313_v37, %v3301_v11  ;;  %v3161_v37 = vld [vmem:[%s4558_s16 + $0x1] ss:$0 sm:$0xff] }
0x1821   :  { %2973 = vmatmul.msk.f32.gmra.mxu2 %vm90_vm0, %v2553_v38 }
0x1822   :  { %2965 = vmatmul.msk.f32.gmra.mxu1 %vm90_vm0, %v2433_v34 }
0x1838   :  { %v2349_v31 = vpop.f32.mrf.mxu2 }
0x1839   :  { %2357 = vrot.lane.b32.xlu2 %v2349_v31, %s4541_s6 }
0x1840   :  { %v2352_v39 = vpop.f32.mrf.mxu2 }
0x1848   :  { %v2589_v40 = vpop.f32.mrf.mxu2 }
0x1849   :  { %2597 = vrot.lane.b32.xlu1 %v2589_v40, %s4542_s25 }
0x1893   :  { %v2358_v41 = vpop.permute.xlu2 %2357 }
0x1894   :  { %2363 = vst.msk [vmem:[#allocation2] sm:$0xff] %vm395_vm10, %v2358_v41 }
0x1896   :  { %v2469_v43 = vpop.f32.mrf.mxu1 }
0x1897   :  { %2477 = vrot.lane.b32.xlu1 %v2469_v43, %s4543_s24 }
0x189f   :  { %v2472_v45 = vpop.f32.mrf.mxu1  ;;  %2359 = vrot.lane.b32.xlu1 %v2352_v39, %s4541_s6 }
0x18a0   :  { %2479 = vrot.lane.b32.xlu2 %v2472_v45, %s4543_s24 }
0x18a4   :  { %v2592_v47 = vpop.f32.mrf.mxu2 }
0x18a7   :  { %2599 = vrot.lane.b32.xlu1 %v2592_v47, %s4542_s25 }
0x18bb   :  { %v2598_v42 = vpop.permute.xlu1 %2597 }
0x18fa   :  { %v2480_v55 = vpop.permute.xlu2 %2479 }
0x1909   :  { %v2478_v53 = vpop.permute.xlu1 %2477 }
0x190a   :  { %2483 = vst.msk [vmem:[#allocation2] sm:$0xff] %vm502_vm11, %v2478_v53  ;;  %v2990_v53 = vld [vmem:[%s4467_s22 + $0x40] sm:$0xff] }
0x190b   :  { %2603 = vst.msk [vmem:[#allocation2] sm:$0xff] %vm609_vm12, %v2598_v42  ;;  %v2991_v42 = vld [vmem:[%s4467_s22 + $0x48] sm:$0xff] }
0x190c   :  { %2781 = vmatpush.msrb.mxu3 %v2991_v42 }
0x190e   :  { %2782 = vmatpush.msrb.mxu3 %v2990_v53 }
0x1911   :  { %v2360_v54 = vpop.permute.xlu1 %2359 }
0x1912   :  { %2364 = vst.msk [vmem:[#allocation2 + $0x8] sm:$0xff] %vm395_vm10, %v2360_v54  ;;  %v2605_v57 = vld [vmem:[#allocation2] sm:$0xff] }
0x1913   :  { %2484 = vst.msk [vmem:[#allocation2 + $0x8] sm:$0xff] %vm502_vm11, %v2480_v55  ;;  %2979 = vmatmul.msk.f32.vlgmr.msrb.gmra.mxu0 %vm90_vm0, %v2605_v57  ;;  %v3162_v54 = vld [vmem:[%s4466_s21 + $0x1] ss:$0 sm:$0xff]  ;;  %s3367_s21 = smov [#allocation3]  }
0x1914   :  { %s2798_s22 = sshll.u32 %s3367_s21, 4  ;;  %s2799_s22 = int_to_ptr.vmem [resolvable:$true] %s2798_s22 }
0x1919   :  { %v2600_v59 = vpop.permute.xlu1 %2599 }
0x191a   :  { %2604 = vst.msk [vmem:[#allocation2 + $0x8] sm:$0xff] %vm609_vm12, %v2600_v59 }
0x1921   :  { %v2606_v56 = vld [vmem:[#allocation2 + $0x8] sm:$0xff] }
0x1922   :  { %2980 = vmatmul.msk.f32.gmra.mxu0 %vm90_vm0, %v2606_v56 }
0x1990   :  { %v2640_v44 = vpop.f32.mrf.mxu0 }
0x1991   :  { %v2641_v61 = vadd.f32 %v3159_v60, %v2640_v44 }
0x1993   :  { %v4368_v62 = vadd.f32 %v2641_v61, %v4125_v16  ;;  %v3163_v61 = vld [vmem:[%s4468_s23 + $0x1] ss:$0 sm:$0xff]  ;;  %s3368_s23 = smov 128  }
0x1995   :  { %v2652_v3 = vsel %vm90_vm0, %v4368_v62, 0.0 }
0x1996   :  { %2653 = vadd.xlane.f32.xlu2 %v2652_v3 }
0x199f   :  { %v2643_v52 = vpop.f32.mrf.mxu0 }
0x19a0   :  { %v2644_v4 = vadd.f32 %v3159_v60, %v2643_v52 }
0x19a2   :  { %v4373_v2 = vadd.f32 %v2644_v4, %v4130_v20 }
0x19a4   :  { %v2655_v7 = vsel %vm90_vm0, %v4373_v2, 0.0 }
0x19a5   :  { %2656 = vadd.xlane.f32.xlu1 %v2655_v7 }
0x1a09   :  { %v2654_v8 = vpop.xlane.xlu2 %2653 }
0x1a0a   :  { %v2658_v9 = vmul.f32 %v2654_v8, %v3508_v10 }
0x1a0c   :  { %v2660_v11 = vsub.f32 %v4368_v62, %v2658_v9 }
0x1a0e   :  { %v2662_v16 = vmul.f32 %v2660_v11, %v2660_v11 }
0x1a10   :  { %v2664_v19 = vsel %vm90_vm0, %v2662_v16, 0.0 }
0x1a11   :  { %2665 = vadd.xlane.f32.xlu0 %v2664_v19 }
0x1a18   :  { %v2657_v12 = vpop.xlane.xlu1 %2656 }
0x1a19   :  { %v2659_v13 = vmul.f32 %v2657_v12, %v3508_v10 }
0x1a1b   :  { %v2661_v63 = vsub.f32 %v4373_v2, %v2659_v13 }
0x1a1d   :  { %v2663_v20 = vmul.f32 %v2661_v63, %v2661_v63 }
0x1a1f   :  { %v2667_v22 = vsel %vm90_vm0, %v2663_v20, 0.0 }
0x1a20   :  { %2668 = vadd.xlane.f32.xlu0 %v2667_v22 }
0x1a84   :  { %v2666_v25 = vpop.xlane.xlu0 %2665 }
0x1a85   :  { %v2670_v26 = vmul.f32 %v2666_v25, %v3508_v10 }
0x1a87   :  { %v2672_v0 = vadd.f32 1e-05, %v2670_v26 }
0x1a89   :  { %3314 = vrsqrt.f32 %v2672_v0  ;;  %vm2680_vm10 = vweird.f32 %v2672_v0 }
0x1a8f   :  { %v3315_v21 = vpop.eup %3314 }
0x1a90   :  { %v2675_v6 = vmul.f32 %v3315_v21, %v2672_v0  ;;  %vm2681_vm8 = vweird.f32 %v3315_v21 }
0x1a91   :  { %vm2682_vm11 = vmor %vm2680_vm10, %vm2681_vm8 }
0x1a92   :  { %v2676_v18 = vmul.f32 %v3315_v21, %v2675_v6 }
0x1a93   :  { %v2669_v24 = vpop.xlane.xlu0 %2668 }
0x1a94   :  { %v2677_v1 = vmul.f32 0.5, %v2676_v18  ;;  %v2671_v29 = vmul.f32 %v2669_v24, %v3508_v10  ;;  %v3160_v10 = vld [vmem:[%s4544_s0 + $0x1] ss:$0 sm:$0xff] }
0x1a96   :  { %v2678_v32 = vsub.f32 1.5, %v2677_v1  ;;  %v2673_v33 = vadd.f32 1e-05, %v2671_v29 }
0x1a98   :  { %v2679_v35 = vmul.f32 %v3315_v21, %v2678_v32  ;;  %3316 = vrsqrt.f32 %v2673_v33  ;;  %vm2690_vm3 = vweird.f32 %v2673_v33 }
0x1a9a   :  { %v2683_v36 = vsel %vm2682_vm11, %v3315_v21, %v2679_v35 }
0x1a9b   :  { %v2694_v23 = vmul.f32 %v2683_v36, %v2660_v11 }
0x1a9d   :  { %v2699_v38 = vmul.f32 %v3160_v10, %v2694_v23 }
0x1a9e   :  { %v3317_v34 = vpop.eup %3316 }
0x1a9f   :  { %v2685_v31 = vmul.f32 %v3317_v34, %v2673_v33  ;;  %v2704_v39 = vadd.f32 %v3161_v37, %v2699_v38  ;;  %vm2691_vm12 = vweird.f32 %v3317_v34 }
0x1aa0   :  { %vm2692_vm4 = vmor %vm2690_vm3, %vm2691_vm12 }
0x1aa1   :  { %v2686_v40 = vmul.f32 %v3317_v34, %v2685_v31  ;;  %2988 = vmatmul.msk.f32.vlgmr.msrb.gmra.mxu1 %vm90_vm0, %v2704_v39 }
0x1aa3   :  { %v2687_v41 = vmul.f32 0.5, %v2686_v40 }
0x1aa5   :  { %v2688_v43 = vsub.f32 1.5, %v2687_v41 }
0x1aa7   :  { %v2689_v45 = vmul.f32 %v3317_v34, %v2688_v43 }
0x1aa9   :  { %v2693_v47 = vsel %vm2692_vm4, %v3317_v34, %v2689_v45 }
0x1aaa   :  { %v2695_v48 = vmul.f32 %v2693_v47, %v2661_v63 }
0x1aac   :  { %v2700_v49 = vmul.f32 %v3160_v10, %v2695_v48 }
0x1aae   :  { %v2705_v50 = vadd.f32 %v3161_v37, %v2700_v49 }
0x1ab0   :  { %2989 = vmatmul.msk.f32.gmra.mxu1 %vm90_vm0, %v2705_v50 }
0x1b1e   :  { %v2739_v55 = vpop.f32.mrf.mxu1 }
0x1b1f   :  { %v2740_v57 = vadd.f32 %v3162_v54, %v2739_v55 }
0x1b21   :  { %v2745_v59 = vmax.f32 %v2740_v57, 0.0 }
0x1b23   :  { %2999 = vmatmul.msk.f32.vlgmr.msrb.gmra.mxu3 %vm1411_vm15, %v2745_v59 }
0x1b2d   :  { %v2742_v56 = vpop.f32.mrf.mxu1 }
0x1b2e   :  { %v2743_v60 = vadd.f32 %v3162_v54, %v2742_v56 }
0x1b30   :  { %v2746_v44 = vmax.f32 %v2743_v60, 0.0 }
0x1b32   :  { %3000 = vmatmul.msk.f32.gmra.mxu3 %vm1411_vm15, %v2746_v44 }
0x1ba6   :  { %v2784_v3 = vpop.f32.mrf.mxu3 }
0x1ba7   :  { %v2785_v52 = vadd.f32 %v3163_v61, %v2784_v3 }
0x1ba9   :  { %v2790_v4 = vadd.f32 %v2785_v52, %v4368_v62 }
0x1bab   :  { %2792 = vst.msk [vmem:[#allocation3] sm:$0xff] %vm90_vm0, %v2790_v4 }
0x1bb5   :  { %v2787_v7 = vpop.f32.mrf.mxu3 }
0x1bb6   :  { %v2788_v8 = vadd.f32 %v3163_v61, %v2787_v7 }
0x1bb8   :  { %v2791_v9 = vadd.f32 %v2788_v8, %v4373_v2 }
0x1bba   :  { %2793 = vst.msk [vmem:[#allocation3 + $0x8] sm:$0xff] %vm90_vm0, %v2791_v9 }
0x1bbb   :  { %2806 = dma.vmem_to_hbm [thread:$0]  %s2799_s22, 256, %s2801_s14, [#allocation4], %s3368_s23, %s3368_s23, %s4541_s6  }
0x1bbc   :  { %3350 = dma.done.wait [#allocation4], 256  }
0x1bbd   :  { %3351 = vsyncadd [#allocation4], 4294967040 }
0x1bbe   :  { %2811 = vsyncpa [#allocation4], 1 }

</bundles_post_ra>
